<compile_context>
chip_gen: v6e
topology: v6e:2x2x1
jax: 0.10.0
libtpu: 0.0.40
codegen_flags: <defaults>
</compile_context>

<pallas_src>
import functools

import jax
import jax.numpy as jnp
from jax.experimental import pallas as pl
from jax.experimental.pallas import tpu as pltpu


# ----------------------------------------------------------------------------
# kernel helpers
# ----------------------------------------------------------------------------
def _conv3x3(xpad, w, rows, cols, fold_taps):
    """3x3 'valid' conv over an already zero-padded bf16 window.

    xpad : (rows+2, cols+2, C) bf16 value
    w    : (9*C, Cout) bf16 value, taps flattened onto the contraction axis in
           (kh, kw)-major order; eval-mode BN scale already folded in.
    Returns (rows, cols, Cout) f32 (f32 accumulation on the MXU).
    """
    C = xpad.shape[-1]
    Cout = w.shape[-1]
    # Flatten (rows, cols) into the matmul M dim only when each row occupies
    # whole bf16 sublane tiles (cols % 16 == 0) so the reshape is a relabeling,
    # not a relayout copy; otherwise keep the validated 3-D contraction.
    flatten = (cols % 16 == 0)

    def mm(lhs, rhs):
        if flatten:
            out = jnp.dot(lhs.reshape(rows * cols, lhs.shape[-1]), rhs,
                          preferred_element_type=jnp.float32)
            return out.reshape(rows, cols, Cout)
        return jnp.einsum('hwk,kd->hwd', lhs, rhs,
                          preferred_element_type=jnp.float32)

    if fold_taps:
        # im2col: fold all 9 taps into the contraction dim -> one MXU matmul
        # with K = 9*C.  Concat is done in f32 then cast (matches the
        # previously validated lowering); only used for small C (opt-in).
        taps = [xpad[kh:kh + rows, kw:kw + cols, :].astype(jnp.float32)
                for kh in range(3) for kw in range(3)]
        patch = jnp.concatenate(taps, axis=-1).astype(jnp.bfloat16)  # (rows, cols, 9C)
        return mm(patch, w)

    # Default / robust path: per-tap matmuls with K = C (MXU-aligned whenever
    # C % 128 == 0), no 9x im2col patch materialization and no lane concat.
    acc = None
    for t in range(9):
        kh, kw = divmod(t, 3)
        tap = xpad[kh:kh + rows, kw:kw + cols, :]
        term = mm(tap, w[t * C:(t + 1) * C, :])
        acc = term if acc is None else acc + term
    return acc


def _basic_block_kernel(x_ref, w1_ref, b1_ref, w2_ref, b2_ref,
                        o_ref, xp_scr, h1p_scr, *, fold_taps):
    """One (image, row-tile) grid step.

    x_ref   : (1, H, W, Cin)   full image, resident per image (constant block
                               index across the row-tile axis) — also residual.
    w*_ref  : (9*C, Cout)      bf16 conv weights, BN scale pre-folded, taps on K.
    b*_ref  : (1, Cout)        folded (eval-mode) BN bias, f32.
    o_ref   : (1, TH, W, Cp)   output row tile.
    xp_scr  : (TH+4, W+2, Cin) bf16 pad scratch for conv_1's input window.
    h1p_scr : (TH+2, W+2, Cp)  bf16 pad scratch for conv_2's input window.
    """
    H, W, Cin = x_ref.shape[1], x_ref.shape[2], x_ref.shape[3]
    TH, Cp = o_ref.shape[1], o_ref.shape[3]
    HO1 = TH + 2                      # conv_1 rows needed per tile (1-row halo)

    r = pl.program_id(1)
    nrt = pl.num_programs(1)
    row0 = r * TH
    if TH % 8 == 0:
        row0 = pl.multiple_of(row0, 8)

    # Only the 1-column zero borders of the pad scratches must be clean; every
    # interior element is rewritten below.  Re-zeroing them each step costs a
    # few sublanes of stores, has no cross-step ordering dependency, and keeps
    # both grid axes safely "parallel" (per-core scratches on megacore / v7x).
    xp_scr[:, 0:1, :] = jnp.zeros((TH + 4, 1, Cin), xp_scr.dtype)
    xp_scr[:, W + 1:, :] = jnp.zeros((TH + 4, 1, Cin), xp_scr.dtype)
    h1p_scr[:, 0:1, :] = jnp.zeros((TH + 2, 1, Cp), h1p_scr.dtype)
    h1p_scr[:, W + 1:, :] = jnp.zeros((TH + 2, 1, Cp), h1p_scr.dtype)

    # ---- assemble the (TH+4)-row input window; rows outside the image -> 0 ----
    top = jnp.where(r > 0,
                    x_ref[0, pl.ds(jnp.maximum(row0 - 2, 0), 2), :, :], 0.0)
    mid = x_ref[0, pl.ds(row0, TH), :, :]          # f32; also the residual rows
    bot = jnp.where(r < nrt - 1,
                    x_ref[0, pl.ds(jnp.minimum(row0 + TH, H - 2), 2), :, :], 0.0)
    xp_scr[0:2, 1:W + 1, :] = top.astype(xp_scr.dtype)
    xp_scr[2:TH + 2, 1:W + 1, :] = mid.astype(xp_scr.dtype)
    xp_scr[TH + 2:, 1:W + 1, :] = bot.astype(xp_scr.dtype)

    # ---- conv_1 (BN1 scale folded into w1) + bias + ReLU ----
    h1 = _conv3x3(xp_scr[...], w1_ref[...], HO1, W, fold_taps)   # (HO1, W, Cp) f32
    h1 = jnp.maximum(h1 + b1_ref[...], 0.0)

    # conv_2 sees zero padding above/below the image: halo rows of h1 that fall
    # outside [0, H) are conv padding, not computed values -> force them to 0.
    h1p_scr[0:1, 1:W + 1, :] = jnp.where(r > 0, h1[0:1], 0.0).astype(h1p_scr.dtype)
    h1p_scr[1:HO1 - 1, 1:W + 1, :] = h1[1:HO1 - 1].astype(h1p_scr.dtype)
    h1p_scr[HO1 - 1:, 1:W + 1, :] = jnp.where(r < nrt - 1, h1[HO1 - 1:], 0.0
                                              ).astype(h1p_scr.dtype)

    # ---- conv_2 (BN2 scale folded into w2) + bias + residual add + ReLU ----
    h2 = _conv3x3(h1p_scr[...], w2_ref[...], TH, W, fold_taps)   # (TH, W, Cp) f32
    o_ref[...] = jnp.maximum(mid + (h2 + b2_ref[...]), 0.0)[None].astype(o_ref.dtype)


# ----------------------------------------------------------------------------
# wrappers
# ----------------------------------------------------------------------------
def _pick_row_tile(H, max_rows=64):
    """Largest divisor of H in [2, min(max_rows, H//2)]; falls back to H."""
    cap = min(max_rows, H // 2)
    best = H
    for d in range(2, cap + 1):
        if H % d == 0:
            best = d
    return best


def _basic_block_pallas(x_nhwc, params, *, row_tile, out_dtype, use_im2col):
    w1, s1, b1, w2, s2, b2 = params
    N, H, W, Cin = x_nhwc.shape
    Cp = w1.shape[-1]
    if w1.shape[:3] != (3, 3, Cin):
        raise ValueError("conv_1 weight must be (3, 3, Cin, Cp) in HWIO layout")
    if Cp != Cin:
        raise ValueError("BasicBlock residual add requires inplanes == planes")

    th = row_tile if row_tile is not None else _pick_row_tile(H)
    if H % th != 0:
        raise ValueError("row_tile must divide H")
    nrt = H // th

    # Trace-time path choice (no try/except fallback).  Per-tap (K = C) is the
    # robust default everywhere and the recommended path for C % 128 == 0; the
    # im2col fold (single matmul, K = 9*C) is opt-in for small C only, since
    # its unaligned lane-axis concat is both a perf and a lowering risk.
    fold_taps = bool(use_im2col) and (Cin < 128)

    # Fold the eval-mode BN scales into the conv weights in f32, *then* cast to
    # bf16 for the MXU; flatten the 9 taps onto the contraction axis host-side
    # so the resident weight block is already MXU-ready (no in-kernel reshape).
    s1f = jnp.asarray(s1, jnp.float32).reshape(1, 1, 1, Cp)
    s2f = jnp.asarray(s2, jnp.float32).reshape(1, 1, 1, Cp)
    w1m = (jnp.asarray(w1, jnp.float32) * s1f).reshape(9 * Cin, Cp).astype(jnp.bfloat16)
    w2m = (jnp.asarray(w2, jnp.float32) * s2f).reshape(9 * Cp, Cp).astype(jnp.bfloat16)
    b1m = jnp.asarray(b1, jnp.float32).reshape(1, Cp)
    b2m = jnp.asarray(b2, jnp.float32).reshape(1, Cp)

    # VMEM budget: resident image (double-buffered), output tile, weights, bf16
    # pad scratches (lane-padded) and, for the fold path, the im2col patch temp.
    # Cap at 56 MiB so the tiling stays safe on v7x's 64 MiB physical VMEM
    # while lifting the old 32 MiB cap for larger maps on v5e/v6e (128 MiB).
    osz = jnp.dtype(out_dtype).itemsize
    est = (2 * H * W * Cin * 4
           + 2 * th * W * Cp * osz
           + 2 * (9 * Cin * Cp + 9 * Cp * Cp) * 2
           + ((th + 4) * (W + 2) * max(Cin, 128)
              + (th + 2) * (W + 2) * max(Cp, 128)) * 2
           + (((th + 2) * W * 9 * Cin * 4) if fold_taps else 0))
    vmem_limit = int(min(max(2 * est, 32 << 20), 56 << 20))

    kernel = functools.partial(_basic_block_kernel, fold_taps=fold_taps)

    return pl.pallas_call(
        kernel,
        out_shape=jax.ShapeDtypeStruct((N, H, W, Cp), out_dtype),
        grid_spec=pltpu.PrefetchScalarGridSpec(
            num_scalar_prefetch=0,
            grid=(N, nrt),
            in_specs=[
                # Whole image per batch element; block index is constant across
                # the row-tile axis, so it is copied HBM->VMEM only once per n
                # and doubles as the residual.
                pl.BlockSpec((1, H, W, Cin), lambda n, r: (n, 0, 0, 0)),
                pl.BlockSpec((9 * Cin, Cp),  lambda n, r: (0, 0)),
                pl.BlockSpec((1, Cp),        lambda n, r: (0, 0)),
                pl.BlockSpec((9 * Cp, Cp),   lambda n, r: (0, 0)),
                pl.BlockSpec((1, Cp),        lambda n, r: (0, 0)),
            ],
            out_specs=pl.BlockSpec((1, th, W, Cp), lambda n, r: (n, r, 0, 0)),
            scratch_shapes=[
                pltpu.VMEM((th + 4, W + 2, Cin), jnp.bfloat16),  # conv_1 padded input
                pltpu.VMEM((th + 2, W + 2, Cp), jnp.bfloat16),   # conv_2 padded input
            ],
        ),
        compiler_params=pltpu.CompilerParams(
            # Row tiles are independent (halos come from the resident image,
            # not from prior tiles) and scratch init is per-step, so both axes
            # are parallel -> both v7x TensorCores stay busy even at N=1.
            dimension_semantics=("parallel", "parallel"),
            vmem_limit_bytes=vmem_limit,
        ),
    )(x_nhwc, w1m, b1m, w2m, b2m)


def basic_block_forward_nhwc(x_nhwc, params, *, row_tile=None,
                             out_dtype=jnp.float32, use_im2col=False):
    """Fused BasicBlock forward on an NHWC f32 input (preferred entry point)."""
    return _basic_block_pallas(x_nhwc, params, row_tile=row_tile,
                               out_dtype=out_dtype, use_im2col=use_im2col)


def basic_block_forward(x_nchw, params, *, row_tile=None,
                        out_dtype=jnp.float32, use_im2col=False):
    """PyTorch-compatible NCHW entry point.

    NOTE: the NCHW<->NHWC transposes are full-tensor HBM round trips; in a real
    network keep activations NHWC end-to-end and call basic_block_forward_nhwc.
    """
    x = jnp.transpose(x_nchw, (0, 2, 3, 1))
    y = basic_block_forward_nhwc(x, params, row_tile=row_tile,
                                 out_dtype=out_dtype, use_im2col=use_im2col)
    return jnp.transpose(y, (0, 3, 1, 2))


# ----------------------------------------------------------------------------
# parameters + reference
# ----------------------------------------------------------------------------
def make_params(key, inplanes, planes, eps=1e-5):
    """Deterministic synthetic parameters; eval-mode BN folded to scale/bias."""
    ks = jax.random.split(key, 8)
    fan1 = 3 * 3 * inplanes
    fan2 = 3 * 3 * planes
    w1 = jax.random.normal(ks[0], (3, 3, inplanes, planes), jnp.float32) * (2.0 / fan1) ** 0.5
    w2 = jax.random.normal(ks[1], (3, 3, planes, planes), jnp.float32) * (2.0 / fan2) ** 0.5
    g1 = 1.0 + 0.1 * jax.random.normal(ks[2], (planes,), jnp.float32)
    be1 = 0.1 * jax.random.normal(ks[3], (planes,), jnp.float32)
    rm1 = 0.1 * jax.random.normal(ks[4], (planes,), jnp.float32)
    rv1 = jnp.abs(jax.random.normal(ks[5], (planes,), jnp.float32)) + 0.5
    g2 = 1.0 + 0.1 * jax.random.normal(ks[6], (planes,), jnp.float32)
    be2 = 0.1 * jax.random.normal(ks[7], (planes,), jnp.float32)
    rm2 = jnp.zeros((planes,), jnp.float32)
    rv2 = jnp.ones((planes,), jnp.float32)
    s1 = g1 / jnp.sqrt(rv1 + eps)
    b1 = be1 - rm1 * s1
    s2 = g2 / jnp.sqrt(rv2 + eps)
    b2 = be2 - rm2 * s2
    return (w1, s1.reshape(1, planes), b1.reshape(1, planes),
            w2, s2.reshape(1, planes), b2.reshape(1, planes))


def _reference(x_nchw, params):
    """Pure-JAX reference matching the kernel's mixed precision: BN scales
    folded into the weights in f32, bf16 matmul operands, f32 accumulation,
    f32 bias / ReLU / residual."""
    w1, s1, b1, w2, s2, b2 = params
    x = jnp.transpose(x_nchw, (0, 2, 3, 1)).astype(jnp.float32)
    w1f = jnp.asarray(w1, jnp.float32) * jnp.asarray(s1, jnp.float32).reshape(1, 1, 1, -1)
    w2f = jnp.asarray(w2, jnp.float32) * jnp.asarray(s2, jnp.float32).reshape(1, 1, 1, -1)

    def conv3x3(h, w):
        hb = h.astype(jnp.bfloat16).astype(jnp.float32)
        wb = w.astype(jnp.bfloat16).astype(jnp.float32)
        hp = jnp.pad(hb, ((0, 0), (1, 1), (1, 1), (0, 0)))
        Hh, Ww = h.shape[1], h.shape[2]
        out = 0.0
        for kh in range(3):
            for kw in range(3):
                out = out + jnp.einsum('nhwc,cd->nhwd',
                                       hp[:, kh:kh + Hh, kw:kw + Ww, :], wb[kh, kw])
        return out

    h = jnp.maximum(conv3x3(x, w1f) + b1.reshape(-1), 0.0)
    h = conv3x3(h, w2f) + b2.reshape(-1)
    y = jnp.maximum(x + h, 0.0)
    return jnp.transpose(y, (0, 3, 1, 2))


# ----------------------------------------------------------------------------
# demo / self-check
# ----------------------------------------------------------------------------
if __name__ == "__main__":
    key = jax.random.PRNGKey(0)
    kx, kp = jax.random.split(key)

    N, C, Hs, Ws = 2, 4, 16, 16            # inplanes == planes == 4, stride == 1
    x = jax.random.normal(kx, (N, C, Hs, Ws), jnp.float32)
    params = make_params(kp, inplanes=C, planes=C)

    y = basic_block_forward(x, params)     # row tile = 8 -> grid (2, 2)
    y = jax.block_until_ready(y)

    y_ref = _reference(x, params)
    assert y.shape == (N, C, Hs, Ws)
    assert jnp.allclose(y, y_ref, atol=2e-2, rtol=2e-2), float(jnp.max(jnp.abs(y - y_ref)))

    print("KERNEL_OK")
</pallas_src>

<mosaic_0001>
module attributes {stable_mosaic.version = 11 : i64} {
  func.func @_basic_block_kernel(%arg0: i32, %arg1: i32, %arg2: memref<1x16x16x4xf32, #tpu.memory_space<vmem>>, %arg3: memref<36x4xbf16, #tpu.memory_space<vmem>>, %arg4: memref<1x4xf32, #tpu.memory_space<vmem>>, %arg5: memref<36x4xbf16, #tpu.memory_space<vmem>>, %arg6: memref<1x4xf32, #tpu.memory_space<vmem>>, %arg7: memref<1x8x16x4xf32, #tpu.memory_space<vmem>>, %arg8: memref<12x18x4xbf16, #tpu.memory_space<vmem>>, %arg9: memref<10x18x4xbf16, #tpu.memory_space<vmem>>) attributes {dimension_semantics = [#tpu.dimension_semantics<parallel>, #tpu.dimension_semantics<parallel>], iteration_bounds = array<i64: 2, 2>, scalar_prefetch = 0 : i64, scratch_operands = 2 : i64, tpu.core_type = #tpu.core_type<tc>, window_params = [{transform_indices = @transform_0, window_bounds = array<i64: 1, 16, 16, 4>}, {pipeline_mode = #tpu.pipeline_mode<synchronous>, transform_indices = @transform_1, window_bounds = array<i64: 36, 4>}, {pipeline_mode = #tpu.pipeline_mode<synchronous>, transform_indices = @transform_2, window_bounds = array<i64: 1, 4>}, {pipeline_mode = #tpu.pipeline_mode<synchronous>, transform_indices = @transform_3, window_bounds = array<i64: 36, 4>}, {pipeline_mode = #tpu.pipeline_mode<synchronous>, transform_indices = @transform_4, window_bounds = array<i64: 1, 4>}, {transform_indices = @transform_5, window_bounds = array<i64: 1, 8, 16, 4>}]} {
    %c8_i32 = arith.constant 8 : i32
    %0 = arith.muli %arg1, %c8_i32 : i32
    %1 = tpu.assume_multiple %0, 8 : i32
    %cst = arith.constant 0.000000e+00 : bf16
    %2 = vector.broadcast %cst : bf16 to vector<12x1x4xbf16>
    %c0 = arith.constant 0 : index
    %c0_0 = arith.constant 0 : index
    %c0_1 = arith.constant 0 : index
    %3 = vector.load %arg8[%c0, %c0_0, %c0_1] : memref<12x18x4xbf16, #tpu.memory_space<vmem>>, vector<12x1x4xbf16>
    tpu.vector_store %arg8[%c0, %c0_0, %c0_1], %2 {strides = array<i32>} : memref<12x18x4xbf16, #tpu.memory_space<vmem>>, vector<12x1x4xbf16>,
    %cst_2 = arith.constant 0.000000e+00 : bf16
    %4 = vector.broadcast %cst_2 : bf16 to vector<12x1x4xbf16>
    %c0_3 = arith.constant 0 : index
    %c17 = arith.constant 17 : index
    %c0_4 = arith.constant 0 : index
    %5 = vector.load %arg8[%c0_3, %c17, %c0_4] : memref<12x18x4xbf16, #tpu.memory_space<vmem>>, vector<12x1x4xbf16>
    tpu.vector_store %arg8[%c0_3, %c17, %c0_4], %4 {strides = array<i32>} : memref<12x18x4xbf16, #tpu.memory_space<vmem>>, vector<12x1x4xbf16>,
    %cst_5 = arith.constant 0.000000e+00 : bf16
    %6 = vector.broadcast %cst_5 : bf16 to vector<10x1x4xbf16>
    %c0_6 = arith.constant 0 : index
    %c0_7 = arith.constant 0 : index
    %c0_8 = arith.constant 0 : index
    %7 = vector.load %arg9[%c0_6, %c0_7, %c0_8] : memref<10x18x4xbf16, #tpu.memory_space<vmem>>, vector<10x1x4xbf16>
    tpu.vector_store %arg9[%c0_6, %c0_7, %c0_8], %6 {strides = array<i32>} : memref<10x18x4xbf16, #tpu.memory_space<vmem>>, vector<10x1x4xbf16>,
    %cst_9 = arith.constant 0.000000e+00 : bf16
    %8 = vector.broadcast %cst_9 : bf16 to vector<10x1x4xbf16>
    %c0_10 = arith.constant 0 : index
    %c17_11 = arith.constant 17 : index
    %c0_12 = arith.constant 0 : index
    %9 = vector.load %arg9[%c0_10, %c17_11, %c0_12] : memref<10x18x4xbf16, #tpu.memory_space<vmem>>, vector<10x1x4xbf16>
    tpu.vector_store %arg9[%c0_10, %c17_11, %c0_12], %8 {strides = array<i32>} : memref<10x18x4xbf16, #tpu.memory_space<vmem>>, vector<10x1x4xbf16>,
    %c0_i32 = arith.constant 0 : i32
    %10 = arith.cmpi sgt, %arg1, %c0_i32 : i32
    %c2_i32 = arith.constant 2 : i32
    %11 = arith.subi %1, %c2_i32 : i32
    %c0_i32_13 = arith.constant 0 : i32
    %12 = arith.maxsi %11, %c0_i32_13 : i32
    %c0_14 = arith.constant 0 : index
    %13 = arith.index_cast %12 : i32 to index
    %c0_15 = arith.constant 0 : index
    %c0_16 = arith.constant 0 : index
    %14 = vector.load %arg2[%c0_14, %13, %c0_15, %c0_16] : memref<1x16x16x4xf32, #tpu.memory_space<vmem>>, vector<1x2x16x4xf32>
    %15 = vector.shape_cast %14 : vector<1x2x16x4xf32> to vector<2x16x4xf32>
    %cst_17 = arith.constant 0.000000e+00 : f32
    %16 = vector.broadcast %cst_17 : f32 to vector<2x16x4xf32>
    %17 = arith.select %10, %15, %16 : vector<2x16x4xf32>
    %c0_18 = arith.constant 0 : index
    %18 = arith.index_cast %1 : i32 to index
    %c0_19 = arith.constant 0 : index
    %c0_20 = arith.constant 0 : index
    %19 = vector.load %arg2[%c0_18, %18, %c0_19, %c0_20] : memref<1x16x16x4xf32, #tpu.memory_space<vmem>>, vector<1x8x16x4xf32>
    %20 = vector.shape_cast %19 : vector<1x8x16x4xf32> to vector<8x16x4xf32>
    %c1_i32 = arith.constant 1 : i32
    %21 = arith.cmpi slt, %arg1, %c1_i32 : i32
    %c8_i32_21 = arith.constant 8 : i32
    %22 = arith.addi %1, %c8_i32_21 : i32
    %c14_i32 = arith.constant 14 : i32
    %23 = arith.minsi %22, %c14_i32 : i32
    %c0_22 = arith.constant 0 : index
    %24 = arith.index_cast %23 : i32 to index
    %c0_23 = arith.constant 0 : index
    %c0_24 = arith.constant 0 : index
    %25 = vector.load %arg2[%c0_22, %24, %c0_23, %c0_24] : memref<1x16x16x4xf32, #tpu.memory_space<vmem>>, vector<1x2x16x4xf32>
    %26 = vector.shape_cast %25 : vector<1x2x16x4xf32> to vector<2x16x4xf32>
    %cst_25 = arith.constant 0.000000e+00 : f32
    %27 = vector.broadcast %cst_25 : f32 to vector<2x16x4xf32>
    %28 = arith.select %21, %26, %27 : vector<2x16x4xf32>
    %29 = arith.truncf %17 : vector<2x16x4xf32> to vector<2x16x4xbf16>
    %c0_26 = arith.constant 0 : index
    %c1 = arith.constant 1 : index
    %c0_27 = arith.constant 0 : index
    %30 = vector.load %arg8[%c0_26, %c1, %c0_27] : memref<12x18x4xbf16, #tpu.memory_space<vmem>>, vector<2x16x4xbf16>
    tpu.vector_store %arg8[%c0_26, %c1, %c0_27], %29 {strides = array<i32>} : memref<12x18x4xbf16, #tpu.memory_space<vmem>>, vector<2x16x4xbf16>,
    %31 = arith.truncf %20 : vector<8x16x4xf32> to vector<8x16x4xbf16>
    %c2 = arith.constant 2 : index
    %c1_28 = arith.constant 1 : index
    %c0_29 = arith.constant 0 : index
    %32 = vector.load %arg8[%c2, %c1_28, %c0_29] : memref<12x18x4xbf16, #tpu.memory_space<vmem>>, vector<8x16x4xbf16>
    tpu.vector_store %arg8[%c2, %c1_28, %c0_29], %31 {strides = array<i32>} : memref<12x18x4xbf16, #tpu.memory_space<vmem>>, vector<8x16x4xbf16>,
    %33 = arith.truncf %28 : vector<2x16x4xf32> to vector<2x16x4xbf16>
    %c10 = arith.constant 10 : index
    %c1_30 = arith.constant 1 : index
    %c0_31 = arith.constant 0 : index
    %34 = vector.load %arg8[%c10, %c1_30, %c0_31] : memref<12x18x4xbf16, #tpu.memory_space<vmem>>, vector<2x16x4xbf16>
    tpu.vector_store %arg8[%c10, %c1_30, %c0_31], %33 {strides = array<i32>} : memref<12x18x4xbf16, #tpu.memory_space<vmem>>, vector<2x16x4xbf16>,
    %c0_32 = arith.constant 0 : index
    %c0_33 = arith.constant 0 : index
    %c0_34 = arith.constant 0 : index
    %35 = vector.load %arg8[%c0_32, %c0_33, %c0_34] : memref<12x18x4xbf16, #tpu.memory_space<vmem>>, vector<12x18x4xbf16>
    %c0_35 = arith.constant 0 : index
    %c0_36 = arith.constant 0 : index
    %36 = vector.load %arg3[%c0_35, %c0_36] : memref<36x4xbf16, #tpu.memory_space<vmem>>, vector<36x4xbf16>
    %37 = vector.extract_strided_slice %35 {offsets = [0, 0, 0], sizes = [10, 16, 4], strides = [1, 1, 1]} : vector<12x18x4xbf16> to vector<10x16x4xbf16>
    %38 = vector.extract_strided_slice %36 {offsets = [0, 0], sizes = [4, 4], strides = [1, 1]} : vector<36x4xbf16> to vector<4x4xbf16>
    %39 = vector.shape_cast %37 : vector<10x16x4xbf16> to vector<160x4xbf16>
    %cst_37 = arith.constant dense<0.000000e+00> : vector<160x4xf32>
    %40 = tpu.matmul %39, %38, %cst_37 {dimension_numbers = #tpu.dot_dimension_numbers<[1], [0], [0], [1], [0, 0, 1, 1], [], []>} : vector<160x4xbf16>, vector<4x4xbf16>, vector<160x4xf32> -> vector<160x4xf32>
    %41 = vector.shape_cast %40 : vector<160x4xf32> to vector<10x16x4xf32>
    %42 = vector.extract_strided_slice %35 {offsets = [0, 1, 0], sizes = [10, 16, 4], strides = [1, 1, 1]} : vector<12x18x4xbf16> to vector<10x16x4xbf16>
    %43 = vector.extract_strided_slice %36 {offsets = [4, 0], sizes = [4, 4], strides = [1, 1]} : vector<36x4xbf16> to vector<4x4xbf16>
    %44 = vector.shape_cast %42 : vector<10x16x4xbf16> to vector<160x4xbf16>
    %cst_38 = arith.constant dense<0.000000e+00> : vector<160x4xf32>
    %45 = tpu.matmul %44, %43, %cst_38 {dimension_numbers = #tpu.dot_dimension_numbers<[1], [0], [0], [1], [0, 0, 1, 1], [], []>} : vector<160x4xbf16>, vector<4x4xbf16>, vector<160x4xf32> -> vector<160x4xf32>
    %46 = vector.shape_cast %45 : vector<160x4xf32> to vector<10x16x4xf32>
    %47 = arith.addf %41, %46 : vector<10x16x4xf32>
    %48 = vector.extract_strided_slice %35 {offsets = [0, 2, 0], sizes = [10, 16, 4], strides = [1, 1, 1]} : vector<12x18x4xbf16> to vector<10x16x4xbf16>
    %49 = vector.extract_strided_slice %36 {offsets = [8, 0], sizes = [4, 4], strides = [1, 1]} : vector<36x4xbf16> to vector<4x4xbf16>
    %50 = vector.shape_cast %48 : vector<10x16x4xbf16> to vector<160x4xbf16>
    %cst_39 = arith.constant dense<0.000000e+00> : vector<160x4xf32>
    %51 = tpu.matmul %50, %49, %cst_39 {dimension_numbers = #tpu.dot_dimension_numbers<[1], [0], [0], [1], [0, 0, 1, 1], [], []>} : vector<160x4xbf16>, vector<4x4xbf16>, vector<160x4xf32> -> vector<160x4xf32>
    %52 = vector.shape_cast %51 : vector<160x4xf32> to vector<10x16x4xf32>
    %53 = arith.addf %47, %52 : vector<10x16x4xf32>
    %54 = vector.extract_strided_slice %35 {offsets = [1, 0, 0], sizes = [10, 16, 4], strides = [1, 1, 1]} : vector<12x18x4xbf16> to vector<10x16x4xbf16>
    %55 = vector.extract_strided_slice %36 {offsets = [12, 0], sizes = [4, 4], strides = [1, 1]} : vector<36x4xbf16> to vector<4x4xbf16>
    %56 = vector.shape_cast %54 : vector<10x16x4xbf16> to vector<160x4xbf16>
    %cst_40 = arith.constant dense<0.000000e+00> : vector<160x4xf32>
    %57 = tpu.matmul %56, %55, %cst_40 {dimension_numbers = #tpu.dot_dimension_numbers<[1], [0], [0], [1], [0, 0, 1, 1], [], []>} : vector<160x4xbf16>, vector<4x4xbf16>, vector<160x4xf32> -> vector<160x4xf32>
    %58 = vector.shape_cast %57 : vector<160x4xf32> to vector<10x16x4xf32>
    %59 = arith.addf %53, %58 : vector<10x16x4xf32>
    %60 = vector.extract_strided_slice %35 {offsets = [1, 1, 0], sizes = [10, 16, 4], strides = [1, 1, 1]} : vector<12x18x4xbf16> to vector<10x16x4xbf16>
    %61 = vector.extract_strided_slice %36 {offsets = [16, 0], sizes = [4, 4], strides = [1, 1]} : vector<36x4xbf16> to vector<4x4xbf16>
    %62 = vector.shape_cast %60 : vector<10x16x4xbf16> to vector<160x4xbf16>
    %cst_41 = arith.constant dense<0.000000e+00> : vector<160x4xf32>
    %63 = tpu.matmul %62, %61, %cst_41 {dimension_numbers = #tpu.dot_dimension_numbers<[1], [0], [0], [1], [0, 0, 1, 1], [], []>} : vector<160x4xbf16>, vector<4x4xbf16>, vector<160x4xf32> -> vector<160x4xf32>
    %64 = vector.shape_cast %63 : vector<160x4xf32> to vector<10x16x4xf32>
    %65 = arith.addf %59, %64 : vector<10x16x4xf32>
    %66 = vector.extract_strided_slice %35 {offsets = [1, 2, 0], sizes = [10, 16, 4], strides = [1, 1, 1]} : vector<12x18x4xbf16> to vector<10x16x4xbf16>
    %67 = vector.extract_strided_slice %36 {offsets = [20, 0], sizes = [4, 4], strides = [1, 1]} : vector<36x4xbf16> to vector<4x4xbf16>
    %68 = vector.shape_cast %66 : vector<10x16x4xbf16> to vector<160x4xbf16>
    %cst_42 = arith.constant dense<0.000000e+00> : vector<160x4xf32>
    %69 = tpu.matmul %68, %67, %cst_42 {dimension_numbers = #tpu.dot_dimension_numbers<[1], [0], [0], [1], [0, 0, 1, 1], [], []>} : vector<160x4xbf16>, vector<4x4xbf16>, vector<160x4xf32> -> vector<160x4xf32>
    %70 = vector.shape_cast %69 : vector<160x4xf32> to vector<10x16x4xf32>
    %71 = arith.addf %65, %70 : vector<10x16x4xf32>
    %72 = vector.extract_strided_slice %35 {offsets = [2, 0, 0], sizes = [10, 16, 4], strides = [1, 1, 1]} : vector<12x18x4xbf16> to vector<10x16x4xbf16>
    %73 = vector.extract_strided_slice %36 {offsets = [24, 0], sizes = [4, 4], strides = [1, 1]} : vector<36x4xbf16> to vector<4x4xbf16>
    %74 = vector.shape_cast %72 : vector<10x16x4xbf16> to vector<160x4xbf16>
    %cst_43 = arith.constant dense<0.000000e+00> : vector<160x4xf32>
    %75 = tpu.matmul %74, %73, %cst_43 {dimension_numbers = #tpu.dot_dimension_numbers<[1], [0], [0], [1], [0, 0, 1, 1], [], []>} : vector<160x4xbf16>, vector<4x4xbf16>, vector<160x4xf32> -> vector<160x4xf32>
    %76 = vector.shape_cast %75 : vector<160x4xf32> to vector<10x16x4xf32>
    %77 = arith.addf %71, %76 : vector<10x16x4xf32>
    %78 = vector.extract_strided_slice %35 {offsets = [2, 1, 0], sizes = [10, 16, 4], strides = [1, 1, 1]} : vector<12x18x4xbf16> to vector<10x16x4xbf16>
    %79 = vector.extract_strided_slice %36 {offsets = [28, 0], sizes = [4, 4], strides = [1, 1]} : vector<36x4xbf16> to vector<4x4xbf16>
    %80 = vector.shape_cast %78 : vector<10x16x4xbf16> to vector<160x4xbf16>
    %cst_44 = arith.constant dense<0.000000e+00> : vector<160x4xf32>
    %81 = tpu.matmul %80, %79, %cst_44 {dimension_numbers = #tpu.dot_dimension_numbers<[1], [0], [0], [1], [0, 0, 1, 1], [], []>} : vector<160x4xbf16>, vector<4x4xbf16>, vector<160x4xf32> -> vector<160x4xf32>
    %82 = vector.shape_cast %81 : vector<160x4xf32> to vector<10x16x4xf32>
    %83 = arith.addf %77, %82 : vector<10x16x4xf32>
    %84 = vector.extract_strided_slice %35 {offsets = [2, 2, 0], sizes = [10, 16, 4], strides = [1, 1, 1]} : vector<12x18x4xbf16> to vector<10x16x4xbf16>
    %85 = vector.extract_strided_slice %36 {offsets = [32, 0], sizes = [4, 4], strides = [1, 1]} : vector<36x4xbf16> to vector<4x4xbf16>
    %86 = vector.shape_cast %84 : vector<10x16x4xbf16> to vector<160x4xbf16>
    %cst_45 = arith.constant dense<0.000000e+00> : vector<160x4xf32>
    %87 = tpu.matmul %86, %85, %cst_45 {dimension_numbers = #tpu.dot_dimension_numbers<[1], [0], [0], [1], [0, 0, 1, 1], [], []>} : vector<160x4xbf16>, vector<4x4xbf16>, vector<160x4xf32> -> vector<160x4xf32>
    %88 = vector.shape_cast %87 : vector<160x4xf32> to vector<10x16x4xf32>
    %89 = arith.addf %83, %88 : vector<10x16x4xf32>
    %c0_46 = arith.constant 0 : index
    %c0_47 = arith.constant 0 : index
    %90 = vector.load %arg4[%c0_46, %c0_47] : memref<1x4xf32, #tpu.memory_space<vmem>>, vector<1x4xf32>
    %91 = vector.shape_cast %90 : vector<1x4xf32> to vector<1x1x4xf32>
    %92 = vector.broadcast %91 : vector<1x1x4xf32> to vector<10x16x4xf32>
    %93 = arith.addf %89, %92 : vector<10x16x4xf32>
    %cst_48 = arith.constant 0.000000e+00 : f32
    %94 = vector.broadcast %cst_48 : f32 to vector<10x16x4xf32>
    %95 = arith.maximumf %93, %94 : vector<10x16x4xf32>
    %c0_i32_49 = arith.constant 0 : i32
    %96 = arith.cmpi sgt, %arg1, %c0_i32_49 : i32
    %97 = vector.extract_strided_slice %95 {offsets = [0, 0, 0], sizes = [1, 16, 4], strides = [1, 1, 1]} : vector<10x16x4xf32> to vector<1x16x4xf32>
    %cst_50 = arith.constant 0.000000e+00 : f32
    %98 = vector.broadcast %cst_50 : f32 to vector<1x16x4xf32>
    %99 = arith.select %96, %97, %98 : vector<1x16x4xf32>
    %100 = arith.truncf %99 : vector<1x16x4xf32> to vector<1x16x4xbf16>
    %c0_51 = arith.constant 0 : index
    %c1_52 = arith.constant 1 : index
    %c0_53 = arith.constant 0 : index
    %101 = vector.load %arg9[%c0_51, %c1_52, %c0_53] : memref<10x18x4xbf16, #tpu.memory_space<vmem>>, vector<1x16x4xbf16>
    tpu.vector_store %arg9[%c0_51, %c1_52, %c0_53], %100 {strides = array<i32>} : memref<10x18x4xbf16, #tpu.memory_space<vmem>>, vector<1x16x4xbf16>,
    %102 = vector.extract_strided_slice %95 {offsets = [1, 0, 0], sizes = [8, 16, 4], strides = [1, 1, 1]} : vector<10x16x4xf32> to vector<8x16x4xf32>
    %103 = arith.truncf %102 : vector<8x16x4xf32> to vector<8x16x4xbf16>
    %c1_54 = arith.constant 1 : index
    %c1_55 = arith.constant 1 : index
    %c0_56 = arith.constant 0 : index
    %104 = vector.load %arg9[%c1_54, %c1_55, %c0_56] : memref<10x18x4xbf16, #tpu.memory_space<vmem>>, vector<8x16x4xbf16>
    tpu.vector_store %arg9[%c1_54, %c1_55, %c0_56], %103 {strides = array<i32>} : memref<10x18x4xbf16, #tpu.memory_space<vmem>>, vector<8x16x4xbf16>,
    %c1_i32_57 = arith.constant 1 : i32
    %105 = arith.cmpi slt, %arg1, %c1_i32_57 : i32
    %106 = vector.extract_strided_slice %95 {offsets = [9, 0, 0], sizes = [1, 16, 4], strides = [1, 1, 1]} : vector<10x16x4xf32> to vector<1x16x4xf32>
    %cst_58 = arith.constant 0.000000e+00 : f32
    %107 = vector.broadcast %cst_58 : f32 to vector<1x16x4xf32>
    %108 = arith.select %105, %106, %107 : vector<1x16x4xf32>
    %109 = arith.truncf %108 : vector<1x16x4xf32> to vector<1x16x4xbf16>
    %c9 = arith.constant 9 : index
    %c1_59 = arith.constant 1 : index
    %c0_60 = arith.constant 0 : index
    %110 = vector.load %arg9[%c9, %c1_59, %c0_60] : memref<10x18x4xbf16, #tpu.memory_space<vmem>>, vector<1x16x4xbf16>
    tpu.vector_store %arg9[%c9, %c1_59, %c0_60], %109 {strides = array<i32>} : memref<10x18x4xbf16, #tpu.memory_space<vmem>>, vector<1x16x4xbf16>,
    %c0_61 = arith.constant 0 : index
    %c0_62 = arith.constant 0 : index
    %c0_63 = arith.constant 0 : index
    %111 = vector.load %arg9[%c0_61, %c0_62, %c0_63] : memref<10x18x4xbf16, #tpu.memory_space<vmem>>, vector<10x18x4xbf16>
    %c0_64 = arith.constant 0 : index
    %c0_65 = arith.constant 0 : index
    %112 = vector.load %arg5[%c0_64, %c0_65] : memref<36x4xbf16, #tpu.memory_space<vmem>>, vector<36x4xbf16>
    %113 = vector.extract_strided_slice %111 {offsets = [0, 0, 0], sizes = [8, 16, 4], strides = [1, 1, 1]} : vector<10x18x4xbf16> to vector<8x16x4xbf16>
    %114 = vector.extract_strided_slice %112 {offsets = [0, 0], sizes = [4, 4], strides = [1, 1]} : vector<36x4xbf16> to vector<4x4xbf16>
    %115 = vector.shape_cast %113 : vector<8x16x4xbf16> to vector<128x4xbf16>
    %cst_66 = arith.constant dense<0.000000e+00> : vector<128x4xf32>
    %116 = tpu.matmul %115, %114, %cst_66 {dimension_numbers = #tpu.dot_dimension_numbers<[1], [0], [0], [1], [0, 0, 1, 1], [], []>} : vector<128x4xbf16>, vector<4x4xbf16>, vector<128x4xf32> -> vector<128x4xf32>
    %117 = vector.shape_cast %116 : vector<128x4xf32> to vector<8x16x4xf32>
    %118 = vector.extract_strided_slice %111 {offsets = [0, 1, 0], sizes = [8, 16, 4], strides = [1, 1, 1]} : vector<10x18x4xbf16> to vector<8x16x4xbf16>
    %119 = vector.extract_strided_slice %112 {offsets = [4, 0], sizes = [4, 4], strides = [1, 1]} : vector<36x4xbf16> to vector<4x4xbf16>
    %120 = vector.shape_cast %118 : vector<8x16x4xbf16> to vector<128x4xbf16>
    %cst_67 = arith.constant dense<0.000000e+00> : vector<128x4xf32>
    %121 = tpu.matmul %120, %119, %cst_67 {dimension_numbers = #tpu.dot_dimension_numbers<[1], [0], [0], [1], [0, 0, 1, 1], [], []>} : vector<128x4xbf16>, vector<4x4xbf16>, vector<128x4xf32> -> vector<128x4xf32>
    %122 = vector.shape_cast %121 : vector<128x4xf32> to vector<8x16x4xf32>
    %123 = arith.addf %117, %122 : vector<8x16x4xf32>
    %124 = vector.extract_strided_slice %111 {offsets = [0, 2, 0], sizes = [8, 16, 4], strides = [1, 1, 1]} : vector<10x18x4xbf16> to vector<8x16x4xbf16>
    %125 = vector.extract_strided_slice %112 {offsets = [8, 0], sizes = [4, 4], strides = [1, 1]} : vector<36x4xbf16> to vector<4x4xbf16>
    %126 = vector.shape_cast %124 : vector<8x16x4xbf16> to vector<128x4xbf16>
    %cst_68 = arith.constant dense<0.000000e+00> : vector<128x4xf32>
    %127 = tpu.matmul %126, %125, %cst_68 {dimension_numbers = #tpu.dot_dimension_numbers<[1], [0], [0], [1], [0, 0, 1, 1], [], []>} : vector<128x4xbf16>, vector<4x4xbf16>, vector<128x4xf32> -> vector<128x4xf32>
    %128 = vector.shape_cast %127 : vector<128x4xf32> to vector<8x16x4xf32>
    %129 = arith.addf %123, %128 : vector<8x16x4xf32>
    %130 = vector.extract_strided_slice %111 {offsets = [1, 0, 0], sizes = [8, 16, 4], strides = [1, 1, 1]} : vector<10x18x4xbf16> to vector<8x16x4xbf16>
    %131 = vector.extract_strided_slice %112 {offsets = [12, 0], sizes = [4, 4], strides = [1, 1]} : vector<36x4xbf16> to vector<4x4xbf16>
    %132 = vector.shape_cast %130 : vector<8x16x4xbf16> to vector<128x4xbf16>
    %cst_69 = arith.constant dense<0.000000e+00> : vector<128x4xf32>
    %133 = tpu.matmul %132, %131, %cst_69 {dimension_numbers = #tpu.dot_dimension_numbers<[1], [0], [0], [1], [0, 0, 1, 1], [], []>} : vector<128x4xbf16>, vector<4x4xbf16>, vector<128x4xf32> -> vector<128x4xf32>
    %134 = vector.shape_cast %133 : vector<128x4xf32> to vector<8x16x4xf32>
    %135 = arith.addf %129, %134 : vector<8x16x4xf32>
    %136 = vector.extract_strided_slice %111 {offsets = [1, 1, 0], sizes = [8, 16, 4], strides = [1, 1, 1]} : vector<10x18x4xbf16> to vector<8x16x4xbf16>
    %137 = vector.extract_strided_slice %112 {offsets = [16, 0], sizes = [4, 4], strides = [1, 1]} : vector<36x4xbf16> to vector<4x4xbf16>
    %138 = vector.shape_cast %136 : vector<8x16x4xbf16> to vector<128x4xbf16>
    %cst_70 = arith.constant dense<0.000000e+00> : vector<128x4xf32>
    %139 = tpu.matmul %138, %137, %cst_70 {dimension_numbers = #tpu.dot_dimension_numbers<[1], [0], [0], [1], [0, 0, 1, 1], [], []>} : vector<128x4xbf16>, vector<4x4xbf16>, vector<128x4xf32> -> vector<128x4xf32>
    %140 = vector.shape_cast %139 : vector<128x4xf32> to vector<8x16x4xf32>
    %141 = arith.addf %135, %140 : vector<8x16x4xf32>
    %142 = vector.extract_strided_slice %111 {offsets = [1, 2, 0], sizes = [8, 16, 4], strides = [1, 1, 1]} : vector<10x18x4xbf16> to vector<8x16x4xbf16>
    %143 = vector.extract_strided_slice %112 {offsets = [20, 0], sizes = [4, 4], strides = [1, 1]} : vector<36x4xbf16> to vector<4x4xbf16>
    %144 = vector.shape_cast %142 : vector<8x16x4xbf16> to vector<128x4xbf16>
    %cst_71 = arith.constant dense<0.000000e+00> : vector<128x4xf32>
    %145 = tpu.matmul %144, %143, %cst_71 {dimension_numbers = #tpu.dot_dimension_numbers<[1], [0], [0], [1], [0, 0, 1, 1], [], []>} : vector<128x4xbf16>, vector<4x4xbf16>, vector<128x4xf32> -> vector<128x4xf32>
    %146 = vector.shape_cast %145 : vector<128x4xf32> to vector<8x16x4xf32>
    %147 = arith.addf %141, %146 : vector<8x16x4xf32>
    %148 = vector.extract_strided_slice %111 {offsets = [2, 0, 0], sizes = [8, 16, 4], strides = [1, 1, 1]} : vector<10x18x4xbf16> to vector<8x16x4xbf16>
    %149 = vector.extract_strided_slice %112 {offsets = [24, 0], sizes = [4, 4], strides = [1, 1]} : vector<36x4xbf16> to vector<4x4xbf16>
    %150 = vector.shape_cast %148 : vector<8x16x4xbf16> to vector<128x4xbf16>
    %cst_72 = arith.constant dense<0.000000e+00> : vector<128x4xf32>
    %151 = tpu.matmul %150, %149, %cst_72 {dimension_numbers = #tpu.dot_dimension_numbers<[1], [0], [0], [1], [0, 0, 1, 1], [], []>} : vector<128x4xbf16>, vector<4x4xbf16>, vector<128x4xf32> -> vector<128x4xf32>
    %152 = vector.shape_cast %151 : vector<128x4xf32> to vector<8x16x4xf32>
    %153 = arith.addf %147, %152 : vector<8x16x4xf32>
    %154 = vector.extract_strided_slice %111 {offsets = [2, 1, 0], sizes = [8, 16, 4], strides = [1, 1, 1]} : vector<10x18x4xbf16> to vector<8x16x4xbf16>
    %155 = vector.extract_strided_slice %112 {offsets = [28, 0], sizes = [4, 4], strides = [1, 1]} : vector<36x4xbf16> to vector<4x4xbf16>
    %156 = vector.shape_cast %154 : vector<8x16x4xbf16> to vector<128x4xbf16>
    %cst_73 = arith.constant dense<0.000000e+00> : vector<128x4xf32>
    %157 = tpu.matmul %156, %155, %cst_73 {dimension_numbers = #tpu.dot_dimension_numbers<[1], [0], [0], [1], [0, 0, 1, 1], [], []>} : vector<128x4xbf16>, vector<4x4xbf16>, vector<128x4xf32> -> vector<128x4xf32>
    %158 = vector.shape_cast %157 : vector<128x4xf32> to vector<8x16x4xf32>
    %159 = arith.addf %153, %158 : vector<8x16x4xf32>
    %160 = vector.extract_strided_slice %111 {offsets = [2, 2, 0], sizes = [8, 16, 4], strides = [1, 1, 1]} : vector<10x18x4xbf16> to vector<8x16x4xbf16>
    %161 = vector.extract_strided_slice %112 {offsets = [32, 0], sizes = [4, 4], strides = [1, 1]} : vector<36x4xbf16> to vector<4x4xbf16>
    %162 = vector.shape_cast %160 : vector<8x16x4xbf16> to vector<128x4xbf16>
    %cst_74 = arith.constant dense<0.000000e+00> : vector<128x4xf32>
    %163 = tpu.matmul %162, %161, %cst_74 {dimension_numbers = #tpu.dot_dimension_numbers<[1], [0], [0], [1], [0, 0, 1, 1], [], []>} : vector<128x4xbf16>, vector<4x4xbf16>, vector<128x4xf32> -> vector<128x4xf32>
    %164 = vector.shape_cast %163 : vector<128x4xf32> to vector<8x16x4xf32>
    %165 = arith.addf %159, %164 : vector<8x16x4xf32>
    %c0_75 = arith.constant 0 : index
    %c0_76 = arith.constant 0 : index
    %166 = vector.load %arg6[%c0_75, %c0_76] : memref<1x4xf32, #tpu.memory_space<vmem>>, vector<1x4xf32>
    %167 = vector.shape_cast %166 : vector<1x4xf32> to vector<1x1x4xf32>
    %168 = vector.broadcast %167 : vector<1x1x4xf32> to vector<8x16x4xf32>
    %169 = arith.addf %165, %168 : vector<8x16x4xf32>
    %170 = arith.addf %20, %169 : vector<8x16x4xf32>
    %cst_77 = arith.constant 0.000000e+00 : f32
    %171 = vector.broadcast %cst_77 : f32 to vector<8x16x4xf32>
    %172 = arith.maximumf %170, %171 : vector<8x16x4xf32>
    %173 = vector.shape_cast %172 : vector<8x16x4xf32> to vector<1x8x16x4xf32>
    %c0_78 = arith.constant 0 : index
    %c0_79 = arith.constant 0 : index
    %c0_80 = arith.constant 0 : index
    %c0_81 = arith.constant 0 : index
    %174 = vector.load %arg7[%c0_78, %c0_79, %c0_80, %c0_81] : memref<1x8x16x4xf32, #tpu.memory_space<vmem>>, vector<1x8x16x4xf32>
    tpu.vector_store %arg7[%c0_78, %c0_79, %c0_80, %c0_81], %173 {strides = array<i32>} : memref<1x8x16x4xf32, #tpu.memory_space<vmem>>, vector<1x8x16x4xf32>,
    return
  }
  func.func @transform_0(%arg0: i32, %arg1: i32) -> (i32, i32, i32, i32) {
    %c0_i32 = arith.constant 0 : i32
    %c0_i32_0 = arith.constant 0 : i32
    %c0_i32_1 = arith.constant 0 : i32
    %c0_i32_2 = arith.constant 0 : i32
    return %arg0, %c0_i32, %c0_i32_0, %c0_i32_1 : i32, i32, i32, i32
  }
  func.func @transform_1(%arg0: i32, %arg1: i32) -> (i32, i32) {
    %c0_i32 = arith.constant 0 : i32
    %c0_i32_0 = arith.constant 0 : i32
    %c0_i32_1 = arith.constant 0 : i32
    return %c0_i32, %c0_i32_0 : i32, i32
  }
  func.func @transform_2(%arg0: i32, %arg1: i32) -> (i32, i32) {
    %c0_i32 = arith.constant 0 : i32
    %c0_i32_0 = arith.constant 0 : i32
    %c0_i32_1 = arith.constant 0 : i32
    return %c0_i32, %c0_i32_0 : i32, i32
  }
  func.func @transform_3(%arg0: i32, %arg1: i32) -> (i32, i32) {
    %c0_i32 = arith.constant 0 : i32
    %c0_i32_0 = arith.constant 0 : i32
    %c0_i32_1 = arith.constant 0 : i32
    return %c0_i32, %c0_i32_0 : i32, i32
  }
  func.func @transform_4(%arg0: i32, %arg1: i32) -> (i32, i32) {
    %c0_i32 = arith.constant 0 : i32
    %c0_i32_0 = arith.constant 0 : i32
    %c0_i32_1 = arith.constant 0 : i32
    return %c0_i32, %c0_i32_0 : i32, i32
  }
  func.func @transform_5(%arg0: i32, %arg1: i32) -> (i32, i32, i32, i32) {
    %c0_i32 = arith.constant 0 : i32
    %c0_i32_0 = arith.constant 0 : i32
    %c0_i32_1 = arith.constant 0 : i32
    return %arg0, %arg1, %c0_i32, %c0_i32_0 : i32, i32, i32, i32
  }
}

</mosaic_0001>

<bundles_post_ra>
// kernel: tpu_custom_call.1
= control target key start
LH: loop header
LB: loop body
LE: loop exit
PB: predicated region body
PF: predicated region fallthrough
CT: control target
= control target key end

     0   :  { %s5992_s18 = smov 0   ;;  %s5994_s19 = smov 0   ;;  %s8295_s0 = inlined_call_operand.vmem [shape: f32[2,16,16,4], index: 0, kind: input, shape index: {}]   ;;  %s8296_s1 = inlined_call_operand.vmem [shape: bf16[36,4], index: 1, kind: input, shape index: {}]   ;;  %s8297_s2 = inlined_call_operand.vmem [shape: f32[1,4], index: 2, kind: input, shape index: {}]   ;;  %s8298_s3 = inlined_call_operand.vmem [shape: bf16[36,4], index: 3, kind: input, shape index: {}]   ;;  %s8299_s4 = inlined_call_operand.vmem [shape: f32[1,4], index: 4, kind: input, shape index: {}]   ;;  %s8300_s5 = inlined_call_operand.vmem [shape: f32[2,16,16,4], index: 5, kind: output, shape index: {}]  }
   0x1   :  { %s5996_s20 = smov 0   ;;  %s5998_s21 = smov 0  }
   0x2   :  { %s6000_s22 = smov 0  }
   0x3 LB: > { %s24_s23 = sadd.s32 1, %s5952_s20  ;;  %s27_s24 = sadd.s32 1, %s5956_s21  ;;  %s5960_s22 = sphi %s6000_s22, %s15_s22   ;;  %s5956_s21 = sphi %s5998_s21, %s8499_s21   ;;  %s5952_s20 = sphi %s5996_s20, %s8498_s20   ;;  %s5948_s19 = sphi %s5994_s19, %s8497_s19   ;;  %s5944_s18 = sphi %s5992_s18, %s8496_s18  }
   0x4   : > { %p25_p0 = scmp.ge.s32.totalorder %s24_s23, 2  ;;  %p4890_p1 = scmp.ge.s32.totalorder %s5960_s22, 1 }
   0x5   : > { %p201_p2 = scmp.lt.s32.totalorder %s5960_s22, 5 }
   0x6   : > { %s8501_s23 = smov (%p25_p0, %s24_s23), 0  ;;  %s8503_s24 = smov (!%p25_p0, %s27_s24), %s5956_s21 }
   0x7   : > { %p202_p3 = pnand %p4890_p1, %p201_p2  ;;  %p29_p4 = scmp.ge.s32.totalorder %s8503_s24, 2 }
   0x9   : > { %s8505_s24 = smov (%p29_p4, %s8503_s24), 0  ;;  %205 = sbr.rel (%p202_p3) target bundleno = 862 (0x35e), region = 40 }
   0xe   : > { %v880_v0 = vld [vmem:[%s8296_s1] sm:$0xf]  ;;  %vm966_vm0 = vcmask 1041408   ;;  %p234_p5 = scmp.lt.s32.totalorder %s5948_s19, 1  ;;  %s6028_s27 = sshll.u32 %s5944_s18, 3  ;;  %vm252_vm1 = vcmask 24576  }
   0xf   : > { %5794 = vmatprep.subr.msk.bf16.mxu0 %vm966_vm0, %v880_v0  ;;  %v968_v1 = vsel %vm966_vm0, %v880_v0, 0  ;;  %p242_p6 = scmp.lt.s32.totalorder %s6028_s27, 15  ;;  %vm253_vm2 = vsmask.f32 256  ;;  %v255_v2 = vld [vmem:[#allocation2] sm:$0x1]  ;;  %v4956_v3 = vcombine.low %v880_v0, %v880_v0 }
  0x10   : > { %5435 = vmatpush3.bf16.msra.mxu0 %v968_v1  ;;  %s8507_s19 = smov (!%p234_p5, %s5948_s19), 1  ;;  %vm6037_vm3 = vmand %vm252_vm1, %vm253_vm2  ;;  %v8331_v4 = vmov 0  ;;  %vm291_vm4 = vsmask.f32 7938  ;;  %v6047_v6 = vld [vmem:[%s8296_s1 + $0x4] sm:$0xf] }
  0x11   : > { %v8332_v4 = vsel %vm6037_vm3, 4294967295, %v8331_v4  ;;  %s243_s28 = scalar_select %p242_p6, %s6028_s27, 15  ;;  %v256_v5 = vsel %vm6037_vm3, 0, %v255_v2  ;;  %v1359_v7 = vrot.slane %v4956_v3, 2  ;;  %5796 = vmatprep.subr.msk.bf16.mxu0 %vm966_vm0, %v6047_v6  ;;  %v4998_v8 = vcombine.low %v6047_v6, %v6047_v6  ;;  %v258_v9 = vld [vmem:[#allocation2 + $0xc] sm:$0x1]  ;;  %vm6057_vm5 = vmand %vm252_vm1, %vm291_vm4 }
  0x12   : > { %8333 = vst [vmem:[#allocation4_spill] sm:$0xff] %v8332_v4  ;;  %s4895_s6 = sshll.u32 %s8507_s19, 5  ;;  %257 = vst [vmem:[#allocation2] sm:$0x1] %v256_v5  ;;  %s5208_s7 = sshll.u32 %s8507_s19, 8  ;;  %v259_v11 = vsel %vm6037_vm3, 0, %v258_v9 }
  0x13   : > { %s4894_s8 = sshll.u32 %s243_s28, 1  ;;  %5795 = vmatprep.subr.msk.bf16.mxu1 %vm966_vm0, %v1359_v7  ;;  %v1391_v12 = vsel %vm966_vm0, %v1359_v7, 0  ;;  %v261_v13 = vld [vmem:[#allocation2 + $0x18] sm:$0x1]  ;;  %p389_p7 = scmp.gt.s32.totalorder %s5944_s18, 0  ;;  %v6068_v14 = vrot.slane %v4998_v8, 2 }
  0x14   : > { %s6065_s9 = sadd.s32 %s4895_s6, %s4894_s8  ;;  %260 = vst [vmem:[#allocation2 + $0xc] sm:$0x1] %v259_v11  ;;  %5457 = vmatpush3.bf16.msra.mxu1 %v1391_v12  ;;  %v262_v15 = vsel %vm6037_vm3, 0, %v261_v13  ;;  %v264_v16 = vld [vmem:[#allocation2 + $0x24] sm:$0x1]  ;;  %s4898_s10 = sadd.s32 4294967294, %s6028_s27 }
  0x15   : > { %263 = vst [vmem:[#allocation2 + $0x18] sm:$0x1] %v262_v15  ;;  %v265_v17 = vsel %vm6037_vm3, 0, %v264_v16  ;;  %v293_v18 = vld [vmem:[#allocation2 + $0x8] sm:$0x1]  ;;  %s6078_s13 = scalar_lea.vmem %s8295_s0, %s5208_s7  ;;  %p391_p8 = scmp.gt.s32.totalorder %s4898_s10, 0  ;;  %5797 = vmatprep.subr.msk.bf16.mxu1 %vm966_vm0, %v6068_v14 }
  0x16   : > { %266 = vst [vmem:[#allocation2 + $0x24] sm:$0x1] %v265_v17  ;;  %v294_v19 = vsel %vm6057_vm5, 0, %v293_v18  ;;  %s6086_s14 = scalar_select %p389_p7, 1, 0  ;;  %vm495_vm7 = vcmask 27648  }
  0x17   : > { %295 = vst [vmem:[#allocation2 + $0x8] sm:$0x1] %v294_v19  ;;  %v296_v20 = vld [vmem:[#allocation2 + $0x14] sm:$0x1]  ;;  %v267_v21 = vld [vmem:[#allocation2 + $0x30] sm:$0x1]  ;;  %vm6132_vm8 = vmand %vm495_vm7, %vm291_vm4 }
  0x18   : > { %s8509_s10 = smov (!%p391_p8, %s4898_s10), 0  ;;  %v297_v22 = vsel %vm6057_vm5, 0, %v296_v20  ;;  %v268_v23 = vsel %vm6037_vm3, 0, %v267_v21  ;;  %v270_v24 = vld [vmem:[#allocation2 + $0x3c] sm:$0x1]  ;;  %s5209_s16 = sshll.u32 %s5944_s18, 7 }
  0x19   : > { %298 = vst [vmem:[#allocation2 + $0x14] sm:$0x1] %v297_v22  ;;  %269 = vst [vmem:[#allocation2 + $0x30] sm:$0x1] %v268_v23  ;;  %v271_v25 = vsel %vm6037_vm3, 0, %v270_v24  ;;  %s4899_s15 = sshll.u32 %s8509_s10, 4  ;;  %s6099_s19 = scalar_lea.vmem %s6078_s13, %s5209_s16 }
  0x1a   : > { %272 = vst [vmem:[#allocation2 + $0x3c] sm:$0x1] %v271_v25  ;;  %v299_v26 = vld [vmem:[#allocation2 + $0x20] sm:$0x1]  ;;  %s6096_s17 = scalar_lea.vmem %s6078_s13, %s4899_s15  ;;  %v409_v29 = vld [vmem:[%s6099_s19 + $0x8] sm:$0xff]  ;;  %v410_v32 = vld [vmem:[%s6099_s19 + $0x10] sm:$0xff] }
  0x1b   : > { %v300_v27 = vsel %vm6057_vm5, 0, %v299_v26  ;;  %s6105_s25 = scalar_select %p389_p7, 255, 0  ;;  %v408_v28 = vld [vmem:[%s6099_s19] sm:$0xff]  ;;  %vm453_vm6 = vsmask.f32 4368  ;;  %v5215_v31 = vpack.c.bf16 %v409_v29, %v409_v29  ;;  %v5216_v35 = vpack.c.bf16 %v410_v32, %v410_v32 }
  0x1c   : > { %301 = vst [vmem:[#allocation2 + $0x20] sm:$0x1] %v300_v27  ;;  %v5214_v30 = vpack.c.bf16 %v408_v28, %v408_v28  ;;  %v411_v33 = vld [vmem:[%s6099_s19 + $0x18] sm:$0xff]  ;;  %s425_s26 = sadd.s32 8, %s6028_s27  ;;  %v412_v37 = vld [vmem:[%s6099_s19 + $0x20] sm:$0xff]  ;;  %v8336_v61 = vmov 0  ;;  %vm6143_vm9 = vmor %vm253_vm2, %vm453_vm6 }
  0x1d   : > { %v5854_v34 = vld [vmem:[%s6096_s17] sm:%s6105_s25]  ;;  %v6114_v36 = vpack.c.bf16 %v411_v33, %v411_v33  ;;  %v5857_v38 = vld [vmem:[%s6096_s17 + $0x8] sm:%s6105_s25]  ;;  %p426_p9 = scmp.lt.s32.totalorder %s425_s26, 14  ;;  %v569_v42 = vshrl.u32 %v5215_v31, 16  ;;  %v572_v44 = vshll.u32 %v5215_v31, 16  ;;  %v578_v45 = vshrl.u32 %v5216_v35, 16 }
  0x1e   : > { %v5210_v39 = vpack.c.bf16 %v5854_v34, %v5854_v34  ;;  %v561_v40 = vshrl.u32 %v5214_v30, 16  ;;  %v564_v41 = vshll.u32 %v5214_v30, 16  ;;  %v5211_v43 = vpack.c.bf16 %v5857_v38, %v5857_v38  ;;  %v5862_v53 = vld [vmem:[%s6096_s17 + $0x10] sm:%s6105_s25]  ;;  %v497_v62 = vld [vmem:[#allocation2] sm:$0xf]  ;;  %v5865_v63 = vld [vmem:[%s6096_s17 + $0x18] sm:%s6105_s25] }
  0x1f   : > { %v581_v46 = vshll.u32 %v5216_v35, 16  ;;  %s8511_s26 = smov (!%p426_p9, %s425_s26), 14  ;;  %v6119_v50 = vrot.slane %v569_v42, 7  ;;  %v6123_v54 = vrot.slane %v578_v45, 7  ;;  %v6125_v55 = vpack.c.bf16 %v412_v37, %v412_v37  ;;  %v721_v11 = vld [vmem:[#allocation2 + $0x18] sm:$0xf] }
  0x20   : > { %v456_v47 = vshrl.u32 %v5210_v39, 16  ;;  %v459_v48 = vshll.u32 %v5210_v39, 16  ;;  %v563_v49 = vrot.slane %v561_v40, 7  ;;  %v464_v51 = vshrl.u32 %v5211_v43, 16  ;;  %s4901_s27 = sshll.u32 %s8511_s26, 4  ;;  %v413_v23 = vld [vmem:[%s6099_s19 + $0x28] sm:$0xff] }
  0x21   : > { %v467_v52 = vshll.u32 %v5211_v43, 16  ;;  %v5212_v57 = vpack.c.bf16 %v5862_v53, %v5862_v53  ;;  %s6128_s28 = scalar_lea.vmem %s6078_s13, %s4901_s27  ;;  %v8337_v61 = vsel %vm6132_vm8, 4294967295, %v8336_v61  ;;  %v574_v0 = vor.u32 %v572_v44, %v6119_v50  ;;  %v728_v17 = vld [vmem:[#allocation2 + $0x24] sm:$0xf]  ;;  %v502_v22 = vld [vmem:[#allocation2 + $0x8] sm:$0x1] }
  0x22   : > { %v458_v56 = vrot.slane %v456_v47, 7  ;;  %v566_v58 = vor.u32 %v564_v41, %v563_v49  ;;  %v567_v59 = vrot.slane %v563_v49, 4  ;;  %v466_v60 = vrot.slane %v464_v51, 7  ;;  %8338 = vst [vmem:[#allocation5_spill] sm:$0xff] %v8337_v61  ;;  %v505_v25 = vld [vmem:[#allocation2 + $0xc] sm:$0xf] }
  0x23   : > { %v576_v1 = vrot.slane %v6119_v50, 4  ;;  %v583_v2 = vor.u32 %v581_v46, %v6123_v54  ;;  %v8339_v3 = vmov 0  ;;  %v5213_v8 = vpack.c.bf16 %v5865_v63, %v5865_v63  ;;  %v509_v37 = vld [vmem:[#allocation2 + $0x14] sm:$0x1]  ;;  %v725_v45 = vld [vmem:[#allocation2 + $0x20] sm:$0x1] }
  0x24   : > { %v8340_v3 = vsel %vm6143_vm9, 4294967295, %v8339_v3  ;;  %v461_v5 = vor.u32 %v459_v48, %v458_v56  ;;  %v462_v7 = vrot.slane %v458_v56, 4  ;;  %v473_v9 = vshrl.u32 %v5212_v57, 16  ;;  %v415_v53 = vld [vmem:[%s6099_s19 + $0x38] sm:$0xff]  ;;  %p424_p10 = scmp.lt.s32.totalorder %s5944_s18, 1  ;;  %s4896_s18 = sshll.u32 %s6065_s9, 3 }
  0x25   : > { %8341 = vst [vmem:[#allocation6_spill] sm:$0xff] %v8340_v3  ;;  %v469_v12 = vor.u32 %v467_v52, %v466_v60  ;;  %v471_v13 = vrot.slane %v466_v60, 4  ;;  %v476_v15 = vshll.u32 %v5212_v57, 16  ;;  %v575_v16 = vsel %vm6143_vm9, %v567_v59, %v574_v0  ;;  %v414_v52 = vld [vmem:[%s6099_s19 + $0x30] sm:$0xff]  ;;  %s8173_s12 = scalar_lea.vmem %s8300_s5, %s4896_s18 }
  0x26   : > { %v498_v18 = vsel %vm6132_vm8, %v461_v5, %v497_v62  ;;  %v475_v19 = vrot.slane %v473_v9, 7  ;;  %v481_v20 = vshrl.u32 %v5213_v8, 16  ;;  %v484_v21 = vshll.u32 %v5213_v8, 16  ;;  %724 = vst.msk [vmem:[#allocation2 + $0x1c] sm:$0xf] %vm495_vm7, %v575_v16 }
  0x27   : > { %v470_v24 = vsel %vm6143_vm9, %v462_v7, %v469_v12  ;;  %499 = vst [vmem:[#allocation2] sm:$0xf] %v498_v18  ;;  %vm935_vm10 = vcmask 31744   ;;  %v722_v26 = vsel %vm6132_vm8, %v566_v58, %v721_v11  ;;  %v584_v27 = vrot.slane %v6123_v54, 4  ;;  %s6658_s6 = scalar_select %p424_p10, 1, 0 }
  0x28   : > { %v586_v28 = vshrl.u32 %v6114_v36, 16  ;;  %501 = vst.msk [vmem:[#allocation2 + $0x4] sm:$0xf] %vm495_vm7, %v470_v24  ;;  %v478_v29 = vor.u32 %v476_v15, %v475_v19  ;;  %v479_v30 = vrot.slane %v475_v19, 4  ;;  %v483_v31 = vrot.slane %v481_v20, 7 }
  0x29   : > { %723 = vst [vmem:[#allocation2 + $0x18] sm:$0xf] %v722_v26  ;;  %v589_v32 = vshll.u32 %v6114_v36, 16  ;;  %v729_v34 = vsel %vm6132_vm8, %v583_v2, %v728_v17  ;;  %v503_v35 = vsel %vm6037_vm3, %v471_v13, %v502_v22  ;;  %v5219_v38 = vpack.c.bf16 %v413_v23, %v413_v23  ;;  %s6719_s10 = scalar_select %p424_p10, 255, 0 }
  0x2a   : > { %v6161_v33 = vrot.slane %v586_v28, 7  ;;  %v486_v39 = vor.u32 %v484_v21, %v483_v31  ;;  %v488_v40 = vrot.slane %v483_v31, 4  ;;  %v506_v41 = vsel %vm6132_vm8, %v478_v29, %v505_v25  ;;  %730 = vst [vmem:[#allocation2 + $0x24] sm:$0xf] %v729_v34  ;;  %504 = vst [vmem:[#allocation2 + $0x8] sm:$0x1] %v503_v35 }
  0x2b   : > { %v595_v42 = vshrl.u32 %v6125_v55, 16  ;;  %507 = vst [vmem:[#allocation2 + $0xc] sm:$0xf] %v506_v41  ;;  %v6172_v36 = vsel %vm966_vm0, %v6047_v6, 0  ;;  %vm1083_vm11 = vsmask.f32 3328  ;;  %v726_v60 = vsel %vm6037_vm3, %v576_v1, %v725_v45 }
  0x2c   : > { %v591_v43 = vor.u32 %v589_v32, %v6161_v33  ;;  %v603_v44 = vshrl.u32 %v5219_v38, 16  ;;  %v487_v46 = vsel %vm6143_vm9, %v479_v30, %v486_v39  ;;  %v510_v47 = vsel %vm6037_vm3, %v488_v40, %v509_v37  ;;  %727 = vst [vmem:[#allocation2 + $0x20] sm:$0x1] %v726_v60  ;;  %v735_v37 = vld [vmem:[#allocation2 + $0x30] sm:$0xf] }
  0x2d   : > { %v597_v48 = vrot.slane %v595_v42, 7  ;;  %v606_v49 = vshll.u32 %v5219_v38, 16  ;;  %508 = vst.msk [vmem:[#allocation2 + $0x10] sm:$0xf] %vm495_vm7, %v487_v46  ;;  %vm1084_vm12 = vsmask.f32 7440  ;;  %v6212_v7 = vpack.c.bf16 %v414_v52, %v414_v52 }
  0x2e   : > { %v592_v51 = vsel %vm6143_vm9, %v584_v27, %v591_v43  ;;  %511 = vst [vmem:[#allocation2 + $0x14] sm:$0x1] %v510_v47  ;;  %v6182_v6 = vrot.slane %v603_v44, 7  ;;  %v6188_v54 = vsel %vm966_vm0, %v6068_v14, 0  ;;  %v6190_v56 = vld [vmem:[#allocation2] sm:$0xf]  ;;  %v6220_v13 = vpack.c.bf16 %v415_v53, %v415_v53  ;;  %vm6255_vm13 = vmor %vm1083_vm11, %vm1084_vm12 }
  0x2f   : > { %v6192_v57 = vld [vmem:[#allocation2 + $0x1c] sm:$0xf]  ;;  %731 = vst.msk [vmem:[#allocation2 + $0x28] sm:$0xf] %vm495_vm7, %v592_v51  ;;  %v598_v58 = vshll.u32 %v6125_v55, 16  ;;  %v601_v59 = vrot.slane %v597_v48, 4 }
  0x30   : > { %v6200_v62 = vld [vmem:[#allocation2 + $0x4] sm:$0xf]  ;;  %v1087_v63 = vshrl.u32 %v6190_v56, 16  ;;  %v1090_v14 = vshll.u32 %v6190_v56, 16  ;;  %v593_v0 = vrot.slane %v6161_v33, 4  ;;  %v608_v2 = vor.u32 %v606_v49, %v6182_v6 }
  0x31   : > { %v4926_v55 = vcombine.low %v6190_v56, %v6200_v62  ;;  %v1100_v5 = vshrl.u32 %v6200_v62, 16  ;;  %v6209_v50 = vld [vmem:[#allocation2 + $0x18] sm:$0xf]  ;;  %v1096_v1 = vshll.u32 %v6200_v62, 16  ;;  %v8302_v8 = vrot.slane %v6200_v62, 5 }
  0x32   : > { %v1148_v9 = vshrl.u32 %v6192_v57, 16  ;;  %v6216_v11 = vld [vmem:[#allocation2 + $0x8] sm:$0x1]  ;;  %v609_v12 = vsel %vm6143_vm9, %v601_v59, %v608_v2  ;;  %v6224_v16 = vld [vmem:[#allocation2 + $0xc] sm:$0xf]  ;;  %v6228_v17 = vcombine.low %v6209_v50, %v6192_v57  ;;  %v1089_v18 = vrot.slane %v1087_v63, 4 }
  0x33   : > { %5436 = vmatprep.mubr.msk.bf16.mxu0 %vm935_vm10, %v4926_v55  ;;  %v600_v19 = vor.u32 %v598_v58, %v597_v48  ;;  %738 = vst.msk [vmem:[#allocation2 + $0x34] sm:$0xf] %vm495_vm7, %v609_v12  ;;  %v1111_v20 = vshrl.u32 %v6224_v16, 16  ;;  %v1114_v21 = vshll.u32 %v6224_v16, 16  ;;  %v1135_v22 = vshrl.u32 %v6209_v50, 16 }
  0x34   : > { %8342 = vst [vmem:[#allocation7_spill] sm:$0xff] %v6228_v17  ;;  %v6234_v23 = vld [vmem:[#allocation2 + $0x24] sm:$0xf]  ;;  %v1092_v24 = vrot.slane %v1090_v14, 5  ;;  %v6236_v25 = vld [vmem:[#allocation2 + $0x10] sm:$0xf] }
  0x35   : > { %v1138_v26 = vshll.u32 %v6209_v50, 16  ;;  %v1098_v27 = vrot.slane %v1096_v1, 5  ;;  %v1102_v28 = vrot.slane %v1100_v5, 4  ;;  %v1106_v29 = vshll.u32 %v6216_v11, 16  ;;  %v6249_v35 = vld [vmem:[#allocation2 + $0x14] sm:$0x1] }
  0x36   : > { %v6242_v30 = vrot.slane %v8302_v8, 4  ;;  %v6246_v31 = vcombine.low %v6224_v16, %v6236_v25  ;;  %v1124_v32 = vshrl.u32 %v6236_v25, 16  ;;  %v1093_v34 = vor.u32 %v1092_v24, %v1089_v18  ;;  %v6262_v43 = vld [vmem:[%s8296_s1 + $0x8] sm:$0xf] }
  0x37   : > { %v1159_v38 = vshrl.u32 %v6234_v23, 16  ;;  %v1162_v39 = vshll.u32 %v6234_v23, 16  ;;  %v8344_v40 = vmov 0  ;;  %v1103_v41 = vor.u32 %v1102_v28, %v1098_v27  ;;  %v6267_v45 = vld [vmem:[#allocation2 + $0x28] sm:$0xf] }
  0x38   : > { %8343 = vst [vmem:[#allocation8_spill] sm:$0xff] %v6246_v31  ;;  %v8345_v40 = vsel %vm6255_vm13, 4294967295, %v8344_v40  ;;  %v1108_v42 = vrot.slane %v1106_v29, 5  ;;  %5437 = vmatmul.mubr.msk.bf16.vlgmr.msra.gmra.mxu0 %vm935_vm10, %v6246_v31  ;;  %v1094_v46 = vrot.slane %v1093_v34, 4  ;;  %v1113_v47 = vrot.slane %v1111_v20, 4 }
  0x39   : > { %8346 = vst [vmem:[#allocation9_spill] sm:$0xff] %v8345_v40  ;;  %v1116_v48 = vrot.slane %v1114_v21, 5  ;;  %5479 = vmatpush3.bf16.msra.mxu0 %v6172_v36  ;;  %5440 = vmatprep.mubr.msk.bf16.mxu0 %vm935_vm10, %v6228_v17  ;;  %v1104_v49 = vrot.slane %v1103_v41, 4  ;;  %v1120_v51 = vshll.u32 %v6236_v25, 16  ;;  %v1126_v52 = vrot.slane %v1124_v32, 4 }
  0x3a   : > { %v1130_v53 = vshll.u32 %v6249_v35, 16  ;;  %v8301_v58 = vrot.slane %v6236_v25, 5  ;;  %v1099_v59 = vsel %vm6255_vm13, %v1094_v46, %v1098_v27  ;;  %5798 = vmatprep.subr.msk.bf16.mxu0 %vm966_vm0, %v6262_v43  ;;  %v6282_v36 = vcombine.low %v6234_v23, %v6267_v45  ;;  %v6292_v28 = vld [vmem:[#allocation2 + $0x20] sm:$0x1] }
  0x3b   : > { %v1117_v63 = vor.u32 %v1116_v48, %v1113_v47  ;;  %v1109_v14 = vsel %vm6255_vm13, %v1104_v49, %v1108_v42  ;;  %v1122_v2 = vrot.slane %v1120_v51, 5  ;;  %v736_v55 = vsel %vm6132_vm8, %v600_v19, %v735_v37  ;;  %v742_v42 = vld [vmem:[#allocation2 + $0x3c] sm:$0xf] }
  0x3c   : > { %8347 = vst [vmem:[#allocation10_spill] sm:$0xff] %v6282_v36  ;;  %v4946_v5 = vcombine.low %v1099_v59, %v1109_v14  ;;  %v1132_v12 = vrot.slane %v1130_v53, 5  ;;  %737 = vst [vmem:[#allocation2 + $0x30] sm:$0xf] %v736_v55  ;;  %v612_v18 = vshrl.u32 %v6212_v7, 16  ;;  %v615_v21 = vshll.u32 %v6212_v7, 16 }
  0x3d   : > { %v1118_v1 = vrot.slane %v1117_v63, 4  ;;  %v1127_v20 = vor.u32 %v1126_v52, %v1122_v2  ;;  %v620_v24 = vshrl.u32 %v6220_v13, 16  ;;  %v623_v27 = vshll.u32 %v6220_v13, 16  ;;  %v6308_v52 = vld [vmem:[#allocation2 + $0x34] sm:$0xf] }
  0x3e   : > { %5458 = vmatprep.mubr.msk.bf16.mxu1 %vm935_vm10, %v4946_v5  ;;  %v614_v29 = vrot.slane %v612_v18, 7  ;;  %v1137_v32 = vrot.slane %v1135_v22, 4  ;;  %v1140_v34 = vrot.slane %v1138_v26, 5  ;;  %v1144_v7 = vshll.u32 %v6192_v57, 16  ;;  %v302_v26 = vld [vmem:[#allocation2 + $0x2c] sm:$0x1] }
  0x3f   : > { %v1123_v19 = vsel %vm6255_vm13, %v1118_v1, %v1122_v2  ;;  %v1128_v37 = vrot.slane %v1127_v20, 4  ;;  %v6297_v41 = vrot.slane %v620_v24, 7  ;;  %v1150_v46 = vrot.slane %v1148_v9, 4  ;;  %v273_v55 = vld [vmem:[#allocation2 + $0x48] sm:$0x1]  ;;  %v416_v5 = vld [vmem:[%s6099_s19 + $0x40] sm:$0xff] }
  0x40   : > { %5441 = vmatmul.mubr.msk.bf16.gmra.mxu0 %vm935_vm10, %v6282_v36  ;;  %v617_v13 = vor.u32 %v615_v21, %v614_v29  ;;  %v618_v47 = vrot.slane %v614_v29, 4  ;;  %v1141_v48 = vor.u32 %v1140_v34, %v1137_v32  ;;  %v1154_v22 = vshll.u32 %v6292_v28, 16  ;;  %v417_v1 = vld [vmem:[%s6099_s19 + $0x48] sm:$0xff] }
  0x41   : > { %v1172_v49 = vshrl.u32 %v6267_v45, 16  ;;  %v1133_v51 = vsel %vm6255_vm13, %v1128_v37, %v1132_v12  ;;  %v625_v9 = vor.u32 %v623_v27, %v6297_v41  ;;  %v1146_v53 = vrot.slane %v1144_v7, 5  ;;  %v276_v27 = vld [vmem:[#allocation2 + $0x54] sm:$0x1] }
  0x42   : > { %v6311_v59 = vcombine.low %v1123_v19, %v1133_v51  ;;  %v743_v63 = vsel %vm6132_vm8, %v617_v13, %v742_v42  ;;  %v1142_v14 = vrot.slane %v1141_v48, 4  ;;  %v1156_v2 = vrot.slane %v1154_v22, 5 }
  0x43   : > { %v6317_v18 = vld [vmem:[#allocation2 + $0x30] sm:$0xf]  ;;  %v626_v12 = vsel %vm6143_vm9, %v618_v47, %v625_v9  ;;  %744 = vst [vmem:[#allocation2 + $0x3c] sm:$0xf] %v743_v63  ;;  %v1151_v20 = vor.u32 %v1150_v46, %v1146_v53  ;;  %v303_v21 = vsel %vm6057_vm5, 0, %v302_v26  ;;  %v1161_v24 = vrot.slane %v1159_v38, 4 }
  0x44   : > { %8348 = vst [vmem:[#allocation11_spill] sm:$0xff] %v6311_v59  ;;  %v6327_v19 = vrot.slane %v8301_v58, 4  ;;  %5459 = vmatmul.mubr.msk.bf16.vlgmr.msra.gmra.mxu1 %vm935_vm10, %v6311_v59  ;;  %v610_v29 = vrot.slane %v6182_v6, 4  ;;  %v6334_v32 = vcombine.low %v6317_v18, %v6308_v52  ;;  %745 = vst.msk [vmem:[#allocation2 + $0x40] sm:$0xf] %vm495_vm7, %v626_v12  ;;  %v1147_v34 = vsel %vm6255_vm13, %v1142_v14, %v1146_v53  ;;  %v418_v38 = vld [vmem:[%s6099_s19 + $0x50] sm:$0xff] }
  0x45   : > { %304 = vst [vmem:[#allocation2 + $0x2c] sm:$0x1] %v303_v21  ;;  %v1152_v37 = vrot.slane %v1151_v20, 4  ;;  %v1164_v42 = vrot.slane %v1162_v39, 5  ;;  %v1168_v7 = vshll.u32 %v6267_v45, 16  ;;  %v6343_v46 = vrot.slane %v1172_v49, 4  ;;  %5501 = vmatpush3.bf16.msra.mxu1 %v6188_v54 }
  0x46   : > { %8349 = vst [vmem:[#allocation12_spill] sm:$0xff] %v6334_v32  ;;  %5444 = vmatprep.mubr.msk.bf16.mxu0 %vm935_vm10, %v6334_v32  ;;  %v274_v13 = vsel %vm6037_vm3, 0, %v273_v55  ;;  %v5222_v47 = vpack.c.bf16 %v416_v5, %v416_v5  ;;  %v5223_v48 = vpack.c.bf16 %v417_v1, %v417_v1  ;;  %v277_v22 = vsel %vm6037_vm3, 0, %v276_v27  ;;  %v419_v54 = vld [vmem:[%s6099_s19 + $0x58] sm:$0xff]  ;;  %v282_v6 = vld [vmem:[#allocation2 + $0x6c] sm:$0x1] }
  0x47   : > { %v1157_v39 = vsel %vm6255_vm13, %v1152_v37, %v1156_v2  ;;  %v1165_v26 = vor.u32 %v1164_v42, %v1161_v24  ;;  %v6354_v51 = vrot.slane %v1168_v7, 5  ;;  %275 = vst [vmem:[#allocation2 + $0x48] sm:$0x1] %v274_v13  ;;  %278 = vst [vmem:[#allocation2 + $0x54] sm:$0x1] %v277_v22  ;;  %v5224_v49 = vpack.c.bf16 %v418_v38, %v418_v38 }
  0x48   : > { %v1196_v9 = vshrl.u32 %v6308_v52, 16  ;;  %v6358_v53 = vcombine.low %v1147_v34, %v1157_v39  ;;  %v629_v63 = vshrl.u32 %v5222_v47, 16  ;;  %v637_v14 = vshrl.u32 %v5223_v48, 16  ;;  %v305_v2 = vld [vmem:[#allocation2 + $0x38] sm:$0x1] }
  0x49   : > { %v1183_v55 = vshrl.u32 %v6317_v18, 16  ;;  %v1186_v5 = vshll.u32 %v6317_v18, 16  ;;  %v632_v1 = vshll.u32 %v5222_v47, 16  ;;  %v640_v12 = vshll.u32 %v5223_v48, 16 }
  0x4a   : > { %8350 = vst [vmem:[#allocation13_spill] sm:$0xff] %v6358_v53  ;;  %v6362_v20 = vld [vmem:[#allocation2 + $0x3c] sm:$0xf]  ;;  %5462 = vmatprep.mubr.msk.bf16.mxu1 %vm935_vm10, %v6358_v53  ;;  %v631_v21 = vrot.slane %v629_v63, 7  ;;  %v6366_v24 = vrot.slane %v637_v14, 7  ;;  %v5225_v27 = vpack.c.bf16 %v419_v54, %v419_v54  ;;  %v646_v34 = vshrl.u32 %v5224_v49, 16 }
  0x4b   : > { %v6368_v38 = vld [vmem:[#allocation2 + $0x40] sm:$0xf]  ;;  %v6370_v42 = vrot.slane %v1165_v26, 4  ;;  %v1175_v7 = vor.u32 %v6343_v46, %v6354_v51  ;;  %v649_v13 = vshll.u32 %v5224_v49, 16  ;;  %v1207_v48 = vshrl.u32 %v6362_v20, 16 }
  0x4c   : > { %v732_v37 = vld [vmem:[#allocation2 + $0x2c] sm:$0x1]  ;;  %v6376_v47 = vcombine.low %v6362_v20, %v6368_v38  ;;  %v1210_v22 = vshll.u32 %v6362_v20, 16  ;;  %v1220_v26 = vshrl.u32 %v6368_v38, 16  ;;  %v634_v54 = vor.u32 %v632_v1, %v631_v21  ;;  %v308_v63 = vld [vmem:[#allocation2 + $0x44] sm:$0x1] }
  0x4d   : > { %v733_v39 = vsel %vm6037_vm3, %v593_v0, %v732_v37  ;;  %v635_v46 = vrot.slane %v631_v21, 4  ;;  %v642_v49 = vor.u32 %v640_v12, %v6366_v24  ;;  %v648_v44 = vrot.slane %v646_v34, 7  ;;  %v314_v53 = vld [vmem:[#allocation2 + $0x5c] sm:$0x1] }
  0x4e   : > { %8351 = vst [vmem:[#allocation14_spill] sm:$0xff] %v6376_v47  ;;  %734 = vst [vmem:[#allocation2 + $0x2c] sm:$0x1] %v733_v39  ;;  %5445 = vmatmul.mubr.msk.bf16.gmra.mxu0 %vm935_vm10, %v6376_v47  ;;  %v749_v14 = vld [vmem:[#allocation2 + $0x48] sm:$0xf]  ;;  %v654_v58 = vshrl.u32 %v5225_v27, 16 }
  0x4f   : > { %v657_v60 = vshll.u32 %v5225_v27, 16  ;;  %v306_v33 = vsel %vm6057_vm5, 0, %v305_v2  ;;  %v643_v0 = vsel %vm6143_vm9, %v635_v46, %v642_v49  ;;  %v750_v1 = vsel %vm6132_vm8, %v634_v54, %v749_v14  ;;  %v756_v21 = vld [vmem:[#allocation2 + $0x54] sm:$0xf]  ;;  %v420_v39 = vld [vmem:[%s6099_s19 + $0x60] sm:$0xff] }
  0x50   : > { %307 = vst [vmem:[#allocation2 + $0x38] sm:$0x1] %v306_v33  ;;  %v1185_v12 = vrot.slane %v1183_v55, 4  ;;  %v1188_v37 = vrot.slane %v1186_v5, 5  ;;  %751 = vst [vmem:[#allocation2 + $0x48] sm:$0xf] %v750_v1  ;;  %v651_v34 = vor.u32 %v649_v13, %v648_v44 }
  0x51   : > { %752 = vst.msk [vmem:[#allocation2 + $0x4c] sm:$0xf] %vm495_vm7, %v643_v0  ;;  %v652_v27 = vrot.slane %v648_v44, 4  ;;  %v6396_v15 = vrot.slane %v654_v58, 7  ;;  %v1192_v2 = vshll.u32 %v6308_v52, 16  ;;  %v1198_v46 = vrot.slane %v1196_v9, 4 }
  0x52   : > { %v1189_v8 = vor.u32 %v1188_v37, %v1185_v12  ;;  %v309_v54 = vsel %vm6057_vm5, 0, %v308_v63  ;;  %v1209_v49 = vrot.slane %v1207_v48, 4  ;;  %v279_v14 = vld [vmem:[#allocation2 + $0x60] sm:$0x1]  ;;  %v421_v33 = vld [vmem:[%s6099_s19 + $0x68] sm:$0xff]  ;;  %v757_v5 = vsel %vm6132_vm8, %v651_v34, %v756_v21 }
  0x53   : > { %v659_v55 = vor.u32 %v657_v60, %v6396_v15  ;;  %v6405_v0 = vrot.slane %v1192_v2, 5  ;;  %310 = vst [vmem:[#allocation2 + $0x44] sm:$0x1] %v309_v54  ;;  %v5226_v44 = vpack.c.bf16 %v420_v39, %v420_v39  ;;  %v1176_v58 = vrot.slane %v1175_v7, 4  ;;  %758 = vst [vmem:[#allocation2 + $0x54] sm:$0xf] %v757_v5 }
  0x54   : > { %v6407_v13 = vrot.slane %v1189_v8, 4  ;;  %v1212_v9 = vrot.slane %v1210_v22, 5  ;;  %v1216_v1 = vshll.u32 %v6368_v38, 16  ;;  %v280_v21 = vsel %vm6037_vm3, 0, %v279_v14 }
  0x55   : > { %v6410_v63 = vld [vmem:[#allocation2 + $0x2c] sm:$0x1]  ;;  %v660_v48 = vsel %vm6143_vm9, %v652_v27, %v659_v55  ;;  %v1199_v60 = vor.u32 %v1198_v46, %v6405_v0  ;;  %v5227_v12 = vpack.c.bf16 %v421_v33, %v421_v33  ;;  %v6421_v22 = vrot.slane %v1220_v26, 4  ;;  %281 = vst [vmem:[#allocation2 + $0x60] sm:$0x1] %v280_v21  ;;  %v422_v21 = vld [vmem:[%s6099_s19 + $0x70] sm:$0xff] }
  0x56   : > { %v1178_v37 = vshll.u32 %v6410_v63, 16  ;;  %759 = vst.msk [vmem:[#allocation2 + $0x58] sm:$0xf] %vm495_vm7, %v660_v48  ;;  %v1213_v8 = vor.u32 %v1212_v9, %v1209_v49  ;;  %v6419_v7 = vrot.slane %v1216_v1, 5  ;;  %v627_v39 = vrot.slane %v6297_v41, 4 }
  0x57   : > { %v739_v27 = vld [vmem:[#allocation2 + $0x38] sm:$0x1]  ;;  %v663_v2 = vshrl.u32 %v5226_v44, 16  ;;  %v671_v46 = vshrl.u32 %v5227_v12, 16  ;;  %v1171_v54 = vsel %vm6255_vm13, %v6370_v42, %v6354_v51  ;;  %v6429_v49 = vld [vmem:[#allocation2 + $0x48] sm:$0xf] }
  0x58   : > { %v1180_v14 = vrot.slane %v1178_v37, 5  ;;  %v6431_v33 = vld [vmem:[#allocation2 + $0x4c] sm:$0xf]  ;;  %v740_v41 = vsel %vm6037_vm3, %v610_v29, %v739_v27  ;;  %v666_v26 = vshll.u32 %v5226_v44, 16  ;;  %v6445_v42 = vrot.slane %v1199_v60, 4 }
  0x59   : > { %v6439_v55 = vcombine.low %v6429_v49, %v6431_v33  ;;  %741 = vst [vmem:[#allocation2 + $0x38] sm:$0x1] %v740_v41  ;;  %v6447_v5 = vrot.slane %v1213_v8, 4  ;;  %v1231_v44 = vshrl.u32 %v6429_v49, 16  ;;  %v1223_v1 = vor.u32 %v6421_v22, %v6419_v7 }
  0x5a   : > { %v1181_v29 = vsel %vm6255_vm13, %v1176_v58, %v1180_v14  ;;  %v746_v9 = vld [vmem:[#allocation2 + $0x44] sm:$0x1]  ;;  %v665_v48 = vrot.slane %v663_v2, 7  ;;  %v6459_v60 = vld [vmem:[#allocation2 + $0x54] sm:$0xf]  ;;  %v6463_v27 = vrot.slane %v671_v46, 7 }
  0x5b   : > { %8352 = vst [vmem:[#allocation15_spill] sm:$0xff] %v6439_v55  ;;  %v6455_v37 = vcombine.low %v1171_v54, %v1181_v29  ;;  %5448 = vmatprep.mubr.msk.bf16.mxu0 %vm935_vm10, %v6439_v55  ;;  %v747_v8 = vsel %vm6037_vm3, %v627_v39, %v746_v9  ;;  %v674_v58 = vshll.u32 %v5227_v12, 16  ;;  %v423_v14 = vld [vmem:[%s6099_s19 + $0x78] sm:$0xff]  ;;  %v1234_v41 = vshll.u32 %v6429_v49, 16  ;;  %v311_v29 = vld [vmem:[#allocation2 + $0x50] sm:$0x1] }
  0x5c   : > { %v1244_v22 = vshrl.u32 %v6431_v33, 16  ;;  %748 = vst [vmem:[#allocation2 + $0x44] sm:$0x1] %v747_v8  ;;  %v668_v2 = vor.u32 %v666_v26, %v665_v48  ;;  %v669_v54 = vrot.slane %v665_v48, 4  ;;  %v763_v46 = vld [vmem:[#allocation2 + $0x60] sm:$0xf]  ;;  %v5228_v8 = vpack.c.bf16 %v422_v21, %v422_v21 }
  0x5d   : > { %8353 = vst [vmem:[#allocation16_spill] sm:$0xff] %v6455_v37  ;;  %5463 = vmatmul.mubr.msk.bf16.gmra.mxu1 %vm935_vm10, %v6455_v37  ;;  %v6470_v34 = vld [vmem:[#allocation2 + $0x58] sm:$0xf]  ;;  %v676_v12 = vor.u32 %v674_v58, %v6463_v27  ;;  %v283_v9 = vsel %vm6037_vm3, 0, %v282_v6  ;;  %vm1536_vm14 = vcmask 1042432   ;;  %vm1537_vm15 = vcmask 1046532  }
  0x5e   : > { %v6481_v26 = vcombine.low %v6459_v60, %v6470_v34  ;;  %v1255_v48 = vshrl.u32 %v6459_v60, 16  ;;  %v764_v51 = vsel %vm6132_vm8, %v668_v2, %v763_v46  ;;  %284 = vst [vmem:[#allocation2 + $0x6c] sm:$0x1] %v283_v9  ;;  %v5229_v39 = vpack.c.bf16 %v423_v14, %v423_v14  ;;  %vm6546_vm1 = vmor %vm1536_vm14, %vm1537_vm15 }
  0x5f   : > { %v677_v58 = vsel %vm6143_vm9, %v669_v54, %v676_v12  ;;  %765 = vst [vmem:[#allocation2 + $0x60] sm:$0xf] %v764_v51  ;;  %v680_v37 = vshrl.u32 %v5228_v8, 16  ;;  %v683_v6 = vshll.u32 %v5228_v8, 16  ;;  %v312_v21 = vsel %vm6057_vm5, 0, %v311_v29 }
  0x60   : > { %8354 = vst [vmem:[#allocation17_spill] sm:$0xff] %v6481_v26  ;;  %5449 = vmatmul.mubr.msk.bf16.gmra.mxu0 %vm935_vm10, %v6481_v26  ;;  %v6492_v55 = vld [vmem:[#allocation2 + $0x38] sm:$0x1]  ;;  %766 = vst.msk [vmem:[#allocation2 + $0x64] sm:$0xf] %vm495_vm7, %v677_v58  ;;  %v688_v2 = vshrl.u32 %v5229_v39, 16 }
  0x61   : > { %v691_v46 = vshll.u32 %v5229_v39, 16  ;;  %313 = vst [vmem:[#allocation2 + $0x50] sm:$0x1] %v312_v21  ;;  %v1233_v14 = vrot.slane %v1231_v44, 4  ;;  %v1236_v9 = vrot.slane %v1234_v41, 5  ;;  %v1258_v51 = vshll.u32 %v6459_v60, 16 }
  0x62   : > { %v1202_v54 = vshll.u32 %v6492_v55, 16  ;;  %v682_v12 = vrot.slane %v680_v37, 7  ;;  %v1240_v29 = vshll.u32 %v6431_v33, 16  ;;  %v1268_v8 = vshrl.u32 %v6470_v34, 16 }
  0x63   : > { %v1224_v59 = vrot.slane %v1223_v1, 4  ;;  %v6499_v26 = vrot.slane %v688_v2, 7  ;;  %v315_v58 = vsel %vm6057_vm5, 0, %v314_v53  ;;  %v6503_v39 = vld [vmem:[#allocation2 + $0x44] sm:$0x1]  ;;  %v1246_v21 = vrot.slane %v1244_v22, 4 }
  0x64   : > { %v1204_v47 = vrot.slane %v1202_v54, 5  ;;  %v685_v44 = vor.u32 %v683_v6, %v682_v12  ;;  %v686_v41 = vrot.slane %v682_v12, 4  ;;  %316 = vst [vmem:[#allocation2 + $0x5c] sm:$0x1] %v315_v58  ;;  %v1226_v32 = vshll.u32 %v6503_v39, 16 }
  0x65   : > { %v693_v37 = vor.u32 %v691_v46, %v6499_v26  ;;  %v1237_v36 = vor.u32 %v1236_v9, %v1233_v14  ;;  %v1257_v17 = vrot.slane %v1255_v48, 4  ;;  %v770_v2 = vld [vmem:[#allocation2 + $0x6c] sm:$0xf]  ;;  %v6510_v31 = vrot.slane %v1240_v29, 5 }
  0x66   : > { %v1205_v1 = vsel %vm6255_vm13, %v6445_v42, %v1204_v47  ;;  %v1260_v53 = vrot.slane %v1258_v51, 5  ;;  %v1264_v54 = vshll.u32 %v6470_v34, 16  ;;  %v8355_v22 = vsel %vm6255_vm13, %v6407_v13, %v6405_v0  ;;  %v6520_v14 = vld [vmem:[#allocation2 + $0x60] sm:$0xf] }
  0x67   : > { %v6518_v6 = vcombine.low %v8355_v22, %v1205_v1  ;;  %v1228_v46 = vrot.slane %v1226_v32, 5  ;;  %v694_v48 = vsel %vm6143_vm9, %v686_v41, %v693_v37  ;;  %v771_v47 = vsel %vm6132_vm8, %v685_v44, %v770_v2  ;;  %v6527_v9 = vld [vmem:[#allocation2 + $0x64] sm:$0xf]  ;;  %v317_v44 = vld [vmem:[#allocation2 + $0x68] sm:$0x1] }
  0x68   : > { %v661_v42 = vrot.slane %v6396_v15, 4  ;;  %v1279_v51 = vshrl.u32 %v6520_v14, 16  ;;  %772 = vst [vmem:[#allocation2 + $0x6c] sm:$0xf] %v771_v47  ;;  %773 = vst.msk [vmem:[#allocation2 + $0x70] sm:$0xf] %vm495_vm7, %v694_v48  ;;  %v6537_v13 = vcombine.low %v6520_v14, %v6527_v9 }
  0x69   : > { %v753_v0 = vld [vmem:[#allocation2 + $0x50] sm:$0x1]  ;;  %5466 = vmatprep.mubr.msk.bf16.mxu1 %vm935_vm10, %v6518_v6  ;;  %v1229_v32 = vsel %vm6255_vm13, %v1224_v59, %v1228_v46  ;;  %v1282_v15 = vshll.u32 %v6520_v14, 16  ;;  %v8356_v12 = vrot.slane %v6366_v24, 4  ;;  %v8357_v58 = vmov 0 }
  0x6a   : > { %v8358_v58 = vsel %vm6546_vm1, 4294967295, %v8357_v58  ;;  %v8360_v59 = vsel %vm6255_vm13, %v6447_v5, %v6419_v7  ;;  %v6557_v37 = vrot.slane %v1237_v36, 4  ;;  %v1247_v24 = vor.u32 %v1246_v21, %v6510_v31  ;;  %5452 = vmatprep.mubr.msk.bf16.mxu0 %vm935_vm10, %v6537_v13 }
  0x6b   : > { %v754_v29 = vsel %vm6037_vm3, %v8356_v12, %v753_v0  ;;  %8359 = vst [vmem:[#allocation18_spill] sm:$0xff] %v8358_v58  ;;  %v6555_v41 = vcombine.low %v8360_v59, %v1229_v32  ;;  %v6560_v1 = vrot.slane %v1264_v54, 5  ;;  %v1292_v2 = vshrl.u32 %v6527_v9, 16  ;;  %v760_v22 = vld [vmem:[#allocation2 + $0x5c] sm:$0x1] }
  0x6c   : > { %755 = vst [vmem:[#allocation2 + $0x50] sm:$0x1] %v754_v29  ;;  %v1261_v46 = vor.u32 %v1260_v53, %v1257_v17  ;;  %v1270_v48 = vrot.slane %v1268_v8, 4  ;;  %v5022_v7 = vcombine.low %v6262_v43, %v6262_v43  ;;  %v761_v36 = vsel %vm6037_vm3, %v661_v42, %v760_v22 }
  0x6d   : > { %5467 = vmatmul.mubr.msk.bf16.gmra.mxu1 %vm935_vm10, %v6555_v41  ;;  %v8361_v5 = vrot.slane %v6200_v62, 5  ;;  %v8362_v21 = vrot.slane %v6190_v56, 9  ;;  %v8363_v47 = vrot.slane %v6216_v11, 5  ;;  %v318_v8 = vsel %vm6057_vm5, 0, %v317_v44  ;;  %762 = vst [vmem:[#allocation2 + $0x5c] sm:$0x1] %v761_v36 }
  0x6e   : > { %v1551_v53 = vrot.slane %v6249_v35, 5  ;;  %v6585_v42 = vrot.slane %v5022_v7, 2  ;;  %319 = vst [vmem:[#allocation2 + $0x68] sm:$0x1] %v318_v8  ;;  %v1281_v62 = vrot.slane %v1279_v51, 4  ;;  %v1284_v56 = vrot.slane %v1282_v15, 5 }
  0x6f   : > { %v1542_v54 = vsel %vm6546_vm1, %v8362_v21, %v8361_v5  ;;  %v1545_v17 = vsel %vm6546_vm1, %v6242_v30, %v8363_v47  ;;  %v678_v0 = vrot.slane %v6463_v27, 4  ;;  %v695_v32 = vrot.slane %v6499_v26, 4  ;;  %v320_v30 = vld [vmem:[#allocation2 + $0x74] sm:$0x1]  ;;  %v6591_v29 = vld [vmem:[#allocation2 + $0x6c] sm:$0xf] }
  0x70   : > { %v1271_v11 = vor.u32 %v1270_v48, %v6560_v1  ;;  %v1288_v12 = vshll.u32 %v6527_v9, 16  ;;  %v6593_v44 = vld [vmem:[#allocation2 + $0x70] sm:$0xf]  ;;  %v1243_v35 = vsel %vm6255_vm13, %v6557_v37, %v6510_v31  ;;  %v1248_v51 = vrot.slane %v1247_v24, 4  ;;  %5799 = vmatprep.subr.msk.bf16.mxu1 %vm966_vm0, %v6585_v42 }
  0x71   : > { %v4977_v15 = vcombine.low %v1542_v54, %v1545_v17  ;;  %v1285_v59 = vor.u32 %v1284_v56, %v1281_v62  ;;  %v6603_v27 = vcombine.low %v6591_v29, %v6593_v44  ;;  %v1262_v22 = vrot.slane %v1261_v46, 4 }
  0x72   : > { %v6605_v48 = vrot.slane %v1292_v2, 4  ;;  %v8364_v7 = vrot.slane %v6236_v25, 5  ;;  %v8365_v36 = vrot.slane %v6224_v16, 9  ;;  %v1303_v37 = vshrl.u32 %v6591_v29, 16 }
  0x73   : > { %v1306_v24 = vshll.u32 %v6591_v29, 16  ;;  %v6615_v5 = vld [vmem:[#allocation2 + $0x50] sm:$0x1]  ;;  %v1552_v46 = vsel %vm6546_vm1, %v6327_v19, %v1551_v53  ;;  %v321_v2 = vsel %vm6057_vm5, 0, %v320_v30  ;;  %5453 = vmatmul.mubr.msk.bf16.gmra.mxu0 %vm935_vm10, %v6603_v27  ;;  %v1316_v16 = vshrl.u32 %v6593_v44, 16 }
  0x74   : > { %v1549_v31 = vsel %vm6546_vm1, %v8365_v36, %v8364_v7  ;;  %v1250_v25 = vshll.u32 %v6615_v5, 16  ;;  %v1272_v21 = vrot.slane %v1271_v11, 4  ;;  %v6626_v54 = vrot.slane %v1288_v12, 5  ;;  %322 = vst [vmem:[#allocation2 + $0x74] sm:$0x1] %v321_v2  ;;  %5480 = vmatprep.mubr.msk.bf16.mxu0 %vm935_vm10, %v4977_v15 }
  0x75   : > { %v6629_v47 = vrot.slane %v1285_v59, 4  ;;  %v1984_v19 = vsel %vm966_vm0, %v6262_v43, 0  ;;  %v1312_v17 = vshll.u32 %v6593_v44, 16  ;;  %v4969_v8 = vrot.slane %v6209_v50, 9  ;;  %v6636_v62 = vld [vmem:[#allocation2 + $0x5c] sm:$0x1] }
  0x76   : > { %v1252_v53 = vrot.slane %v1250_v25, 5  ;;  %v1267_v56 = vsel %vm6255_vm13, %v1262_v22, %v6560_v1  ;;  %v767_v11 = vld [vmem:[#allocation2 + $0x68] sm:$0x1]  ;;  %v6641_v12 = vcombine.low %v1549_v31, %v1552_v46  ;;  %v1555_v30 = vrot.slane %v6192_v57, 5 }
  0x77   : > { %v1274_v43 = vshll.u32 %v6636_v62, 16  ;;  %v768_v15 = vsel %vm6037_vm3, %v678_v0, %v767_v11  ;;  %v1305_v50 = vrot.slane %v1303_v37, 4  ;;  %v1308_v59 = vrot.slane %v1306_v24, 5 }
  0x78   : > { %v1253_v7 = vsel %vm6255_vm13, %v1248_v51, %v1252_v53  ;;  %769 = vst [vmem:[#allocation2 + $0x68] sm:$0x1] %v768_v15  ;;  %v1295_v1 = vor.u32 %v6605_v48, %v6626_v54  ;;  %v1318_v22 = vrot.slane %v1316_v16, 4  ;;  %v1557_v36 = vrot.slane %v1555_v30, 4 }
  0x79   : > { %v6651_v31 = vcombine.low %v1243_v35, %v1253_v7  ;;  %v1276_v46 = vrot.slane %v1274_v43, 5  ;;  %v1556_v57 = vsel %vm6546_vm1, %v4969_v8, %v1555_v30  ;;  %v1558_v2 = vrot.slane %v6292_v28, 5 }
  0x7a   : > { %v6660_v0 = vrot.slane %v1312_v17, 5  ;;  %v4970_v51 = vrot.slane %v6234_v23, 9  ;;  %v1562_v37 = vrot.slane %v6267_v45, 5  ;;  %v1565_v48 = vrot.slane %v6410_v63, 5 }
  0x7b   : > { %5470 = vmatprep.mubr.msk.bf16.mxu1 %vm935_vm10, %v6651_v31  ;;  %v1277_v35 = vsel %vm6255_vm13, %v1272_v21, %v1276_v46  ;;  %v774_v24 = vld [vmem:[#allocation2 + $0x74] sm:$0x1]  ;;  %v1559_v28 = vsel %vm6546_vm1, %v1557_v36, %v1558_v2  ;;  %v4971_v16 = vrot.slane %v6317_v18, 9  ;;  %v1569_v25 = vrot.slane %v6308_v52, 5  ;;  %5481 = vmatmul.mubr.msk.bf16.vlgmr.msra.gmra.mxu0 %vm935_vm10, %v6641_v12  ;;  %v6686_v21 = vld [vmem:[%s8296_s1 + $0xc] sm:$0xf] }
  0x7c   : > { %v6673_v17 = vcombine.low %v1267_v56, %v1277_v35  ;;  %v775_v23 = vsel %vm6037_vm3, %v695_v32, %v774_v24  ;;  %v1309_v45 = vor.u32 %v1308_v59, %v1305_v50  ;;  %v6681_v63 = vcombine.low %v1556_v57, %v1559_v28  ;;  %5523 = vmatpush3.bf16.msra.mxu0 %v1984_v19 }
  0x7d   : > { %776 = vst [vmem:[#allocation2 + $0x74] sm:$0x1] %v775_v23  ;;  %v1563_v52 = vsel %vm6546_vm1, %v4970_v51, %v1562_v37  ;;  %v1564_v18 = vrot.slane %v1562_v37, 4  ;;  %v1571_v8 = vrot.slane %v1569_v25, 4  ;;  %v1572_v26 = vrot.slane %v6492_v55, 5  ;;  %5800 = vmatprep.subr.msk.bf16.mxu0 %vm966_vm0, %v6686_v21 }
  0x7e   : > { %5471 = vmatmul.mubr.msk.bf16.gmra.mxu1 %vm935_vm10, %v6673_v17  ;;  %v1319_v32 = vor.u32 %v1318_v22, %v6660_v0  ;;  %5484 = vmatprep.mubr.msk.bf16.mxu0 %vm935_vm10, %v6681_v63  ;;  %v1570_v53 = vsel %vm6546_vm1, %v4971_v16, %v1569_v25  ;;  %v4972_v19 = vrot.slane %v6362_v20, 9  ;;  %v1576_v56 = vrot.slane %v6368_v38, 5 }
  0x7f   : > { %v6700_v11 = vld [vmem:[#allocation2 + $0x68] sm:$0x1]  ;;  %v1566_v55 = vsel %vm6546_vm1, %v1564_v18, %v1565_v48  ;;  %v1573_v30 = vsel %vm6546_vm1, %v1571_v8, %v1572_v26  ;;  %v4973_v43 = vrot.slane %v6429_v49, 9  ;;  %v1583_v15 = vrot.slane %v6431_v33, 5  ;;  %v323_v26 = vld [vmem:[#allocation2 + $0x80] sm:$0x1] }
  0x80   : > { %v1296_v50 = vrot.slane %v1295_v1, 4  ;;  %v1298_v20 = vshll.u32 %v6700_v11, 16  ;;  %v6711_v59 = vcombine.low %v1563_v52, %v1566_v55  ;;  %v1579_v38 = vrot.slane %v6503_v39, 5  ;;  %v5882_v8 = vld [vmem:[%s6128_s28 + $0x8] sm:%s6719_s10] }
  0x81   : > { %v6714_v7 = vcombine.low %v1570_v53, %v1573_v30  ;;  %v1578_v22 = vrot.slane %v1576_v56, 4  ;;  %v1585_v36 = vrot.slane %v1583_v15, 4  ;;  %v1586_v46 = vrot.slane %v6615_v5, 5 }
  0x82   : > { %v1291_v49 = vsel %vm6255_vm13, %v6629_v47, %v6626_v54  ;;  %v1300_v33 = vrot.slane %v1298_v20, 5  ;;  %v1590_v1 = vrot.slane %v6470_v34, 5  ;;  %v1310_v57 = vrot.slane %v1309_v45, 4  ;;  %v5879_v45 = vld [vmem:[%s6128_s28] sm:%s6719_s10] }
  0x83   : > { %v1320_v2 = vrot.slane %v1319_v32, 4  ;;  %v1577_v39 = vsel %vm6546_vm1, %v4972_v19, %v1576_v56  ;;  %v1584_v51 = vsel %vm6546_vm1, %v4973_v43, %v1583_v15  ;;  %5485 = vmatmul.mubr.msk.bf16.gmra.mxu0 %vm935_vm10, %v6711_v59  ;;  %v1580_v34 = vsel %vm6546_vm1, %v1578_v22, %v1579_v38  ;;  %v288_v43 = vld [vmem:[#allocation2 + $0x84] sm:$0x1]  ;;  %v5886_v15 = vld [vmem:[%s6128_s28 + $0x10] sm:%s6719_s10] }
  0x84   : > { %v1301_v5 = vsel %vm6255_vm13, %v1296_v50, %v1300_v33  ;;  %v6732_v37 = vld [vmem:[#allocation2 + $0x74] sm:$0x1]  ;;  %v4974_v54 = vrot.slane %v6459_v60, 9  ;;  %v1593_v47 = vrot.slane %v6636_v62, 5  ;;  %5488 = vmatprep.mubr.msk.bf16.mxu0 %vm935_vm10, %v6714_v7  ;;  %v1587_v24 = vsel %vm6546_vm1, %v1585_v36, %v1586_v46  ;;  %v285_v60 = vld [vmem:[#allocation2 + $0x78] sm:$0x1] }
  0x85   : > { %v6740_v48 = vcombine.low %v1291_v49, %v1301_v5  ;;  %v1322_v35 = vshll.u32 %v6732_v37, 16  ;;  %v1592_v28 = vrot.slane %v1590_v1, 4  ;;  %v4975_v16 = vrot.slane %v6520_v14, 9  ;;  %v5889_v36 = vld [vmem:[%s6128_s28 + $0x18] sm:%s6719_s10]  ;;  %v326_v46 = vld [vmem:[#allocation2 + $0x8c] sm:$0x1] }
  0x86   : > { %v1597_v25 = vrot.slane %v6527_v9, 5  ;;  %v1315_v62 = vsel %vm6255_vm13, %v1310_v57, %v6660_v0  ;;  %v6756_v52 = vcombine.low %v1577_v39, %v1580_v34  ;;  %v6758_v18 = vcombine.low %v1584_v51, %v1587_v24 }
  0x87   : > { %5474 = vmatprep.mubr.msk.bf16.mxu1 %vm935_vm10, %v6740_v48  ;;  %v1324_v23 = vrot.slane %v1322_v35, 5  ;;  %v1600_v14 = vrot.slane %v6700_v11, 5  ;;  %v5045_v9 = vcombine.low %v6686_v21, %v6686_v21  ;;  %v1591_v32 = vsel %vm6546_vm1, %v4974_v54, %v1590_v1 }
  0x88   : > { %v1594_v53 = vsel %vm6546_vm1, %v1592_v28, %v1593_v47  ;;  %v286_v19 = vsel %vm6037_vm3, 0, %v285_v60  ;;  %v1598_v11 = vsel %vm6546_vm1, %v4975_v16, %v1597_v25  ;;  %v1599_v55 = vrot.slane %v1597_v25, 4 }
  0x89   : > { %v1325_v0 = vsel %vm6255_vm13, %v1320_v2, %v1324_v23  ;;  %287 = vst [vmem:[#allocation2 + $0x78] sm:$0x1] %v286_v19  ;;  %v5230_v30 = vpack.c.bf16 %v5879_v45, %v5879_v45  ;;  %v4976_v50 = vrot.slane %v6591_v29, 9  ;;  %v1604_v20 = vrot.slane %v6593_v44, 5  ;;  %v8366_v44 = vld [vmem:[#allocation8_spill] sm:$0xff] }
  0x8a   : > { %v6773_v56 = vcombine.low %v1315_v62, %v1325_v0  ;;  %v5231_v38 = vpack.c.bf16 %v5882_v8, %v5882_v8  ;;  %v324_v22 = vsel %vm6057_vm5, 0, %v323_v26  ;;  %v6789_v49 = vcombine.low %v1591_v32, %v1594_v53 }
  0x8b   : > { %5489 = vmatmul.mubr.msk.bf16.gmra.mxu0 %vm935_vm10, %v6756_v52  ;;  %v1607_v33 = vrot.slane %v6732_v37, 5  ;;  %v790_v1 = vshrl.u32 %v5230_v30, 16  ;;  %v793_v29 = vshll.u32 %v5230_v30, 16  ;;  %325 = vst [vmem:[#allocation2 + $0x80] sm:$0x1] %v324_v22  ;;  %v289_v39 = vsel %vm6037_vm3, 0, %v288_v43 }
  0x8c   : > { %5475 = vmatmul.mubr.msk.bf16.gmra.mxu1 %vm935_vm10, %v6773_v56  ;;  %5492 = vmatprep.mubr.msk.bf16.mxu0 %vm935_vm10, %v6758_v18  ;;  %v798_v57 = vshrl.u32 %v5231_v38, 16  ;;  %v801_v2 = vshll.u32 %v5231_v38, 16  ;;  %v5232_v51 = vpack.c.bf16 %v5886_v15, %v5886_v15  ;;  %v1601_v5 = vsel %vm6546_vm1, %v1599_v55, %v1600_v14  ;;  %290 = vst [vmem:[#allocation2 + $0x84] sm:$0x1] %v289_v39  ;;  %v8367_v15 = vld [vmem:[#allocation7_spill] sm:$0xff]  ;;  %v8368_v22 = vld [vmem:[#allocation10_spill] sm:$0xff] }
  0x8d   : > { %5502 = vmatprep.mubr.msk.bf16.mxu1 %vm935_vm10, %v8366_v44  ;;  %v792_v34 = vrot.slane %v790_v1, 7  ;;  %v5233_v37 = vpack.c.bf16 %v5889_v36, %v5889_v36  ;;  %v327_v54 = vsel %vm6057_vm5, 0, %v326_v46  ;;  %v1606_v47 = vrot.slane %v1604_v20, 4  ;;  %v8371_v39 = vld [vmem:[#allocation11_spill] sm:$0xff] }
  0x8e   : > { %v800_v35 = vrot.slane %v798_v57, 7  ;;  %v807_v24 = vshrl.u32 %v5232_v51, 16  ;;  %v810_v28 = vshll.u32 %v5232_v51, 16  ;;  %328 = vst [vmem:[#allocation2 + $0x8c] sm:$0x1] %v327_v54  ;;  %v6802_v23 = vcombine.low %v1598_v11, %v1601_v5  ;;  %v8374_v54 = vld [vmem:[#allocation17_spill] sm:$0xff] }
  0x8f   : > { %v795_v16 = vor.u32 %v793_v29, %v792_v34  ;;  %v796_v25 = vrot.slane %v792_v34, 4  ;;  %v815_v60 = vshrl.u32 %v5233_v37, 16  ;;  %v818_v62 = vshll.u32 %v5233_v37, 16  ;;  %v884_v5 = vld [vmem:[%s8296_s1 + $0x10] sm:$0x3]  ;;  %v8372_v34 = vld [vmem:[#allocation15_spill] sm:$0xff] }
  0x90   : > { %v803_v45 = vor.u32 %v801_v2, %v800_v35  ;;  %v805_v8 = vrot.slane %v800_v35, 4  ;;  %v830_v14 = vld [vmem:[#allocation2 + $0x78] sm:$0xf]  ;;  %v809_v26 = vrot.slane %v807_v24, 7  ;;  %v2138_v0 = vsel %vm966_vm0, %v6585_v42, 0  ;;  %v8373_v37 = vld [vmem:[#allocation13_spill] sm:$0xff] }
  0x91   : > { %v831_v32 = vsel %vm6132_vm8, %v795_v16, %v830_v14  ;;  %v817_v53 = vrot.slane %v815_v60, 7  ;;  %v6808_v19 = vrot.slane %v5045_v9, 2  ;;  %v1605_v36 = vsel %vm6546_vm1, %v4976_v50, %v1604_v20  ;;  %v8370_v2 = vld [vmem:[#allocation14_spill] sm:$0xff] }
  0x92   : > { %v804_v55 = vsel %vm6143_vm9, %v796_v25, %v803_v45  ;;  %832 = vst [vmem:[#allocation2 + $0x78] sm:$0xf] %v831_v32  ;;  %v834_v30 = vld [vmem:[#allocation2 + $0x80] sm:$0x1]  ;;  %v812_v11 = vor.u32 %v810_v28, %v809_v26  ;;  %v813_v43 = vrot.slane %v809_v26, 4  ;;  %v1608_v46 = vsel %vm6546_vm1, %v1606_v47, %v1607_v33  ;;  %v8369_v33 = vld [vmem:[#allocation12_spill] sm:$0xff] }
  0x93   : > { %5493 = vmatmul.mubr.msk.bf16.gmra.mxu0 %vm935_vm10, %v6789_v49  ;;  %833 = vst.msk [vmem:[#allocation2 + $0x7c] sm:$0xf] %vm495_vm7, %v804_v55  ;;  %v835_v42 = vsel %vm6037_vm3, %v805_v8, %v834_v30  ;;  %v820_v9 = vor.u32 %v818_v62, %v817_v53  ;;  %v822_v38 = vrot.slane %v817_v53, 4  ;;  %v837_v1 = vld [vmem:[#allocation2 + $0x84] sm:$0xf]  ;;  %v6836_v20 = vcombine.low %v1605_v36, %v1608_v46  ;;  %v8375_v47 = vld [vmem:[#allocation16_spill] sm:$0xff] }
  0x94   : > { %5503 = vmatmul.mubr.msk.bf16.vlgmr.msra.gmra.mxu1 %vm935_vm10, %v8367_v15  ;;  %5496 = vmatprep.mubr.msk.bf16.mxu0 %vm935_vm10, %v6802_v23  ;;  %836 = vst [vmem:[#allocation2 + $0x80] sm:$0x1] %v835_v42  ;;  %v838_v44 = vsel %vm6132_vm8, %v812_v11, %v837_v1  ;;  %v2282_v51 = vsel %vm966_vm0, %v6686_v21, 0 }
  0x95   : > { %5506 = vmatprep.mubr.msk.bf16.mxu1 %vm935_vm10, %v8368_v22  ;;  %5545 = vmatpush3.bf16.msra.mxu1 %v2138_v0  ;;  %v821_v29 = vsel %vm6143_vm9, %v813_v43, %v820_v9  ;;  %v841_v57 = vld [vmem:[#allocation2 + $0x8c] sm:$0x1]  ;;  %839 = vst [vmem:[#allocation2 + $0x84] sm:$0xf] %v838_v44  ;;  %v2452_v43 = vsel %vm966_vm0, %v6808_v19, 0  ;;  %v2602_v9 = vsel %vm966_vm0, %v884_v5, 0 }
  0x96   : > { %5801 = vmatprep.subr.msk.bf16.mxu1 %vm966_vm0, %v6808_v19  ;;  %840 = vst.msk [vmem:[#allocation2 + $0x88] sm:$0xf] %vm495_vm7, %v821_v29  ;;  %v842_v50 = vsel %vm6037_vm3, %v822_v38, %v841_v57 }
  0x97   : > { %843 = vst [vmem:[#allocation2 + $0x8c] sm:$0x1] %v842_v50 }
  0x99   : > { %v874_v21 = vld [vmem:[#allocation2 + $0x78] sm:$0xf] }
  0x9a   : > { %v875_v35 = vld [vmem:[#allocation2 + $0x7c] sm:$0xf]  ;;  %v1954_v24 = vshrl.u32 %v874_v21, 16  ;;  %v1957_v28 = vshll.u32 %v874_v21, 16  ;;  %v5020_v36 = vrot.slane %v874_v21, 9 }
  0x9b   : > { %5497 = vmatmul.mubr.msk.bf16.gmra.mxu0 %vm935_vm10, %v6836_v20  ;;  %v1967_v16 = vshrl.u32 %v875_v35, 16  ;;  %v1963_v25 = vshll.u32 %v875_v35, 16  ;;  %v4997_v60 = vcombine.low %v874_v21, %v875_v35  ;;  %v876_v26 = vld [vmem:[#allocation2 + $0x80] sm:$0x1]  ;;  %v2122_v38 = vrot.slane %v875_v35, 5 }
  0x9c   : > { %5507 = vmatmul.mubr.msk.bf16.gmra.mxu1 %vm935_vm10, %v8369_v33  ;;  %5524 = vmatprep.mubr.msk.bf16.mxu0 %vm935_vm10, %v8371_v39  ;;  %v1956_v62 = vrot.slane %v1954_v24, 4  ;;  %v1959_v45 = vrot.slane %v1957_v28, 5  ;;  %v1973_v53 = vshll.u32 %v876_v26, 16  ;;  %v2125_v1 = vrot.slane %v876_v26, 5  ;;  %v877_v44 = vld [vmem:[#allocation2 + $0x84] sm:$0xf] }
  0x9d   : > { %5510 = vmatprep.mubr.msk.bf16.mxu1 %vm935_vm10, %v8370_v2  ;;  %v1965_v8 = vrot.slane %v1963_v25, 5  ;;  %v1969_v14 = vrot.slane %v1967_v16, 4  ;;  %v2124_v46 = vrot.slane %v2122_v38, 4  ;;  %v878_v57 = vld [vmem:[#allocation2 + $0x88] sm:$0xf]  ;;  %v5056_v25 = vrot.slane %v877_v44, 9 }
  0x9e   : > { %v1960_v0 = vor.u32 %v1959_v45, %v1956_v62  ;;  %v1975_v11 = vrot.slane %v1973_v53, 5  ;;  %v5033_v50 = vcombine.low %v877_v44, %v878_v57 }
  0x9f   : > { %v1970_v32 = vor.u32 %v1969_v14, %v1965_v8 }
  0xa0   : > { %v1961_v55 = vrot.slane %v1960_v0, 4 }
  0xa1   : > { %v1971_v30 = vrot.slane %v1970_v32, 4 }
  0xa3   : > { %5525 = vmatmul.mubr.msk.bf16.vlgmr.msra.gmra.mxu0 %vm935_vm10, %v8373_v37  ;;  %v1976_v42 = vsel %vm6255_vm13, %v1971_v30, %v1975_v11 }
  0xa4   : > { %5511 = vmatmul.mubr.msk.bf16.gmra.mxu1 %vm935_vm10, %v8372_v34  ;;  %5567 = vmatpush3.bf16.msra.mxu0 %v2282_v51 }
  0xa5   : > { %5514 = vmatprep.mubr.msk.bf16.mxu1 %vm935_vm10, %v8374_v54  ;;  %5528 = vmatprep.mubr.msk.bf16.mxu0 %vm935_vm10, %v8375_v47 }
  0xa6   : > { %5802 = vmatprep.subr.msk.bf16.mxu0 %vm966_vm0, %v884_v5 }
  0xab   : > { %5529 = vmatmul.mubr.msk.bf16.gmra.mxu0 %vm935_vm10, %v6518_v6 }
  0xac   : > { %5515 = vmatmul.mubr.msk.bf16.gmra.mxu1 %vm935_vm10, %v6537_v13  ;;  %5532 = vmatprep.mubr.msk.bf16.mxu0 %vm935_vm10, %v6555_v41 }
  0xad   : > { %5518 = vmatprep.mubr.msk.bf16.mxu1 %vm935_vm10, %v6603_v27 }
  0xb3   : > { %5533 = vmatmul.mubr.msk.bf16.gmra.mxu0 %vm935_vm10, %v6651_v31 }
  0xb4   : > { %5519 = vmatmul.mubr.msk.bf16.gmra.mxu1 %vm935_vm10, %v4997_v60  ;;  %5536 = vmatprep.mubr.msk.bf16.mxu0 %vm935_vm10, %v6673_v17 }
  0xb5   : > { %5546 = vmatprep.mubr.msk.bf16.mxu1 %vm935_vm10, %v6641_v12  ;;  %v1966_v12 = vsel %vm6255_vm13, %v1961_v55, %v1965_v8 }
  0xb6   : > { %v5009_v19 = vcombine.low %v1966_v12, %v1976_v42 }
  0xbb   : > { %5537 = vmatmul.mubr.msk.bf16.gmra.mxu0 %vm935_vm10, %v6740_v48 }
  0xbc   : > { %5547 = vmatmul.mubr.msk.bf16.vlgmr.msra.gmra.mxu1 %vm935_vm10, %v6681_v63  ;;  %5540 = vmatprep.mubr.msk.bf16.mxu0 %vm935_vm10, %v6773_v56 }
  0xbd   : > { %5550 = vmatprep.mubr.msk.bf16.mxu1 %vm935_vm10, %v6711_v59  ;;  %5589 = vmatpush3.bf16.msra.mxu1 %v2452_v43 }
  0xc3   : > { %5541 = vmatmul.mubr.msk.bf16.gmra.mxu0 %vm935_vm10, %v5009_v19 }
  0xc4   : > { %5551 = vmatmul.mubr.msk.bf16.gmra.mxu1 %vm935_vm10, %v6714_v7  ;;  %5568 = vmatprep.mubr.msk.bf16.mxu0 %vm935_vm10, %v8367_v15  ;;  %v2123_v15 = vsel %vm6546_vm1, %v5020_v36, %v2122_v38 }
  0xc5   : > { %5554 = vmatprep.mubr.msk.bf16.mxu1 %vm935_vm10, %v6756_v52 }
  0xcb   : > { %5569 = vmatmul.mubr.msk.bf16.vlgmr.msra.gmra.mxu0 %vm935_vm10, %v8368_v22  ;;  %v2126_v22 = vsel %vm6546_vm1, %v2124_v46, %v2125_v1 }
  0xcc   : > { %5555 = vmatmul.mubr.msk.bf16.gmra.mxu1 %vm935_vm10, %v6758_v18  ;;  %5611 = vmatpush3.bf16.msra.mxu0 %v2602_v9  ;;  %v5021_v29 = vcombine.low %v2123_v15, %v2126_v22 }
  0xcd   : > { %5558 = vmatprep.mubr.msk.bf16.mxu1 %vm935_vm10, %v6789_v49  ;;  %5572 = vmatprep.mubr.msk.bf16.mxu0 %vm935_vm10, %v8369_v33  ;;  %v2421_v33 = vshll.u32 %v877_v44, 16 }
  0xcf   : > { %v2423_v39 = vrot.slane %v2421_v33, 5 }
  0xd3   : > { %5573 = vmatmul.mubr.msk.bf16.gmra.mxu0 %vm935_vm10, %v8370_v2  ;;  %v2431_v2 = vshrl.u32 %v878_v57, 16 }
  0xd4   : > { %5559 = vmatmul.mubr.msk.bf16.gmra.mxu1 %vm935_vm10, %v6802_v23  ;;  %5576 = vmatprep.mubr.msk.bf16.mxu0 %vm935_vm10, %v8372_v34  ;;  %v879_v34 = vld [vmem:[#allocation2 + $0x8c] sm:$0x1] }
  0xd5   : > { %5562 = vmatprep.mubr.msk.bf16.mxu1 %vm935_vm10, %v6836_v20  ;;  %v2433_v5 = vrot.slane %v2431_v2, 4 }
  0xdb   : > { %5577 = vmatmul.mubr.msk.bf16.gmra.mxu0 %vm935_vm10, %v8374_v54 }
  0xdc   : > { %5563 = vmatmul.mubr.msk.bf16.gmra.mxu1 %vm935_vm10, %v5021_v29  ;;  %5580 = vmatprep.mubr.msk.bf16.mxu0 %vm935_vm10, %v6537_v13  ;;  %v2418_v13 = vshrl.u32 %v877_v44, 16 }
  0xdd   : > { %5590 = vmatprep.mubr.msk.bf16.mxu1 %vm935_vm10, %v8373_v37  ;;  %v2437_v37 = vshll.u32 %v879_v34, 16 }
  0xe3   : > { %5581 = vmatmul.mubr.msk.bf16.gmra.mxu0 %vm935_vm10, %v6603_v27  ;;  %v2420_v27 = vrot.slane %v2418_v13, 4 }
  0xe4   : > { %5591 = vmatmul.mubr.msk.bf16.vlgmr.msra.gmra.mxu1 %vm935_vm10, %v8375_v47  ;;  %5584 = vmatprep.mubr.msk.bf16.mxu0 %vm935_vm10, %v4997_v60  ;;  %v2439_v47 = vrot.slane %v2437_v37, 5 }
  0xe5   : > { %5594 = vmatprep.mubr.msk.bf16.mxu1 %vm935_vm10, %v6518_v6  ;;  %v2427_v6 = vshll.u32 %v878_v57, 16 }
  0xe7   : > { %v2429_v51 = vrot.slane %v2427_v6, 5 }
  0xeb   : > { %5585 = vmatmul.mubr.msk.bf16.gmra.mxu0 %vm935_vm10, %v5033_v50 }
  0xec   : > { %5595 = vmatmul.mubr.msk.bf16.gmra.mxu1 %vm935_vm10, %v6555_v41  ;;  %5612 = vmatprep.mubr.msk.bf16.mxu0 %vm935_vm10, %v6681_v63  ;;  %v2424_v41 = vor.u32 %v2423_v39, %v2420_v27 }
  0xed   : > { %5598 = vmatprep.mubr.msk.bf16.mxu1 %vm935_vm10, %v6651_v31  ;;  %v2434_v31 = vor.u32 %v2433_v5, %v2429_v51 }
  0xee   : > { %v2425_v63 = vrot.slane %v2424_v41, 4 }
  0xef   : > { %v2435_v54 = vrot.slane %v2434_v31, 4  ;;  %v3150_v31 = vld [vmem:[%s8298_s3] sm:$0xf] }
  0xf0   : > { %5803 = vmatprep.subr.msk.bf16.mxu1 %vm966_vm0, %v3150_v31 }
  0xf3   : > { %5613 = vmatmul.mubr.msk.bf16.vlgmr.msra.gmra.mxu0 %vm935_vm10, %v6711_v59  ;;  %v2430_v59 = vsel %vm6255_vm13, %v2425_v63, %v2429_v51 }
  0xf4   : > { %5599 = vmatmul.mubr.msk.bf16.gmra.mxu1 %vm935_vm10, %v6673_v17  ;;  %5616 = vmatprep.mubr.msk.bf16.mxu0 %vm935_vm10, %v6714_v7 }
  0xf5   : > { %5602 = vmatprep.mubr.msk.bf16.mxu1 %vm935_vm10, %v6740_v48  ;;  %v2440_v48 = vsel %vm6255_vm13, %v2435_v54, %v2439_v47  ;;  %v5113_v54 = vcombine.low %v3150_v31, %v3150_v31  ;;  %v3220_v47 = vsel %vm966_vm0, %v3150_v31, 0 }
  0xf6   : > { %v5044_v21 = vcombine.low %v2430_v59, %v2440_v48  ;;  %5633 = vmatpush3.bf16.msra.mxu1 %v3220_v47 }
  0xf8   : > { %v5438_v17 = vpop.f32.mrf.mxu0 }
  0xfa   : > { %v1004_v7 = vpop.f32.mrf.mxu0 }
  0xfb   : > { %5617 = vmatmul.mubr.msk.bf16.gmra.mxu0 %vm935_vm10, %v6756_v52 }
  0xfc   : > { %5603 = vmatmul.mubr.msk.bf16.gmra.mxu1 %vm935_vm10, %v6773_v56  ;;  %5620 = vmatprep.mubr.msk.bf16.mxu0 %vm935_vm10, %v6758_v18  ;;  %v5439_v35 = vpop.f32.mrf.mxu0  ;;  %v2590_v56 = vrot.slane %v878_v57, 5  ;;  %v2593_v18 = vrot.slane %v879_v34, 5 }
  0xfd   : > { %5606 = vmatprep.mubr.msk.bf16.mxu1 %vm935_vm10, %v5009_v19 }
  0xfe   : > { %v6957_v24 = vpop.f32.mrf.mxu0  ;;  %v2592_v60 = vrot.slane %v2590_v56, 4 }
 0x100   : > { %v5442_v52 = vpop.f32.mrf.mxu0 }
 0x102   : > { %v1020_v16 = vpop.f32.mrf.mxu0 }
 0x103   : > { %5621 = vmatmul.mubr.msk.bf16.gmra.mxu0 %vm935_vm10, %v6789_v49  ;;  %v2591_v49 = vsel %vm6546_vm1, %v5056_v25, %v2590_v56  ;;  %v332_v25 = vld [vmem:[#allocation3 + $0xc] sm:$0x1] }
 0x104   : > { %5607 = vmatmul.mubr.msk.bf16.gmra.mxu1 %vm935_vm10, %v5044_v21  ;;  %5624 = vmatprep.mubr.msk.bf16.mxu0 %vm935_vm10, %v6802_v23  ;;  %v5460_v28 = vpop.f32.mrf.mxu1  ;;  %v5443_v14 = vpop.f32.mrf.mxu0  ;;  %v2594_v23 = vsel %vm6546_vm1, %v2592_v60, %v2593_v18  ;;  %v6995_v21 = vrot.slane %v5113_v54, 2  ;;  %v333_v18 = vsel %vm6037_vm3, 0, %v332_v25 }
 0x105   : > { %v1508_v62 = vadd.f32 %v5460_v28, %v5438_v17  ;;  %v5057_v32 = vcombine.low %v2591_v49, %v2594_v23  ;;  %334 = vst [vmem:[#allocation3 + $0xc] sm:$0x1] %v333_v18  ;;  %v362_v49 = vld [vmem:[#allocation3 + $0x14] sm:$0x1] }
 0x106   : > { %v1427_v45 = vpop.f32.mrf.mxu1  ;;  %v6971_v53 = vpop.f32.mrf.mxu0  ;;  %5804 = vmatprep.subr.msk.bf16.mxu1 %vm966_vm0, %v6995_v21 }
 0x107   : > { %v1506_v8 = vadd.f32 %v1427_v45, %v1004_v7  ;;  %v329_v45 = vld [vmem:[#allocation3] sm:$0x1] }
 0x108   : > { %v5461_v26 = vpop.f32.mrf.mxu1 }
 0x109   : > { %v1509_v0 = vadd.f32 %v5461_v26, %v5439_v35 }
 0x10a   : > { %v6974_v11 = vpop.f32.mrf.mxu1 }
 0x10b   : > { %5625 = vmatmul.mubr.msk.bf16.gmra.mxu0 %vm935_vm10, %v6836_v20 }
 0x10c   : > { %5628 = vmatprep.mubr.msk.bf16.mxu0 %vm935_vm10, %v5021_v29 }
 0x10e   : > { %v5446_v55 = vpop.f32.mrf.mxu0 }
 0x110   : > { %v1036_v30 = vpop.f32.mrf.mxu0 }
 0x112   : > { %v5447_v20 = vpop.f32.mrf.mxu0 }
 0x113   : > { %5629 = vmatmul.mubr.msk.bf16.gmra.mxu0 %vm935_vm10, %v5057_v32  ;;  %v363_v32 = vsel %vm6057_vm5, 0, %v362_v49  ;;  %v344_v49 = vld [vmem:[#allocation3 + $0x3c] sm:$0x1] }
 0x114   : > { %v6976_v12 = vpop.f32.mrf.mxu0  ;;  %364 = vst [vmem:[#allocation3 + $0x14] sm:$0x1] %v363_v32 }
 0x11d   : > { %v5464_v43 = vpop.f32.mrf.mxu1 }
 0x11e   : > { %v1512_v42 = vadd.f32 %v5464_v43, %v5442_v52 }
 0x11f   : > { %v1443_v19 = vpop.f32.mrf.mxu1 }
 0x120   : > { %v1510_v9 = vadd.f32 %v1443_v19, %v1020_v16  ;;  %v5450_v36 = vpop.f32.mrf.mxu0 }
 0x121   : > { %v5465_v38 = vpop.f32.mrf.mxu1 }
 0x122   : > { %v1513_v46 = vadd.f32 %v5465_v38, %v5443_v14  ;;  %v1052_v1 = vpop.f32.mrf.mxu0  ;;  %v330_v14 = vsel %vm6037_vm3, 0, %v329_v45 }
 0x123   : > { %v6978_v15 = vpop.f32.mrf.mxu1  ;;  %331 = vst [vmem:[#allocation3] sm:$0x1] %v330_v14 }
 0x124   : > { %v5451_v22 = vpop.f32.mrf.mxu0 }
 0x126   : > { %v6980_v50 = vpop.f32.mrf.mxu0 }
 0x12d   : > { %v5468_v29 = vpop.f32.mrf.mxu1 }
 0x12e   : > { %v1516_v44 = vadd.f32 %v5468_v29, %v5446_v55  ;;  %v335_v29 = vld [vmem:[#allocation3 + $0x18] sm:$0x1] }
 0x12f   : > { %v1459_v57 = vpop.f32.mrf.mxu1 }
 0x130   : > { %v1514_v13 = vadd.f32 %v1459_v57, %v1036_v30  ;;  %v359_v30 = vld [vmem:[#allocation3 + $0x8] sm:$0x1] }
 0x131   : > { %v5469_v33 = vpop.f32.mrf.mxu1  ;;  %v360_v43 = vsel %vm6057_vm5, 0, %v359_v30 }
 0x132   : > { %v6982_v2 = vadd.f32 %v5469_v33, %v5447_v20  ;;  %361 = vst [vmem:[#allocation3 + $0x8] sm:$0x1] %v360_v43 }
 0x133   : > { %v5454_v6 = vpop.f32.mrf.mxu0  ;;  %v6984_v51 = vpop.f32.mrf.mxu1 }
 0x135   : > { %v1068_v27 = vpop.f32.mrf.mxu0 }
 0x137   : > { %v5455_v39 = vpop.f32.mrf.mxu0 }
 0x139   : > { %v6986_v5 = vpop.f32.mrf.mxu0 }
 0x13b   : > { %v5482_v34 = vpop.f32.mrf.mxu0 }
 0x13c   : > { %v6988_v41 = vadd.f32 %v5482_v34, %v1508_v62  ;;  %v336_v34 = vsel %vm6037_vm3, 0, %v335_v29 }
 0x13d   : > { %v1706_v63 = vpop.f32.mrf.mxu0  ;;  %337 = vst [vmem:[#allocation3 + $0x18] sm:$0x1] %v336_v34 }
 0x13e   : > { %v5472_v37 = vpop.f32.mrf.mxu1  ;;  %v1785_v59 = vadd.f32 %v1706_v63, %v1506_v8 }
 0x13f   : > { %v1520_v17 = vadd.f32 %v5472_v37, %v5450_v36  ;;  %v5483_v7 = vpop.f32.mrf.mxu0 }
 0x140   : > { %v1475_v48 = vpop.f32.mrf.mxu1  ;;  %v1788_v52 = vadd.f32 %v5483_v7, %v1509_v0 }
 0x141   : > { %v1518_v35 = vadd.f32 %v1475_v48, %v1052_v1  ;;  %v6997_v28 = vpop.f32.mrf.mxu0 }
 0x142   : > { %v5473_v56 = vpop.f32.mrf.mxu1 }
 0x143   : > { %v1521_v16 = vadd.f32 %v5473_v56, %v5451_v22  ;;  %v5486_v60 = vpop.f32.mrf.mxu0 }
 0x144   : > { %v7003_v62 = vadd.f32 %v5486_v60, %v1512_v42  ;;  %v7009_v23 = vpop.f32.mrf.mxu1  ;;  %v365_v60 = vld [vmem:[#allocation3 + $0x20] sm:$0x1] }
 0x145   : > { %v1722_v8 = vpop.f32.mrf.mxu0  ;;  %v366_v45 = vsel %vm6057_vm5, 0, %v365_v60 }
 0x146   : > { %v7007_v26 = vadd.f32 %v1722_v8, %v1510_v9  ;;  %v338_v9 = vld [vmem:[#allocation3 + $0x24] sm:$0x1]  ;;  %367 = vst [vmem:[#allocation3 + $0x20] sm:$0x1] %v366_v45  ;;  %v380_v45 = vld [vmem:[#allocation3 + $0x5c] sm:$0x1] }
 0x147   : > { %v5487_v0 = vpop.f32.mrf.mxu0  ;;  %v339_v1 = vsel %vm6037_vm3, 0, %v338_v9 }
 0x148   : > { %v7013_v55 = vadd.f32 %v5487_v0, %v1513_v46  ;;  %340 = vst [vmem:[#allocation3 + $0x24] sm:$0x1] %v339_v1 }
 0x149   : > { %v7015_v20 = vpop.f32.mrf.mxu0 }
 0x14b   : > { %v5490_v19 = vpop.f32.mrf.mxu0 }
 0x14c   : > { %v5476_v42 = vpop.f32.mrf.mxu1  ;;  %v7019_v36 = vadd.f32 %v5490_v19, %v1516_v44  ;;  %v374_v19 = vld [vmem:[#allocation3 + $0x44] sm:$0x1] }
 0x14d   : > { %v1524_v38 = vadd.f32 %v5476_v42, %v5454_v6  ;;  %v1738_v46 = vpop.f32.mrf.mxu0  ;;  %v368_v6 = vld [vmem:[#allocation3 + $0x2c] sm:$0x1]  ;;  %v375_v9 = vsel %vm6057_vm5, 0, %v374_v19 }
 0x14e   : > { %v1491_v22 = vpop.f32.mrf.mxu1  ;;  %v7023_v33 = vadd.f32 %v1738_v46, %v1514_v13  ;;  %376 = vst [vmem:[#allocation3 + $0x44] sm:$0x1] %v375_v9  ;;  %v371_v46 = vld [vmem:[#allocation3 + $0x38] sm:$0x1] }
 0x14f   : > { %v1522_v57 = vadd.f32 %v1491_v22, %v1068_v27  ;;  %v5491_v37 = vpop.f32.mrf.mxu0  ;;  %v369_v27 = vsel %vm6057_vm5, 0, %v368_v6 }
 0x150   : > { %v5477_v31 = vpop.f32.mrf.mxu1  ;;  %v7028_v44 = vadd.f32 %v5491_v37, %v6982_v2  ;;  %370 = vst [vmem:[#allocation3 + $0x2c] sm:$0x1] %v369_v27 }
 0x151   : > { %v1525_v63 = vadd.f32 %v5477_v31, %v5455_v39  ;;  %v7032_v47 = vpop.f32.mrf.mxu0  ;;  %v372_v31 = vsel %vm6057_vm5, 0, %v371_v46 }
 0x152   : > { %v7030_v54 = vpop.f32.mrf.mxu1  ;;  %373 = vst [vmem:[#allocation3 + $0x38] sm:$0x1] %v372_v31 }
 0x153   : > { %v5494_v48 = vpop.f32.mrf.mxu0 }
 0x154   : > { %v5504_v13 = vpop.f32.mrf.mxu1  ;;  %v7037_v56 = vadd.f32 %v5494_v48, %v1520_v17 }
 0x155   : > { %v1935_v7 = vadd.f32 %v5504_v13, %v6988_v41  ;;  %v1754_v39 = vpop.f32.mrf.mxu0  ;;  %v345_v41 = vsel %vm6037_vm3, 0, %v344_v49 }
 0x156   : > { %v1854_v25 = vpop.f32.mrf.mxu1  ;;  %v7039_v18 = vadd.f32 %v1754_v39, %v1518_v35  ;;  %346 = vst [vmem:[#allocation3 + $0x3c] sm:$0x1] %v345_v41 }
 0x157   : > { %v1933_v2 = vadd.f32 %v1854_v25, %v1785_v59  ;;  %v5495_v14 = vpop.f32.mrf.mxu0  ;;  %v341_v59 = vld [vmem:[#allocation3 + $0x30] sm:$0x1] }
 0x158   : > { %v5505_v8 = vpop.f32.mrf.mxu1  ;;  %v7043_v32 = vadd.f32 %v5495_v14, %v1521_v16  ;;  %v342_v35 = vsel %vm6037_vm3, 0, %v341_v59  ;;  %v381_v14 = vsel %vm6057_vm5, 0, %v380_v45 }
 0x159   : > { %v1936_v0 = vadd.f32 %v5505_v8, %v1788_v52  ;;  %v7049_v30 = vpop.f32.mrf.mxu0  ;;  %343 = vst [vmem:[#allocation3 + $0x30] sm:$0x1] %v342_v35  ;;  %v7080_v8 = vld [vmem:[%s8298_s3 + $0x4] sm:$0xf]  ;;  %382 = vst [vmem:[#allocation3 + $0x5c] sm:$0x1] %v381_v14 }
 0x15a   : > { %v7047_v17 = vpop.f32.mrf.mxu1  ;;  %5805 = vmatprep.subr.msk.bf16.mxu0 %vm966_vm0, %v7080_v8  ;;  %v3792_v59 = vsel %vm966_vm0, %v7080_v8, 0 }
 0x15b   : > { %v5498_v42 = vpop.f32.mrf.mxu0  ;;  %5669 = vmatpush3.bf16.msra.mxu0 %v3792_v59 }
 0x15c   : > { %v5508_v43 = vpop.f32.mrf.mxu1  ;;  %v7054_v16 = vadd.f32 %v5498_v42, %v1524_v38 }
 0x15d   : > { %v1939_v52 = vadd.f32 %v5508_v43, %v7003_v62  ;;  %v1770_v22 = vpop.f32.mrf.mxu0  ;;  %v350_v62 = vld [vmem:[#allocation3 + $0x54] sm:$0x1] }
 0x15e   : > { %v1870_v1 = vpop.f32.mrf.mxu1  ;;  %v7059_v34 = vadd.f32 %v1770_v22, %v1522_v57  ;;  %v351_v13 = vsel %vm6037_vm3, 0, %v350_v62  ;;  %v356_v22 = vld [vmem:[#allocation3 + $0x6c] sm:$0x1] }
 0x15f   : > { %v1937_v29 = vadd.f32 %v1870_v1, %v7007_v26  ;;  %v5499_v6 = vpop.f32.mrf.mxu0  ;;  %352 = vst [vmem:[#allocation3 + $0x54] sm:$0x1] %v351_v13  ;;  %v347_v26 = vld [vmem:[#allocation3 + $0x48] sm:$0x1] }
 0x160   : > { %v5509_v37 = vpop.f32.mrf.mxu1  ;;  %v7064_v27 = vadd.f32 %v5499_v6, %v1525_v63  ;;  %v348_v57 = vsel %vm6037_vm3, 0, %v347_v26 }
 0x161   : > { %v1940_v38 = vadd.f32 %v5509_v37, %v7013_v55  ;;  %v7070_v25 = vpop.f32.mrf.mxu0  ;;  %349 = vst [vmem:[#allocation3 + $0x48] sm:$0x1] %v348_v57 }
 0x162   : > { %v7068_v48 = vpop.f32.mrf.mxu1 }
 0x163   : > { %v5526_v60 = vpop.f32.mrf.mxu0 }
 0x164   : > { %v5512_v39 = vpop.f32.mrf.mxu1  ;;  %v7075_v63 = vadd.f32 %v5526_v60, %v1935_v7 }
 0x165   : > { %v1943_v55 = vadd.f32 %v5512_v39, %v7019_v36  ;;  %v2020_v41 = vpop.f32.mrf.mxu0  ;;  %v377_v36 = vld [vmem:[#allocation3 + $0x50] sm:$0x1] }
 0x166   : > { %v1886_v49 = vpop.f32.mrf.mxu1  ;;  %v7089_v35 = vadd.f32 %v2020_v41, %v1933_v2  ;;  %v378_v43 = vsel %vm6057_vm5, 0, %v377_v36  ;;  %v386_v41 = vld [vmem:[#allocation3 + $0x74] sm:$0x1] }
 0x167   : > { %v1941_v7 = vadd.f32 %v1886_v49, %v7023_v33  ;;  %v5527_v19 = vpop.f32.mrf.mxu0  ;;  %379 = vst [vmem:[#allocation3 + $0x50] sm:$0x1] %v378_v43  ;;  %v357_v33 = vsel %vm6037_vm3, 0, %v356_v22 }
 0x168   : > { %v5513_v42 = vpop.f32.mrf.mxu1  ;;  %v7094_v1 = vadd.f32 %v5527_v19, %v1936_v0  ;;  %358 = vst [vmem:[#allocation3 + $0x6c] sm:$0x1] %v357_v33 }
 0x169   : > { %v1944_v9 = vadd.f32 %v5513_v42, %v7028_v44  ;;  %v7098_v31 = vpop.f32.mrf.mxu0  ;;  %v353_v44 = vld [vmem:[#allocation3 + $0x60] sm:$0x1] }
 0x16a   : > { %v7096_v46 = vpop.f32.mrf.mxu1  ;;  %v354_v39 = vsel %vm6037_vm3, 0, %v353_v44 }
 0x16b   : > { %v5530_v37 = vpop.f32.mrf.mxu0  ;;  %355 = vst [vmem:[#allocation3 + $0x60] sm:$0x1] %v354_v39 }
 0x16c   : > { %v5516_v2 = vpop.f32.mrf.mxu1  ;;  %v7103_v62 = vadd.f32 %v5530_v37, %v1939_v52 }
 0x16d   : > { %v1947_v6 = vadd.f32 %v5516_v2, %v7037_v56  ;;  %v2036_v26 = vpop.f32.mrf.mxu0 }
 0x16e   : > { %v1902_v13 = vpop.f32.mrf.mxu1  ;;  %v7106_v57 = vadd.f32 %v2036_v26, %v1937_v29  ;;  %v383_v29 = vld [vmem:[#allocation3 + $0x68] sm:$0x1] }
 0x16f   : > { %v1945_v0 = vadd.f32 %v1902_v13, %v7039_v18  ;;  %v5531_v45 = vpop.f32.mrf.mxu0  ;;  %v387_v18 = vsel %vm6057_vm5, 0, %v386_v41 }
 0x170   : > { %v5517_v60 = vpop.f32.mrf.mxu1  ;;  %v7111_v49 = vadd.f32 %v5531_v45, %v1940_v38  ;;  %388 = vst [vmem:[#allocation3 + $0x74] sm:$0x1] %v387_v18 }
 0x171   : > { %v1948_v14 = vadd.f32 %v5517_v60, %v7043_v32  ;;  %v7115_v52 = vpop.f32.mrf.mxu0  ;;  %v384_v32 = vsel %vm6057_vm5, 0, %v383_v29 }
 0x172   : > { %v7113_v56 = vpop.f32.mrf.mxu1  ;;  %385 = vst [vmem:[#allocation3 + $0x68] sm:$0x1] %v384_v32 }
 0x173   : > { %v5534_v36 = vpop.f32.mrf.mxu0 }
 0x174   : > { %v5520_v59 = vpop.f32.mrf.mxu1  ;;  %v7120_v42 = vadd.f32 %v5534_v36, %v1943_v55 }
 0x175   : > { %v1951_v43 = vadd.f32 %v5520_v59, %v7054_v16  ;;  %v2052_v19 = vpop.f32.mrf.mxu0 }
 0x176   : > { %v1918_v38 = vpop.f32.mrf.mxu1  ;;  %v7125_v33 = vadd.f32 %v2052_v19, %v1941_v7 }
 0x177   : > { %v1949_v22 = vadd.f32 %v1918_v38, %v7059_v34  ;;  %v5535_v37 = vpop.f32.mrf.mxu0 }
 0x178   : > { %v5521_v2 = vpop.f32.mrf.mxu1  ;;  %v7128_v26 = vadd.f32 %v5535_v37, %v1944_v9 }
 0x179   : > { %v1952_v13 = vadd.f32 %v5521_v2, %v7064_v27  ;;  %v7132_v55 = vpop.f32.mrf.mxu0 }
 0x17a   : > { %v7130_v16 = vpop.f32.mrf.mxu1 }
 0x17b   : > { %v5538_v10 = vpop.f32.mrf.mxu0 }
 0x17c   : > { %v7134_v44 = vpop.f32.mrf.mxu1  ;;  %v7136_v39 = vadd.f32 %v5538_v10, %v1947_v6 }
 0x17d   : > { %v2068_v34 = vpop.f32.mrf.mxu0 }
 0x17e   : > { %v7138_v60 = vpop.f32.mrf.mxu1  ;;  %v7140_v7 = vadd.f32 %v2068_v34, %v1945_v0 }
 0x17f   : > { %v5539_v41 = vpop.f32.mrf.mxu0 }
 0x180   : > { %8376 = vst [vmem:[#allocation8_spill] sm:$0xff] %v7140_v7  ;;  %v7142_v45 = vpop.f32.mrf.mxu1  ;;  %v7144_v27 = vadd.f32 %v5539_v41, %v1948_v14 }
 0x181   : > { %v7148_v59 = vpop.f32.mrf.mxu0 }
 0x182   : > { %8377 = vst [vmem:[#allocation7_spill] sm:$0xff] %v7144_v27  ;;  %v7146_v9 = vpop.f32.mrf.mxu1 }
 0x183   : > { %v5542_v18 = vpop.f32.mrf.mxu0 }
 0x184   : > { %v7150_v36 = vpop.f32.mrf.mxu1  ;;  %v7152_v29 = vadd.f32 %v5542_v18, %v1951_v43 }
 0x185   : > { %v2084_v32 = vpop.f32.mrf.mxu0 }
 0x186   : > { %8378 = vst [vmem:[#allocation10_spill] sm:$0xff] %v7152_v29  ;;  %v7154_v6 = vpop.f32.mrf.mxu1  ;;  %v7156_v38 = vadd.f32 %v2084_v32, %v1949_v22 }
 0x187   : > { %v5543_v19 = vpop.f32.mrf.mxu0 }
 0x188   : > { %8379 = vst [vmem:[#allocation12_spill] sm:$0xff] %v7156_v38  ;;  %v7158_v0 = vpop.f32.mrf.mxu1  ;;  %v7160_v2 = vadd.f32 %v5543_v19, %v1952_v13 }
 0x189   : > { %v7164_v37 = vpop.f32.mrf.mxu0 }
 0x18a   : > { %8380 = vst [vmem:[#allocation14_spill] sm:$0xff] %v7160_v2  ;;  %v7162_v14 = vpop.f32.mrf.mxu1  ;;  %v7197_v2 = vld [vmem:[%s8298_s3 + $0x8] sm:$0xf] }
 0x18b   : > { %v7168_v34 = vpop.f32.mrf.mxu0  ;;  %5807 = vmatprep.subr.msk.bf16.mxu0 %vm966_vm0, %v7197_v2 }
 0x18c   : > { %v7166_v10 = vpop.f32.mrf.mxu1 }
 0x18d   : > { %v7172_v41 = vpop.f32.mrf.mxu0 }
 0x18e   : > { %v7170_v43 = vpop.f32.mrf.mxu1 }
 0x18f   : > { %v7176_v22 = vpop.f32.mrf.mxu0 }
 0x190   : > { %v7174_v18 = vpop.f32.mrf.mxu1 }
 0x191   : > { %v7180_v13 = vpop.f32.mrf.mxu0 }
 0x192   : > { %v7178_v32 = vpop.f32.mrf.mxu1 }
 0x193   : > { %v7184_v40 = vpop.f32.mrf.mxu0 }
 0x194   : > { %v7182_v19 = vpop.f32.mrf.mxu1  ;;  %8382 = vst [vmem:[#allocation15_spill] sm:$0xff] %v7184_v40 }
 0x195   : > { %8381 = vst [vmem:[#allocation11_spill] sm:$0xff] %v7182_v19  ;;  %v7188_v4 = vpop.f32.mrf.mxu0 }
 0x196   : > { %v7186_v58 = vpop.f32.mrf.mxu1  ;;  %8384 = vst [vmem:[#allocation17_spill] sm:$0xff] %v7188_v4 }
 0x197   : > { %8383 = vst [vmem:[#allocation13_spill] sm:$0xff] %v7186_v58  ;;  %v7192_v61 = vpop.f32.mrf.mxu0 }
 0x198   : > { %v7190_v3 = vpop.f32.mrf.mxu1  ;;  %8386 = vst [vmem:[#allocation19_spill] sm:$0xff] %v7192_v61 }
 0x199   : > { %8385 = vst [vmem:[#allocation16_spill] sm:$0xff] %v7190_v3  ;;  %v7203_v29 = vpop.f32.mrf.mxu0 }
 0x19a   : > { %v7201_v38 = vpop.f32.mrf.mxu1  ;;  %8388 = vst [vmem:[#allocation21_spill] sm:$0xff] %v7203_v29 }
 0x19b   : > { %8387 = vst [vmem:[#allocation20_spill] sm:$0xff] %v7201_v38  ;;  %v7207_v40 = vpop.f32.mrf.mxu0  ;;  %v1507_v38 = vadd.f32 %v6974_v11, %v6957_v24  ;;  %v5147_v24 = vcombine.low %v7080_v8, %v7080_v8  ;;  %v1519_v11 = vadd.f32 %v7009_v23, %v6980_v50  ;;  %v435_v23 = vstv %s6658_s6 }
 0x19c   : > { %v7205_v27 = vpop.f32.mrf.mxu1  ;;  %8390 = vst [vmem:[#allocation23_spill] sm:$0xff] %v7207_v40  ;;  %v1511_v40 = vadd.f32 %v6978_v15, %v6971_v53  ;;  %vm7454_vm4 = vcmp.eq.s32.totalorder %v435_v23, 1 }
 0x19d   : > { %8389 = vst [vmem:[#allocation22_spill] sm:$0xff] %v7205_v27  ;;  %v7211_v3 = vpop.f32.mrf.mxu0  ;;  %v1798_v8 = vadd.f32 %v7049_v30, %v1519_v11  ;;  %v7267_v30 = vsel %vm966_vm0, %v6995_v21, 0  ;;  %v2257_v21 = vadd.f32 %v7154_v6, %v7106_v57 }
 0x19e   : > { %v7209_v4 = vpop.f32.mrf.mxu1  ;;  %v1790_v53 = vadd.f32 %v7015_v20, %v1511_v40 }
 0x19f   : > { %v7215_v58 = vpop.f32.mrf.mxu0 }
 0x1a0   : > { %v7213_v61 = vpop.f32.mrf.mxu1  ;;  %8392 = vst [vmem:[#allocation25_spill] sm:$0xff] %v7215_v58  ;;  %v1786_v58 = vadd.f32 %v6997_v28, %v1507_v38  ;;  %v400_v38 = vstv %s6086_s14 }
 0x1a1   : > { %8391 = vst [vmem:[#allocation24_spill] sm:$0xff] %v7213_v61  ;;  %v7219_v19 = vpop.f32.mrf.mxu0  ;;  %v1515_v61 = vadd.f32 %v6984_v51, %v6976_v12  ;;  %vm7305_vm2 = vcmp.eq.s32.totalorder %v400_v38, 1 }
 0x1a2   : > { %v7217_v7 = vpop.f32.mrf.mxu1  ;;  %8394 = vst [vmem:[#allocation27_spill] sm:$0xff] %v7219_v19  ;;  %v1934_v12 = vadd.f32 %v7047_v17, %v1786_v58 }
 0x1a3   : > { %8393 = vst [vmem:[#allocation26_spill] sm:$0xff] %v7217_v7  ;;  %v7225_v27 = vpop.f32.mrf.mxu0  ;;  %v1794_v15 = vadd.f32 %v7032_v47, %v1515_v61  ;;  %v7260_v61 = vrot.slane %v5147_v24, 2  ;;  %v8401_v24 = vld [vmem:[#allocation17_spill] sm:$0xff] }
 0x1a4   : > { %v7223_v29 = vpop.f32.mrf.mxu1  ;;  %8395 = vst [vmem:[#allocation28_spill] sm:$0xff] %v7225_v27  ;;  %v1523_v27 = vadd.f32 %v7030_v54, %v6986_v5  ;;  %v2100_v40 = vadd.f32 %v7098_v31, %v1934_v12  ;;  %v1946_v54 = vadd.f32 %v7113_v56, %v1798_v8  ;;  %v2401_v11 = vadd.f32 %v8401_v24, %v2257_v21 }
 0x1a5   : > { %v7234_v19 = vpop.f32.mrf.mxu0  ;;  %v1942_v5 = vadd.f32 %v7096_v46, %v1794_v15  ;;  %v2256_v46 = vadd.f32 %v7142_v45, %v7094_v1  ;;  %v2263_v1 = vadd.f32 %v7166_v10, %v7120_v42  ;;  %v8398_v10 = vld [vmem:[#allocation8_spill] sm:$0xff]  ;;  %v7318_v8 = vsel %vm966_vm0, %v7197_v2, 0 }
 0x1a6   : > { %v7232_v7 = vpop.f32.mrf.mxu1  ;;  %8396 = vst [vmem:[#allocation29_spill] sm:$0xff] %v7234_v19  ;;  %v1938_v19 = vadd.f32 %v7068_v48, %v1790_v53  ;;  %v1802_v50 = vadd.f32 %v7070_v25, %v1523_v27  ;;  %v2255_v48 = vadd.f32 %v7134_v44, %v7075_v63  ;;  %v2253_v25 = vadd.f32 %v7138_v60, %v7089_v35 }
 0x1a7   : > { %v7247_v28 = vpop.f32.mrf.mxu0  ;;  %v2108_v31 = vadd.f32 %v7132_v55, %v1942_v5  ;;  %v2112_v63 = vadd.f32 %v7148_v59, %v1946_v54  ;;  %v2260_v35 = vadd.f32 %v7158_v0, %v7111_v49  ;;  %v5167_v59 = vcombine.low %v7197_v2, %v7197_v2 }
 0x1a8   : > { %v7245_v51 = vpop.f32.mrf.mxu1  ;;  %v1950_v47 = vadd.f32 %v7130_v16, %v1802_v50  ;;  %v2104_v17 = vadd.f32 %v7115_v52, %v1938_v19  ;;  %v2254_v16 = vadd.f32 %v7146_v9, %v2100_v40  ;;  %v2259_v52 = vadd.f32 %v7150_v36, %v7103_v62  ;;  %v8407_v50 = vld [vmem:[#allocation20_spill] sm:$0xff]  ;;  %v8408_v40 = vld [vmem:[#allocation21_spill] sm:$0xff] }
 0x1a9   : > { %v7258_v58 = vpop.f32.mrf.mxu0  ;;  %v2261_v62 = vadd.f32 %v7170_v43, %v7125_v33  ;;  %v2399_v9 = vadd.f32 %v7168_v34, %v2255_v48  ;;  %v2397_v57 = vadd.f32 %v7172_v41, %v2253_v25  ;;  %v2264_v49 = vadd.f32 %v7174_v18, %v7128_v26  ;;  %v8397_v33 = vld [vmem:[#allocation11_spill] sm:$0xff]  ;;  %v8399_v34 = vld [vmem:[#allocation13_spill] sm:$0xff]  ;;  %v8410_v48 = vld [vmem:[#allocation22_spill] sm:$0xff] }
 0x1aa   : > { %v7256_v20 = vpop.f32.mrf.mxu1  ;;  %v2258_v44 = vadd.f32 %v7162_v14, %v2104_v17  ;;  %v2116_v55 = vadd.f32 %v7164_v37, %v1950_v47  ;;  %v2262_v36 = vadd.f32 %v7178_v32, %v2108_v31  ;;  %v2400_v42 = vadd.f32 %v7176_v22, %v2256_v46  ;;  %v8400_v41 = vld [vmem:[#allocation15_spill] sm:$0xff]  ;;  %v8405_v22 = vld [vmem:[#allocation16_spill] sm:$0xff]  ;;  %v8409_v17 = vld [vmem:[#allocation10_spill] sm:$0xff] }
 0x1ab   : > { %v5586_v27 = vpop.f32.mrf.mxu0  ;;  %v2398_v6 = vadd.f32 %v7180_v13, %v2254_v16  ;;  %v2267_v37 = vadd.f32 %v8397_v33, %v7136_v39  ;;  %v2265_v43 = vadd.f32 %v8399_v34, %v8398_v10  ;;  %v2403_v19 = vadd.f32 %v8400_v41, %v2259_v52  ;;  %v8404_v18 = vld [vmem:[#allocation7_spill] sm:$0xff]  ;;  %v8411_v46 = vld [vmem:[#allocation12_spill] sm:$0xff]  ;;  %v8415_v33 = vld [vmem:[#allocation25_spill] sm:$0xff] }
 0x1ac   : > { %v5596_v56 = vpop.f32.mrf.mxu1  ;;  %v2268_v32 = vadd.f32 %v8405_v22, %v8404_v18  ;;  %v8406_v13 = vld [vmem:[#allocation19_spill] sm:$0xff]  ;;  %v7314_v39 = vsel %vm966_vm0, %v7260_v61, 0  ;;  %v2266_v38 = vadd.f32 %v8407_v50, %v2112_v63  ;;  %v2569_v5 = vadd.f32 %v7223_v29, %v2399_v9  ;;  %v8413_v63 = vld [vmem:[#allocation14_spill] sm:$0xff] }
 0x1ad   : > { %v2382_v45 = vpop.f32.mrf.mxu0  ;;  %v2404_v53 = vadd.f32 %v8406_v13, %v2260_v35  ;;  %v2402_v54 = vadd.f32 %v8408_v40, %v2258_v44  ;;  %v7323_v47 = vrot.slane %v5167_v59, 2  ;;  %v2271_v25 = vadd.f32 %v8410_v48, %v8409_v17  ;;  %v8412_v16 = vld [vmem:[#allocation23_spill] sm:$0xff]  ;;  %v8414_v44 = vld [vmem:[#allocation24_spill] sm:$0xff]  ;;  %v8419_v18 = vld [vmem:[#allocation29_spill] sm:$0xff] }
 0x1ae   : > { %v2504_v60 = vpop.f32.mrf.mxu1  ;;  %v2269_v31 = vadd.f32 %v7209_v4, %v8411_v46  ;;  %v2407_v52 = vadd.f32 %v8412_v16, %v2263_v1  ;;  %v2405_v21 = vadd.f32 %v7211_v3, %v2261_v62  ;;  %v7334_v29 = vld [vmem:[%s8297_s2] ss:$0 sm:$0xff]  ;;  %v2272_v9 = vadd.f32 %v8414_v44, %v8413_v63  ;;  %v8416_v4 = vld [vmem:[#allocation26_spill] sm:$0xff]  ;;  %v8418_v3 = vld [vmem:[#allocation28_spill] sm:$0xff] }
 0x1af   : > { %v5587_v14 = vpop.f32.mrf.mxu0  ;;  %v2567_v59 = vadd.f32 %v7232_v7, %v2397_v57  ;;  %v2408_v10 = vadd.f32 %v8415_v33, %v2264_v49  ;;  %v2270_v41 = vadd.f32 %v8416_v4, %v2116_v55  ;;  %v8417_v1 = vld [vmem:[#allocation27_spill] sm:$0xff]  ;;  %v2411_v62 = vadd.f32 %v8418_v3, %v2267_v37  ;;  %v3028_v4 = vld [vmem:[#allocation3 + $0xc] sm:$0xf] }
 0x1b0   : > { %v5597_v0 = vpop.f32.mrf.mxu1  ;;  %v2406_v24 = vadd.f32 %v8417_v1, %v2262_v36  ;;  %v2409_v22 = vadd.f32 %v8419_v18, %v2265_v43  ;;  %v2570_v40 = vadd.f32 %v7245_v51, %v2400_v42  ;;  %v2412_v17 = vadd.f32 %v7247_v28, %v2268_v32 }
 0x1b1   : > { %v2385_v15 = vpop.f32.mrf.mxu0  ;;  %v2568_v57 = vadd.f32 %v7256_v20, %v2398_v6  ;;  %v2573_v49 = vadd.f32 %v5596_v56, %v2403_v19  ;;  %v2410_v55 = vadd.f32 %v7258_v58, %v2266_v38  ;;  %v7349_v36 = vadd.f32 %v5586_v27, %v2271_v25  ;;  %v7363_v58 = vld [vmem:[%s8298_s3 + $0xc] sm:$0xf] }
 0x1b2   : > { %v2507_v12 = vpop.f32.mrf.mxu1  ;;  %v2571_v46 = vadd.f32 %v2504_v60, %v2401_v11  ;;  %v7352_v51 = vadd.f32 %v5597_v0, %v2404_v53  ;;  %v7356_v32 = vadd.f32 %v2382_v45, %v2269_v31  ;;  %v7358_v20 = vadd.f32 %v5587_v14, %v2272_v9 }
 0x1b3   : > { %v5614_v35 = vpop.f32.mrf.mxu0  ;;  %v7354_v28 = vadd.f32 %v2507_v12, %v2402_v54  ;;  %v7365_v27 = vadd.f32 %v2385_v15, %v2270_v41  ;;  %v7380_v25 = vsel %vm966_vm0, %v7363_v58, 0 }
 0x1b4   : > { %v5600_v2 = vpop.f32.mrf.mxu1  ;;  %v2719_v34 = vadd.f32 %v5614_v35, %v2569_v5 }
 0x1b5   : > { %v2638_v50 = vpop.f32.mrf.mxu0  ;;  %v7368_v19 = vadd.f32 %v5600_v2, %v2407_v52 }
 0x1b6   : > { %v2520_v13 = vpop.f32.mrf.mxu1  ;;  %v2746_v48 = vadd.f32 %v7334_v29, %v2719_v34  ;;  %v2717_v7 = vadd.f32 %v2638_v50, %v2567_v59 }
 0x1b7   : > { %v5615_v37 = vpop.f32.mrf.mxu0  ;;  %v7370_v11 = vadd.f32 %v2520_v13, %v2405_v21 }
 0x1b8   : > { %v5601_v5 = vpop.f32.mrf.mxu1  ;;  %v2766_v43 = vmax.f32 %v2746_v48, 0.0  ;;  %v2744_v16 = vadd.f32 %v7334_v29, %v2717_v7  ;;  %v2720_v35 = vadd.f32 %v5615_v37, %v2570_v40 }
 0x1b9   : > { %v2641_v56 = vpop.f32.mrf.mxu0  ;;  %v7372_v45 = vadd.f32 %v5601_v5, %v2408_v10 }
 0x1ba   : > { %v2523_v42 = vpop.f32.mrf.mxu1  ;;  %v5236_v60 = vpack.c.bf16 %v2766_v43, %v2766_v43  ;;  %v2764_v6 = vmax.f32 %v2744_v16, 0.0  ;;  %v2747_v0 = vadd.f32 %v7334_v29, %v2720_v35  ;;  %v2718_v53 = vadd.f32 %v2641_v56, %v2568_v57  ;;  %v2812_v16 = vld [vmem:[#allocation3] sm:$0xf] }
 0x1bb   : > { %v5618_v12 = vpop.f32.mrf.mxu0  ;;  %v7374_v38 = vadd.f32 %v2523_v42, %v2406_v24 }
 0x1bc   : > { %v5604_v14 = vpop.f32.mrf.mxu1  ;;  %v2868_v54 = vshrl.u32 %v5236_v60, 16  ;;  %v2784_v15 = vsel %vm7305_vm2, %v2764_v6, 0.0  ;;  %v2767_v2 = vmax.f32 %v2747_v0, 0.0  ;;  %v2745_v21 = vadd.f32 %v7334_v29, %v2718_v53 }
 0x1bd   : > { %v5234_v52 = vpack.c.bf16 %v2784_v15, %v2784_v15  ;;  %v2723_v63 = vadd.f32 %v5618_v12, %v2573_v49  ;;  %v2654_v44 = vpop.f32.mrf.mxu0  ;;  %v7383_v9 = vadd.f32 %v5604_v14, %v2411_v62  ;;  %v2871_v10 = vshll.u32 %v5236_v60, 16  ;;  %v3032_v12 = vld [vmem:[#allocation3 + $0x14] sm:$0x1] }
 0x1be   : > { %v2536_v31 = vpop.f32.mrf.mxu1  ;;  %v2870_v33 = vrot.slane %v2868_v54, 7  ;;  %v5237_v1 = vpack.c.bf16 %v2767_v2, %v2767_v2  ;;  %v2765_v24 = vmax.f32 %v2745_v21, 0.0  ;;  %v2721_v3 = vadd.f32 %v2654_v44, %v2571_v46 }
 0x1bf   : > { %v7385_v59 = vadd.f32 %v2536_v31, %v2409_v22  ;;  %v2793_v41 = vshrl.u32 %v5234_v52, 16  ;;  %v5619_v18 = vpop.f32.mrf.mxu0  ;;  %v2796_v40 = vshll.u32 %v5234_v52, 16  ;;  %v2750_v48 = vadd.f32 %v7334_v29, %v2723_v63 }
 0x1c0   : > { %v5605_v34 = vpop.f32.mrf.mxu1  ;;  %v2873_v50 = vor.u32 %v2871_v10, %v2870_v33  ;;  %v2874_v62 = vrot.slane %v2870_v33, 4  ;;  %v2876_v22 = vshrl.u32 %v5237_v1, 16  ;;  %v2785_v49 = vsel %vm7305_vm2, %v2765_v24, 0.0 }
 0x1c1   : > { %v7387_v13 = vadd.f32 %v5605_v34, %v2412_v17  ;;  %v2795_v57 = vrot.slane %v2793_v41, 7  ;;  %v2657_v5 = vpop.f32.mrf.mxu0  ;;  %v2879_v46 = vshll.u32 %v5237_v1, 16  ;;  %v5235_v35 = vpack.c.bf16 %v2785_v49, %v2785_v49 }
 0x1c2   : > { %v2539_v7 = vpop.f32.mrf.mxu1  ;;  %v3029_v43 = vsel %vm6132_vm8, %v2873_v50, %v3028_v4  ;;  %v2770_v17 = vmax.f32 %v2750_v48, 0.0  ;;  %v2878_v6 = vrot.slane %v2876_v22, 7  ;;  %v2748_v0 = vadd.f32 %v7334_v29, %v2721_v3  ;;  %v2816_v3 = vld [vmem:[#allocation3 + $0x8] sm:$0x1] }
 0x1c3   : > { %v7394_v42 = vadd.f32 %v2539_v7, %v2410_v55  ;;  %3030 = vst [vmem:[#allocation3 + $0xc] sm:$0xf] %v3029_v43  ;;  %v2798_v60 = vor.u32 %v2796_v40, %v2795_v57  ;;  %v5622_v14 = vpop.f32.mrf.mxu0  ;;  %v2799_v53 = vrot.slane %v2795_v57, 4  ;;  %v2801_v54 = vshrl.u32 %v5235_v35, 16 }
 0x1c4   : > { %v5608_v56 = vpop.f32.mrf.mxu1  ;;  %v5240_v15 = vpack.c.bf16 %v2770_v17, %v2770_v17  ;;  %v2881_v55 = vor.u32 %v2879_v46, %v2878_v6  ;;  %v2883_v2 = vrot.slane %v2878_v6, 4  ;;  %v2768_v21 = vmax.f32 %v2748_v0, 0.0 }
 0x1c5   : > { %v7398_v26 = vadd.f32 %v5608_v56, %v7349_v36  ;;  %v2813_v31 = vsel %vm6132_vm8, %v2798_v60, %v2812_v16  ;;  %v2670_v63 = vpop.f32.mrf.mxu0  ;;  %v2803_v33 = vrot.slane %v2801_v54, 7  ;;  %v2804_v10 = vshll.u32 %v5235_v35, 16 }
 0x1c6   : > { %v2552_v52 = vpop.f32.mrf.mxu1  ;;  %2814 = vst [vmem:[#allocation3] sm:$0xf] %v2813_v31  ;;  %v2902_v36 = vshrl.u32 %v5240_v15, 16  ;;  %v2882_v4 = vsel %vm6143_vm9, %v2874_v62, %v2881_v55  ;;  %v3033_v1 = vsel %vm6037_vm3, %v2883_v2, %v3032_v12  ;;  %v5238_v50 = vpack.c.bf16 %v2768_v21, %v2768_v21  ;;  %v3042_v62 = vld [vmem:[#allocation3 + $0x24] sm:$0xf] }
 0x1c7   : > { %v7403_v44 = vadd.f32 %v2552_v52, %v7356_v32  ;;  %v2724_v40 = vadd.f32 %v5619_v18, %v7352_v51  ;;  %v5623_v48 = vpop.f32.mrf.mxu0  ;;  %3031 = vst.msk [vmem:[#allocation3 + $0x10] sm:$0xf] %vm495_vm7, %v2882_v4  ;;  %3034 = vst [vmem:[#allocation3 + $0x14] sm:$0x1] %v3033_v1  ;;  %v2806_v32 = vor.u32 %v2804_v10, %v2803_v33  ;;  %v2808_v7 = vrot.slane %v2803_v33, 4 }
 0x1c8   : > { %v5609_v24 = vpop.f32.mrf.mxu1  ;;  %v7411_v57 = vrot.slane %v2902_v36, 7  ;;  %v2905_v22 = vshll.u32 %v5240_v15, 16  ;;  %v2885_v43 = vshrl.u32 %v5238_v50, 16  ;;  %v2722_v46 = vadd.f32 %v2657_v5, %v7354_v28 }
 0x1c9   : > { %v7414_v49 = vadd.f32 %v5609_v24, %v7358_v20  ;;  %v2751_v16 = vadd.f32 %v7334_v29, %v2724_v40  ;;  %v2673_v35 = vpop.f32.mrf.mxu0  ;;  %v2807_v51 = vsel %vm6143_vm9, %v2799_v53, %v2806_v32  ;;  %v2817_v18 = vsel %vm6037_vm3, %v2808_v7, %v2816_v3  ;;  %v3035_v53 = vld [vmem:[#allocation3 + $0x18] sm:$0xf] }
 0x1ca   : > { %v2907_v17 = vor.u32 %v2905_v22, %v7411_v57  ;;  %v2888_v56 = vshll.u32 %v5238_v50, 16  ;;  %2815 = vst.msk [vmem:[#allocation3 + $0x4] sm:$0xf] %vm495_vm7, %v2807_v51  ;;  %2818 = vst [vmem:[#allocation3 + $0x8] sm:$0x1] %v2817_v18  ;;  %v2908_v20 = vrot.slane %v7411_v57, 4  ;;  %v2749_v0 = vadd.f32 %v7334_v29, %v2722_v46 }
 0x1cb   : > { %v2887_v60 = vrot.slane %v2885_v43, 7  ;;  %v2771_v6 = vmax.f32 %v2751_v16, 0.0  ;;  %v5626_v28 = vpop.f32.mrf.mxu0  ;;  %v2727_v12 = vadd.f32 %v5622_v14, %v7368_v19  ;;  %v2725_v54 = vadd.f32 %v2670_v63, %v7370_v11  ;;  %v3046_v57 = vld [vmem:[#allocation3 + $0x2c] sm:$0x1]  ;;  %v3039_v18 = vld [vmem:[#allocation3 + $0x20] sm:$0x1] }
 0x1cc   : > { %v3043_v5 = vsel %vm6132_vm8, %v2907_v17, %v3042_v62  ;;  %v2728_v15 = vadd.f32 %v5623_v48, %v7372_v45  ;;  %v2769_v2 = vmax.f32 %v2749_v0, 0.0  ;;  %v2726_v4 = vadd.f32 %v2673_v35, %v7374_v38 }
 0x1cd   : > { %3044 = vst [vmem:[#allocation3 + $0x24] sm:$0xf] %v3043_v5  ;;  %v2890_v31 = vor.u32 %v2888_v56, %v2887_v60  ;;  %v2891_v52 = vrot.slane %v2887_v60, 4  ;;  %v5241_v55 = vpack.c.bf16 %v2771_v6, %v2771_v6  ;;  %v7431_v21 = vpop.f32.mrf.mxu0  ;;  %v2754_v33 = vadd.f32 %v7334_v29, %v2727_v12 }
 0x1ce   : > { %v2752_v10 = vadd.f32 %v7334_v29, %v2725_v54  ;;  %v2755_v36 = vadd.f32 %v7334_v29, %v2728_v15  ;;  %v5239_v14 = vpack.c.bf16 %v2769_v2, %v2769_v2  ;;  %v2753_v3 = vadd.f32 %v7334_v29, %v2726_v4 }
 0x1cf   : > { %v3036_v19 = vsel %vm6132_vm8, %v2890_v31, %v3035_v53  ;;  %v2910_v11 = vshrl.u32 %v5241_v55, 16  ;;  %v2913_v45 = vshll.u32 %v5241_v55, 16  ;;  %v2774_v63 = vmax.f32 %v2754_v33, 0.0  ;;  %v5627_v7 = vpop.f32.mrf.mxu0  ;;  %v3049_v33 = vld [vmem:[#allocation3 + $0x30] sm:$0xf] }
 0x1d0   : > { %3037 = vst [vmem:[#allocation3 + $0x18] sm:$0xf] %v3036_v19  ;;  %v2772_v1 = vmax.f32 %v2752_v10, 0.0  ;;  %v2775_v24 = vmax.f32 %v2755_v36, 0.0  ;;  %v2893_v40 = vshrl.u32 %v5239_v14, 16  ;;  %v2896_v48 = vshll.u32 %v5239_v14, 16 }
 0x1d1   : > { %v2912_v50 = vrot.slane %v2910_v11, 7  ;;  %v2731_v32 = vadd.f32 %v5626_v28, %v7383_v9  ;;  %v5244_v38 = vpack.c.bf16 %v2774_v63, %v2774_v63  ;;  %v2773_v43 = vmax.f32 %v2753_v3, 0.0  ;;  %v2689_v53 = vpop.f32.mrf.mxu0 }
 0x1d2   : > { %v5242_v22 = vpack.c.bf16 %v2772_v1, %v2772_v1  ;;  %v5245_v62 = vpack.c.bf16 %v2775_v24, %v2775_v24  ;;  %v2895_v35 = vrot.slane %v2893_v40, 7 }
 0x1d3   : > { %v2915_v16 = vor.u32 %v2913_v45, %v2912_v50  ;;  %v2917_v46 = vrot.slane %v2912_v50, 4  ;;  %v2758_v51 = vadd.f32 %v7334_v29, %v2731_v32  ;;  %v2936_v17 = vshrl.u32 %v5244_v38, 16 }
 0x1d4   : > { %v2939_v56 = vshll.u32 %v5244_v38, 16  ;;  %v2919_v60 = vshrl.u32 %v5242_v22, 16  ;;  %v2922_v6 = vshll.u32 %v5242_v22, 16  ;;  %v2898_v28 = vor.u32 %v2896_v48, %v2895_v35  ;;  %v3060_v48 = vld [vmem:[#allocation3 + $0x44] sm:$0x1] }
 0x1d5   : > { %v2916_v0 = vsel %vm6143_vm9, %v2908_v20, %v2915_v16  ;;  %v3047_v9 = vsel %vm6037_vm3, %v2917_v46, %v3046_v57  ;;  %v2900_v5 = vrot.slane %v2895_v35, 4  ;;  %v2938_v12 = vrot.slane %v2936_v17, 7  ;;  %v3056_v20 = vld [vmem:[#allocation3 + $0x3c] sm:$0xf]  ;;  %v2555_v17 = vpop.f32.mrf.mxu1 }
 0x1d6   : > { %3045 = vst.msk [vmem:[#allocation3 + $0x28] sm:$0xf] %vm495_vm7, %v2916_v0  ;;  %3048 = vst [vmem:[#allocation3 + $0x2c] sm:$0x1] %v3047_v9  ;;  %v2921_v54 = vrot.slane %v2919_v60, 7  ;;  %v2944_v15 = vshrl.u32 %v5245_v62, 16  ;;  %v2899_v55 = vsel %vm6143_vm9, %v2891_v52, %v2898_v28  ;;  %v5243_v10 = vpack.c.bf16 %v2773_v43, %v2773_v43  ;;  %v5630_v52 = vpop.f32.mrf.mxu0 }
 0x1d7   : > { %v2947_v31 = vshll.u32 %v5245_v62, 16  ;;  %v3040_v2 = vsel %vm6037_vm3, %v2900_v5, %v3039_v18  ;;  %v2778_v36 = vmax.f32 %v2758_v51, 0.0  ;;  %3038 = vst.msk [vmem:[#allocation3 + $0x1c] sm:$0xf] %vm495_vm7, %v2899_v55  ;;  %v2941_v4 = vor.u32 %v2939_v56, %v2938_v12  ;;  %v3053_v43 = vld [vmem:[#allocation3 + $0x38] sm:$0x1] }
 0x1d8   : > { %3041 = vst [vmem:[#allocation3 + $0x20] sm:$0x1] %v3040_v2  ;;  %v2942_v19 = vrot.slane %v2938_v12, 4  ;;  %v2924_v11 = vor.u32 %v2922_v6, %v2921_v54  ;;  %v2925_v45 = vrot.slane %v2921_v54, 4  ;;  %v2946_v14 = vrot.slane %v2944_v15, 7  ;;  %v2702_v56 = vpop.f32.mrf.mxu0 }
 0x1d9   : > { %v2927_v63 = vshrl.u32 %v5243_v10, 16  ;;  %v2930_v1 = vshll.u32 %v5243_v10, 16  ;;  %v5248_v24 = vpack.c.bf16 %v2778_v36, %v2778_v36  ;;  %v3057_v50 = vsel %vm6132_vm8, %v2941_v4, %v3056_v20  ;;  %v7468_v18 = vld [vmem:[#allocation3 + $0x4] sm:$0xf]  ;;  %v7476_v9 = vld [vmem:[#allocation3] sm:$0xf] }
 0x1da   : > { %v3050_v40 = vsel %vm6132_vm8, %v2924_v11, %v3049_v33  ;;  %v2729_v32 = vadd.f32 %v7431_v21, %v7385_v59  ;;  %v2732_v57 = vadd.f32 %v5627_v7, %v7387_v13  ;;  %3058 = vst [vmem:[#allocation3 + $0x3c] sm:$0xf] %v3057_v50  ;;  %v2949_v38 = vor.u32 %v2947_v31, %v2946_v14  ;;  %v5631_v4 = vpop.f32.mrf.mxu0 }
 0x1db   : > { %3051 = vst [vmem:[#allocation3 + $0x30] sm:$0xf] %v3050_v40  ;;  %v2951_v22 = vrot.slane %v2946_v14, 4  ;;  %v2929_v23 = vrot.slane %v2927_v63, 7  ;;  %v2970_v62 = vshrl.u32 %v5248_v24, 16  ;;  %v2973_v16 = vshll.u32 %v5248_v24, 16 }
 0x1dc   : > { %v2756_v46 = vadd.f32 %v7334_v29, %v2729_v32  ;;  %v2759_v35 = vadd.f32 %v7334_v29, %v2732_v57  ;;  %v2730_v51 = vadd.f32 %v2689_v53, %v7394_v42  ;;  %v2950_v59 = vsel %vm6143_vm9, %v2942_v19, %v2949_v38  ;;  %v3070_v53 = vld [vmem:[#allocation3 + $0x54] sm:$0xf]  ;;  %v3063_v40 = vld [vmem:[#allocation3 + $0x48] sm:$0xf]  ;;  %v3074_v38 = vld [vmem:[#allocation3 + $0x5c] sm:$0x1] }
 0x1dd   : > { %v3061_v13 = vsel %vm6037_vm3, %v2951_v22, %v3060_v48  ;;  %v2932_v21 = vor.u32 %v2930_v1, %v2929_v23  ;;  %v2934_v7 = vrot.slane %v2929_v23, 4  ;;  %3059 = vst.msk [vmem:[#allocation3 + $0x40] sm:$0xf] %vm495_vm7, %v2950_v59  ;;  %v2972_v60 = vrot.slane %v2970_v62, 7 }
 0x1de   : > { %3062 = vst [vmem:[#allocation3 + $0x44] sm:$0x1] %v3061_v13  ;;  %v2776_v6 = vmax.f32 %v2756_v46, 0.0  ;;  %v2779_v0 = vmax.f32 %v2759_v35, 0.0  ;;  %v2757_v42 = vadd.f32 %v7334_v29, %v2730_v51  ;;  %v2735_v12 = vadd.f32 %v5630_v52, %v7398_v26  ;;  %v7490_v26 = vld [vmem:[#allocation3 + $0x10] sm:$0xf] }
 0x1df   : > { %v2933_v28 = vsel %vm6143_vm9, %v2925_v45, %v2932_v21  ;;  %v3054_v5 = vsel %vm6037_vm3, %v2934_v7, %v3053_v43  ;;  %v5089_v54 = vcombine.low %v7476_v9, %v7468_v18  ;;  %v2584_v15 = vadd.f32 %v2555_v17, %v7365_v27  ;;  %v7495_v52 = vld [vmem:[#allocation3 + $0xc] sm:$0xf] }
 0x1e0   : > { %3052 = vst.msk [vmem:[#allocation3 + $0x34] sm:$0xf] %vm495_vm7, %v2933_v28  ;;  %3055 = vst [vmem:[#allocation3 + $0x38] sm:$0x1] %v3054_v5  ;;  %v2975_v31 = vor.u32 %v2973_v16, %v2972_v60  ;;  %v5246_v55 = vpack.c.bf16 %v2776_v6, %v2776_v6  ;;  %v5249_v2 = vpack.c.bf16 %v2779_v0, %v2779_v0  ;;  %v2976_v20 = vrot.slane %v2972_v60, 4  ;;  %v2705_v16 = vpop.f32.mrf.mxu0 }
 0x1e1   : > { %v2777_v33 = vmax.f32 %v2757_v42, 0.0  ;;  %v2762_v10 = vadd.f32 %v7334_v29, %v2735_v12  ;;  %5634 = vmatprep.mubr.msk.bf16.mxu1 %vm935_vm10, %v5089_v54  ;;  %v3320_v36 = vshrl.u32 %v7476_v9, 16  ;;  %v3323_v45 = vshll.u32 %v7476_v9, 16  ;;  %v3067_v60 = vld [vmem:[#allocation3 + $0x50] sm:$0x1] }
 0x1e2   : > { %v3071_v27 = vsel %vm6132_vm8, %v2975_v31, %v3070_v53  ;;  %v2953_v19 = vshrl.u32 %v5246_v55, 16  ;;  %v2978_v11 = vshrl.u32 %v5249_v2, 16  ;;  %v2956_v14 = vshll.u32 %v5246_v55, 16  ;;  %v7521_v31 = vld [vmem:[#allocation3 + $0x8] sm:$0x1] }
 0x1e3   : > { %3072 = vst [vmem:[#allocation3 + $0x54] sm:$0xf] %v3071_v27  ;;  %v2981_v63 = vshll.u32 %v5249_v2, 16  ;;  %v5247_v1 = vpack.c.bf16 %v2777_v33, %v2777_v33  ;;  %v2782_v24 = vmax.f32 %v2762_v10, 0.0  ;;  %v2733_v32 = vadd.f32 %v2702_v56, %v7403_v44 }
 0x1e4   : > { %v2955_v50 = vrot.slane %v2953_v19, 7  ;;  %v2980_v48 = vrot.slane %v2978_v11, 7  ;;  %v7500_v57 = vcombine.low %v7495_v52, %v7490_v26  ;;  %v3333_v62 = vshrl.u32 %v7468_v18, 16 }
 0x1e5   : > { %v2961_v22 = vshrl.u32 %v5247_v1, 16  ;;  %v3084_v23 = vsel %vm7454_vm4, %v2782_v24, 0.0  ;;  %v2736_v43 = vadd.f32 %v5631_v4, %v7414_v49  ;;  %v2964_v17 = vshll.u32 %v5247_v1, 16 }
 0x1e6   : > { %v2958_v46 = vor.u32 %v2956_v14, %v2955_v50  ;;  %v2983_v35 = vor.u32 %v2981_v63, %v2980_v48  ;;  %v2985_v51 = vrot.slane %v2980_v48, 4  ;;  %5635 = vmatmul.mubr.msk.bf16.vlgmr.msra.gmra.mxu1 %vm935_vm10, %v7500_v57  ;;  %v5252_v59 = vpack.c.bf16 %v3084_v23, %v3084_v23  ;;  %v7535_v48 = vld [vmem:[#allocation3 + $0x14] sm:$0x1]  ;;  %v7539_v23 = vld [vmem:[#allocation3 + $0x1c] sm:$0xf] }
 0x1e7   : > { %v2963_v44 = vrot.slane %v2961_v22, 7  ;;  %v2760_v13 = vadd.f32 %v7334_v29, %v2733_v32  ;;  %5651 = vmatpush3.bf16.msra.mxu1 %v7267_v30  ;;  %v2763_v21 = vadd.f32 %v7334_v29, %v2736_v43  ;;  %v2734_v6 = vadd.f32 %v2705_v16, %v2584_v15  ;;  %v3077_v16 = vld [vmem:[#allocation3 + $0x60] sm:$0xf] }
 0x1e8   : > { %v3064_v7 = vsel %vm6132_vm8, %v2958_v46, %v3063_v40  ;;  %v2984_v49 = vsel %vm6143_vm9, %v2976_v20, %v2983_v35  ;;  %v3075_v56 = vsel %vm6037_vm3, %v2985_v51, %v3074_v38  ;;  %5806 = vmatprep.subr.msk.bf16.mxu1 %vm966_vm0, %v7260_v61  ;;  %v2959_v0 = vrot.slane %v2955_v50, 4  ;;  %v3113_v20 = vld [vmem:[#allocation3 + $0x6c] sm:$0xf] }
 0x1e9   : > { %3065 = vst [vmem:[#allocation3 + $0x48] sm:$0xf] %v3064_v7  ;;  %3073 = vst.msk [vmem:[#allocation3 + $0x58] sm:$0xf] %vm495_vm7, %v2984_v49  ;;  %v2966_v30 = vor.u32 %v2964_v17, %v2963_v44  ;;  %v2968_v42 = vrot.slane %v2963_v44, 4  ;;  %v3093_v28 = vshrl.u32 %v5252_v59, 16  ;;  %v2761_v54 = vadd.f32 %v7334_v29, %v2734_v6 }
 0x1ea   : > { %3076 = vst [vmem:[#allocation3 + $0x5c] sm:$0x1] %v3075_v56  ;;  %v3096_v5 = vshll.u32 %v5252_v59, 16  ;;  %v2780_v53 = vmax.f32 %v2760_v13, 0.0  ;;  %v2783_v12 = vmax.f32 %v2763_v21, 0.0  ;;  %v3689_v2 = vrot.slane %v7468_v18, 5 }
 0x1eb   : > { %v2967_v15 = vsel %vm6143_vm9, %v2959_v0, %v2966_v30  ;;  %v3068_v61 = vsel %vm6037_vm3, %v2968_v42, %v3067_v60  ;;  %v3095_v55 = vrot.slane %v3093_v28, 7  ;;  %v2781_v29 = vmax.f32 %v2761_v54, 0.0  ;;  %v7545_v21 = vld [vmem:[#allocation3 + $0x18] sm:$0xf]  ;;  %v3117_v49 = vld [vmem:[#allocation3 + $0x74] sm:$0x1] }
 0x1ec   : > { %3066 = vst.msk [vmem:[#allocation3 + $0x4c] sm:$0xf] %vm495_vm7, %v2967_v15  ;;  %3069 = vst [vmem:[#allocation3 + $0x50] sm:$0x1] %v3068_v61  ;;  %v5250_v33 = vpack.c.bf16 %v2780_v53, %v2780_v53  ;;  %v3085_v10 = vsel %vm7454_vm4, %v2783_v12, 0.0  ;;  %v5122_v4 = vrot.slane %v7476_v9, 9  ;;  %v7550_v6 = vcombine.low %v7545_v21, %v7539_v23 }
 0x1ed   : > { %v3098_v27 = vor.u32 %v3096_v5, %v3095_v55  ;;  %v3099_v19 = vrot.slane %v3095_v55, 4  ;;  %v5253_v11 = vpack.c.bf16 %v3085_v10, %v3085_v10  ;;  %v3692_v14 = vrot.slane %v7521_v31, 5  ;;  %v3081_v28 = vld [vmem:[#allocation3 + $0x68] sm:$0x1]  ;;  %v7559_v61 = vld [vmem:[#allocation3 + $0x24] sm:$0xf] }
 0x1ee   : > { %v2987_v63 = vshrl.u32 %v5250_v33, 16  ;;  %v5251_v1 = vpack.c.bf16 %v2781_v29, %v2781_v29  ;;  %v3690_v50 = vsel %vm6546_vm1, %v5122_v4, %v3689_v2  ;;  %v3691_v40 = vrot.slane %v3689_v2, 4  ;;  %5638 = vmatprep.mubr.msk.bf16.mxu1 %vm935_vm10, %v7550_v6  ;;  %v7561_v55 = vld [vmem:[#allocation3 + $0x28] sm:$0xf]  ;;  %v7570_v10 = vld [vmem:[#allocation3 + $0x20] sm:$0x1] }
 0x1ef   : > { %v3114_v3 = vsel %vm6132_vm8, %v3098_v27, %v3113_v20  ;;  %v2990_v32 = vshll.u32 %v5250_v33, 16  ;;  %v3101_v38 = vshrl.u32 %v5253_v11, 16  ;;  %v3104_v22 = vshll.u32 %v5253_v11, 16  ;;  %v7580_v11 = vld [vmem:[#allocation3 + $0x2c] sm:$0x1] }
 0x1f0   : > { %3115 = vst [vmem:[#allocation3 + $0x6c] sm:$0xf] %v3114_v3  ;;  %v2989_v43 = vrot.slane %v2987_v63, 7  ;;  %v2995_v46 = vshrl.u32 %v5251_v1, 16  ;;  %v3693_v35 = vsel %vm6546_vm1, %v3691_v40, %v3692_v14  ;;  %v5123_v51 = vrot.slane %v7495_v52, 9 }
 0x1f1   : > { %v3103_v17 = vrot.slane %v3101_v38, 7  ;;  %v2998_v44 = vshll.u32 %v5251_v1, 16  ;;  %v5130_v59 = vcombine.low %v3690_v50, %v3693_v35  ;;  %v3696_v13 = vrot.slane %v7490_v26, 5  ;;  %v7582_v14 = vld [vmem:[#allocation3 + $0x34] sm:$0xf] }
 0x1f2   : > { %v2992_v7 = vor.u32 %v2990_v32, %v2989_v43  ;;  %v2997_v56 = vrot.slane %v2995_v46, 7  ;;  %v3699_v60 = vrot.slane %v7535_v48, 5  ;;  %v2993_v0 = vrot.slane %v2989_v43, 4  ;;  %v7592_v50 = vld [vmem:[#allocation3 + $0x30] sm:$0xf] }
 0x1f3   : > { %v3106_v30 = vor.u32 %v3104_v22, %v3103_v17  ;;  %v3108_v42 = vrot.slane %v3103_v17, 4  ;;  %5670 = vmatprep.mubr.msk.bf16.mxu0 %vm935_vm10, %v5130_v59  ;;  %v3698_v5 = vrot.slane %v3696_v13, 4  ;;  %v3697_v15 = vsel %vm6546_vm1, %v5123_v51, %v3696_v13  ;;  %v7600_v22 = vld [vmem:[#allocation3 + $0x40] sm:$0xf]  ;;  %v7611_v51 = vld [vmem:[#allocation3 + $0x3c] sm:$0xf] }
 0x1f4   : > { %v3078_v53 = vsel %vm6132_vm8, %v2992_v7, %v3077_v16  ;;  %v3000_v12 = vor.u32 %v2998_v44, %v2997_v56  ;;  %v3002_v54 = vrot.slane %v2997_v56, 4  ;;  %v3368_v33 = vshrl.u32 %v7545_v21, 16 }
 0x1f5   : > { %3079 = vst [vmem:[#allocation3 + $0x60] sm:$0xf] %v3078_v53  ;;  %v3107_v2 = vsel %vm6143_vm9, %v3099_v19, %v3106_v30  ;;  %v3118_v37 = vsel %vm6037_vm3, %v3108_v42, %v3117_v49  ;;  %v3700_v20 = vsel %vm6546_vm1, %v3698_v5, %v3699_v60  ;;  %v3371_v19 = vshll.u32 %v7545_v21, 16  ;;  %v7629_v60 = vld [vmem:[#allocation3 + $0x38] sm:$0x1] }
 0x1f6   : > { %3116 = vst.msk [vmem:[#allocation3 + $0x70] sm:$0xf] %vm495_vm7, %v3107_v2  ;;  %3119 = vst [vmem:[#allocation3 + $0x74] sm:$0x1] %v3118_v37  ;;  %v3001_v29 = vsel %vm6143_vm9, %v2993_v0, %v3000_v12  ;;  %v3082_v4 = vsel %vm6037_vm3, %v3002_v54, %v3081_v28  ;;  %v7577_v27 = vcombine.low %v3697_v15, %v3700_v20  ;;  %v3381_v63 = vshrl.u32 %v7539_v23, 16 }
 0x1f7   : > { %3080 = vst.msk [vmem:[#allocation3 + $0x64] sm:$0xf] %vm495_vm7, %v3001_v29  ;;  %3083 = vst [vmem:[#allocation3 + $0x68] sm:$0x1] %v3082_v4  ;;  %v7588_v34 = vcombine.low %v7559_v61, %v7561_v55  ;;  %v3392_v41 = vshrl.u32 %v7559_v61, 16  ;;  %v5124_v3 = vrot.slane %v7545_v21, 9  ;;  %v7609_v35 = vcombine.low %v7592_v50, %v7582_v14 }
 0x1f8   : > { %5671 = vmatmul.mubr.msk.bf16.vlgmr.msra.gmra.mxu0 %vm935_vm10, %v7577_v27  ;;  %v3703_v32 = vrot.slane %v7539_v23, 5  ;;  %v3706_v38 = vrot.slane %v7570_v10, 5  ;;  %v5125_v43 = vrot.slane %v7559_v61, 9  ;;  %v3710_v16 = vrot.slane %v7561_v55, 5  ;;  %v7631_v0 = vld [vmem:[#allocation3 + $0x44] sm:$0x1] }
 0x1f9   : > { %5639 = vmatmul.mubr.msk.bf16.gmra.mxu1 %vm935_vm10, %v7588_v34  ;;  %v3713_v46 = vrot.slane %v7580_v11, 5  ;;  %5705 = vmatpush3.bf16.msra.mxu0 %v7318_v8  ;;  %v7627_v56 = vcombine.low %v7611_v51, %v7600_v22  ;;  %v7638_v5 = vld [vmem:[#allocation3 + $0x4c] sm:$0xf]  ;;  %v5126_v54 = vrot.slane %v7592_v50, 9  ;;  %v3717_v15 = vrot.slane %v7582_v14, 5 }
 0x1fa   : > { %v3704_v17 = vsel %vm6546_vm1, %v5124_v3, %v3703_v32  ;;  %v3705_v44 = vrot.slane %v3703_v32, 4  ;;  %5809 = vmatprep.subr.msk.bf16.mxu0 %vm966_vm0, %v7363_v58  ;;  %v3711_v7 = vsel %vm6546_vm1, %v5125_v43, %v3710_v16  ;;  %v3712_v49 = vrot.slane %v3710_v16, 4  ;;  %5642 = vmatprep.mubr.msk.bf16.mxu1 %vm935_vm10, %v7609_v35  ;;  %v7646_v2 = vld [vmem:[#allocation3 + $0x48] sm:$0xf]  ;;  %v7648_v37 = vld [vmem:[#allocation3 + $0x54] sm:$0xf] }
 0x1fb   : > { %v3720_v29 = vrot.slane %v7629_v60, 5  ;;  %v5127_v4 = vrot.slane %v7611_v51, 9  ;;  %v3724_v3 = vrot.slane %v7600_v22, 5  ;;  %v7655_v32 = vld [vmem:[#allocation3 + $0x58] sm:$0xf]  ;;  %v3719_v43 = vrot.slane %v3717_v15, 4 }
 0x1fc   : > { %v3707_v58 = vsel %vm6546_vm1, %v3705_v44, %v3706_v38  ;;  %v3714_v12 = vsel %vm6546_vm1, %v3712_v49, %v3713_v46  ;;  %v3718_v38 = vsel %vm6546_vm1, %v5126_v54, %v3717_v15  ;;  %v3727_v16 = vrot.slane %v7631_v0, 5 }
 0x1fd   : > { %v7640_v53 = vcombine.low %v3704_v17, %v3707_v58  ;;  %v7650_v20 = vcombine.low %v3711_v7, %v3714_v12  ;;  %v7664_v46 = vcombine.low %v7646_v2, %v7638_v5  ;;  %v3725_v17 = vsel %vm6546_vm1, %v5127_v4, %v3724_v3 }
 0x1fe   : > { %v3726_v44 = vrot.slane %v3724_v3, 4  ;;  %v3721_v58 = vsel %vm6546_vm1, %v3719_v43, %v3720_v29  ;;  %v7679_v54 = vcombine.low %v7648_v37, %v7655_v32  ;;  %v5129_v29 = vrot.slane %v7648_v37, 9  ;;  %v7690_v43 = vld [vmem:[#allocation3 + $0x50] sm:$0x1] }
 0x1ff   : > { %5674 = vmatprep.mubr.msk.bf16.mxu0 %vm935_vm10, %v7640_v53  ;;  %v7682_v4 = vcombine.low %v3718_v38, %v3721_v58  ;;  %v3738_v7 = vrot.slane %v7655_v32, 5  ;;  %v3322_v38 = vrot.slane %v3320_v36, 4  ;;  %v3325_v58 = vrot.slane %v3323_v45, 5 }
 0x200   : > { %5675 = vmatmul.mubr.msk.bf16.gmra.mxu0 %vm935_vm10, %v7650_v20  ;;  %v3728_v3 = vsel %vm6546_vm1, %v3726_v44, %v3727_v16  ;;  %v7699_v16 = vld [vmem:[#allocation3 + $0x5c] sm:$0x1]  ;;  %v3329_v44 = vshll.u32 %v7468_v18, 16  ;;  %v3335_v49 = vrot.slane %v3333_v62, 4  ;;  %v3731_v36 = vrot.slane %v7638_v5, 5 }
 0x201   : > { %5643 = vmatmul.mubr.msk.bf16.gmra.mxu1 %vm935_vm10, %v7627_v56  ;;  %v7692_v12 = vcombine.low %v3725_v17, %v3728_v3  ;;  %5678 = vmatprep.mubr.msk.bf16.mxu0 %vm935_vm10, %v7682_v4  ;;  %v3339_v17 = vshll.u32 %v7521_v31, 16  ;;  %v5128_v3 = vrot.slane %v7646_v2, 9  ;;  %v3326_v15 = vor.u32 %v3325_v58, %v3322_v38 }
 0x202   : > { %5646 = vmatprep.mubr.msk.bf16.mxu1 %vm935_vm10, %v7664_v46  ;;  %v3734_v9 = vrot.slane %v7690_v43, 5  ;;  %v3739_v45 = vsel %vm6546_vm1, %v5129_v29, %v3738_v7  ;;  %v3331_v28 = vrot.slane %v3329_v44, 5  ;;  %v3740_v30 = vrot.slane %v3738_v7, 4 }
 0x203   : > { %v3341_v42 = vrot.slane %v3339_v17, 5  ;;  %v3741_v8 = vrot.slane %v7699_v16, 5  ;;  %v3327_v13 = vrot.slane %v3326_v15, 4  ;;  %v3732_v18 = vsel %vm6546_vm1, %v5128_v3, %v3731_v36 }
 0x204   : > { %v3733_v62 = vrot.slane %v3731_v36, 4  ;;  %v3344_v31 = vshrl.u32 %v7495_v52, 16  ;;  %v3336_v38 = vor.u32 %v3335_v49, %v3331_v28  ;;  %v3347_v29 = vshll.u32 %v7495_v52, 16 }
 0x205   : > { %v3742_v58 = vsel %vm6546_vm1, %v3740_v30, %v3741_v8  ;;  %v3353_v7 = vshll.u32 %v7490_v26, 16  ;;  %v3332_v44 = vsel %vm6255_vm13, %v3327_v13, %v3331_v28  ;;  %v3357_v52 = vshrl.u32 %v7490_v26, 16 }
 0x206   : > { %v3735_v17 = vsel %vm6546_vm1, %v3733_v62, %v3734_v9  ;;  %v7728_v3 = vcombine.low %v3739_v45, %v3742_v58  ;;  %v3346_v36 = vrot.slane %v3344_v31, 4  ;;  %v3337_v49 = vrot.slane %v3336_v38, 4 }
 0x207   : > { %v7730_v59 = vcombine.low %v3732_v18, %v3735_v17  ;;  %v3349_v8 = vrot.slane %v3347_v29, 5  ;;  %v3355_v30 = vrot.slane %v3353_v7, 5  ;;  %v3363_v40 = vshll.u32 %v7535_v48, 16 }
 0x208   : > { %5679 = vmatmul.mubr.msk.bf16.gmra.mxu0 %vm935_vm10, %v7692_v12  ;;  %v3370_v1 = vrot.slane %v3368_v33, 4  ;;  %v3373_v13 = vrot.slane %v3371_v19, 5  ;;  %v3342_v28 = vsel %vm6255_vm13, %v3337_v49, %v3341_v42  ;;  %v3377_v45 = vshll.u32 %v7539_v23, 16 }
 0x209   : > { %5647 = vmatmul.mubr.msk.bf16.gmra.mxu1 %vm935_vm10, %v7679_v54  ;;  %5682 = vmatprep.mubr.msk.bf16.mxu0 %vm935_vm10, %v7730_v59  ;;  %v3350_v9 = vor.u32 %v3349_v8, %v3346_v36  ;;  %v3383_v26 = vrot.slane %v3381_v63, 4  ;;  %v5105_v18 = vcombine.low %v3332_v44, %v3342_v28  ;;  %v3359_v48 = vrot.slane %v3357_v52, 4 }
 0x20a   : > { %v3365_v62 = vrot.slane %v3363_v40, 5  ;;  %v3374_v31 = vor.u32 %v3373_v13, %v3370_v1  ;;  %v3379_v38 = vrot.slane %v3377_v45, 5  ;;  %v3387_v21 = vshll.u32 %v7570_v10, 16 }
 0x20b   : > { %v3351_v33 = vrot.slane %v3350_v9, 4  ;;  %v3394_v19 = vrot.slane %v3392_v41, 4  ;;  %5652 = vmatprep.mubr.msk.bf16.mxu1 %vm935_vm10, %v5105_v18  ;;  %v3360_v42 = vor.u32 %v3359_v48, %v3355_v30  ;;  %v8427_v29 = vshll.u32 %v7559_v61, 16 }
 0x20c   : > { %v3375_v58 = vrot.slane %v3374_v31, 4  ;;  %v3401_v23 = vshll.u32 %v7561_v55, 16  ;;  %v3384_v1 = vor.u32 %v3383_v26, %v3379_v38  ;;  %v3389_v10 = vrot.slane %v3387_v21, 5 }
 0x20d   : > { %v3397_v7 = vrot.slane %v8427_v29, 5  ;;  %v3356_v63 = vsel %vm6255_vm13, %v3351_v33, %v3355_v30  ;;  %v8428_v40 = vshrl.u32 %v7561_v55, 16  ;;  %v3361_v44 = vrot.slane %v3360_v42, 4 }
 0x20e   : > { %v3380_v17 = vsel %vm6255_vm13, %v3375_v58, %v3379_v38  ;;  %v3403_v61 = vrot.slane %v3401_v23, 5  ;;  %v3385_v49 = vrot.slane %v3384_v1, 4  ;;  %v3411_v8 = vshll.u32 %v7580_v11, 16 }
 0x20f   : > { %v3407_v41 = vrot.slane %v8428_v40, 4  ;;  %v3398_v36 = vor.u32 %v3397_v7, %v3394_v19  ;;  %v8429_v52 = vshrl.u32 %v7592_v50, 16  ;;  %v8430_v28 = vshll.u32 %v7592_v50, 16 }
 0x210   : > { %5683 = vmatmul.mubr.msk.bf16.gmra.mxu0 %vm935_vm10, %v7728_v3  ;;  %v3366_v9 = vsel %vm6255_vm13, %v3361_v44, %v3365_v62  ;;  %v3425_v26 = vshll.u32 %v7582_v14, 16  ;;  %v3390_v48 = vsel %vm6255_vm13, %v3385_v49, %v3389_v10  ;;  %v3413_v31 = vrot.slane %v3411_v8, 5 }
 0x211   : > { %v3418_v13 = vrot.slane %v8429_v52, 4  ;;  %v3421_v30 = vrot.slane %v8430_v28, 5  ;;  %v3399_v55 = vrot.slane %v3398_v36, 4  ;;  %v3408_v45 = vor.u32 %v3407_v41, %v3403_v61 }
 0x212   : > { %v5106_v18 = vcombine.low %v3356_v63, %v3366_v9  ;;  %v7770_v11 = vcombine.low %v3380_v17, %v3390_v48  ;;  %v3427_v21 = vrot.slane %v3425_v26, 5  ;;  %v8431_v19 = vshrl.u32 %v7582_v14, 16 }
 0x213   : > { %v3422_v33 = vor.u32 %v3421_v30, %v3418_v13  ;;  %v3404_v38 = vsel %vm6255_vm13, %v3399_v55, %v3403_v61  ;;  %v3409_v50 = vrot.slane %v3408_v45, 4  ;;  %v3435_v58 = vshll.u32 %v7629_v60, 16  ;;  %v7794_v60 = vld [vmem:[%s8298_s3 + $0x10] sm:$0x3] }
 0x214   : > { %5706 = vmatprep.mubr.msk.bf16.mxu0 %vm935_vm10, %v5106_v18  ;;  %5653 = vmatmul.mubr.msk.bf16.vlgmr.msra.gmra.mxu1 %vm935_vm10, %v5106_v18  ;;  %v3431_v42 = vrot.slane %v8431_v19, 4  ;;  %v8432_v29 = vshrl.u32 %v7611_v51, 16  ;;  %v8433_v63 = vshll.u32 %v7611_v51, 16  ;;  %v3449_v10 = vshll.u32 %v7600_v22, 16 }
 0x215   : > { %v3423_v62 = vrot.slane %v3422_v33, 4  ;;  %5687 = vmatpush3.bf16.msra.mxu1 %v7314_v39  ;;  %5656 = vmatprep.mubr.msk.bf16.mxu1 %vm935_vm10, %v7770_v11  ;;  %v3414_v23 = vsel %vm6255_vm13, %v3409_v50, %v3413_v31  ;;  %v8434_v14 = vshrl.u32 %v7600_v22, 16  ;;  %v3501_v39 = vshrl.u32 %v7655_v32, 16 }
 0x216   : > { %v3442_v7 = vrot.slane %v8432_v29, 4  ;;  %v3445_v1 = vrot.slane %v8433_v63, 5  ;;  %v7799_v41 = vcombine.low %v3404_v38, %v3414_v23  ;;  %v3432_v44 = vor.u32 %v3431_v42, %v3427_v21  ;;  %5808 = vmatprep.subr.msk.bf16.mxu1 %vm966_vm0, %v7323_v47  ;;  %v7838_v63 = vld [vmem:[#allocation3 + $0x64] sm:$0xf] }
 0x217   : > { %v3455_v40 = vrot.slane %v8434_v14, 4  ;;  %v3437_v51 = vrot.slane %v3435_v58, 5  ;;  %v3451_v22 = vrot.slane %v3449_v10, 5  ;;  %v3459_v36 = vshll.u32 %v7631_v0, 16 }
 0x218   : > { %5707 = vmatmul.mubr.msk.bf16.vlgmr.msra.gmra.mxu0 %vm935_vm10, %v7770_v11  ;;  %v3446_v17 = vor.u32 %v3445_v1, %v3442_v7  ;;  %v8435_v61 = vshrl.u32 %v7646_v2, 16  ;;  %v3433_v8 = vrot.slane %v3432_v44, 4  ;;  %v8436_v52 = vshll.u32 %v7646_v2, 16 }
 0x219   : > { %5741 = vmatpush3.bf16.msra.mxu0 %v7380_v25  ;;  %5710 = vmatprep.mubr.msk.bf16.mxu0 %vm935_vm10, %v7799_v41  ;;  %v3473_v28 = vshll.u32 %v7638_v5, 16  ;;  %v8437_v30 = vshrl.u32 %v7638_v5, 16  ;;  %v3428_v0 = vsel %vm6255_vm13, %v3423_v62, %v3427_v21  ;;  %v3456_v25 = vor.u32 %v3455_v40, %v3451_v22  ;;  %v7823_v5 = vld [vmem:[#allocation3 + $0x60] sm:$0xf] }
 0x21a   : > { %v3466_v49 = vrot.slane %v8435_v61, 4  ;;  %v3469_v13 = vrot.slane %v8436_v52, 5  ;;  %5811 = vmatprep.subr.msk.bf16.mxu0 %vm966_vm0, %v7794_v60  ;;  %v3447_v55 = vrot.slane %v3446_v17, 4  ;;  %v3483_v45 = vshll.u32 %v7690_v43, 16  ;;  %v7851_v17 = vld [vmem:[#allocation3 + $0x68] sm:$0x1] }
 0x21b   : > { %v3479_v9 = vrot.slane %v8437_v30, 4  ;;  %v3438_v26 = vsel %vm6255_vm13, %v3433_v8, %v3437_v51  ;;  %v3475_v18 = vrot.slane %v3473_v28, 5  ;;  %v8438_v48 = vshrl.u32 %v7648_v37, 16 }
 0x21c   : > { %v3470_v2 = vor.u32 %v3469_v13, %v3466_v49  ;;  %v7825_v33 = vcombine.low %v3428_v0, %v3438_v26  ;;  %v3452_v38 = vsel %vm6255_vm13, %v3447_v55, %v3451_v22  ;;  %v3457_v50 = vrot.slane %v3456_v25, 4  ;;  %5657 = vmatmul.mubr.msk.bf16.gmra.mxu1 %vm935_vm10, %v7799_v41 }
 0x21d   : > { %v3490_v31 = vrot.slane %v8438_v48, 4  ;;  %v3461_v21 = vrot.slane %v3459_v36, 5  ;;  %v3480_v43 = vor.u32 %v3479_v9, %v3475_v18  ;;  %v3485_v62 = vrot.slane %v3483_v45, 5 }
 0x21e   : > { %v8439_v19 = vshll.u32 %v7648_v37, 16  ;;  %v3497_v58 = vshll.u32 %v7655_v32, 16  ;;  %5660 = vmatprep.mubr.msk.bf16.mxu1 %vm935_vm10, %v7825_v33  ;;  %v3471_v7 = vrot.slane %v3470_v2, 4  ;;  %v3503_v23 = vrot.slane %v3501_v39, 4 }
 0x21f   : > { %v3462_v29 = vsel %vm6255_vm13, %v3457_v50, %v3461_v21  ;;  %v4036_v1 = vshrl.u32 %v7823_v5, 16  ;;  %v3481_v37 = vrot.slane %v3480_v43, 4  ;;  %v3507_v32 = vshll.u32 %v7699_v16, 16  ;;  %v5905_v43 = vld [vmem:[%s8298_s3 + $0xc] sm:$0xf] }
 0x220   : > { %v3493_v42 = vrot.slane %v8439_v19, 5  ;;  %5711 = vmatmul.mubr.msk.bf16.gmra.mxu0 %vm935_vm10, %v7825_v33  ;;  %v7843_v10 = vcombine.low %v3452_v38, %v3462_v29  ;;  %v3499_v40 = vrot.slane %v3497_v58, 5  ;;  %v4039_v51 = vshll.u32 %v7823_v5, 16  ;;  %v3149_v58 = vld [vmem:[#allocation3 + $0x74] sm:$0x1] }
 0x221   : > { %v4038_v44 = vrot.slane %v4036_v1, 4  ;;  %v3486_v39 = vsel %vm6255_vm13, %v3481_v37, %v3485_v62  ;;  %v4045_v22 = vshll.u32 %v7838_v63, 16  ;;  %v4049_v36 = vshrl.u32 %v7838_v63, 16 }
 0x222   : > { %v3494_v14 = vor.u32 %v3493_v42, %v3490_v31  ;;  %5714 = vmatprep.mubr.msk.bf16.mxu0 %vm935_vm10, %v7843_v10  ;;  %v3504_v49 = vor.u32 %v3503_v23, %v3499_v40  ;;  %v4041_v8 = vrot.slane %v4039_v51, 5  ;;  %v3476_v16 = vsel %vm6255_vm13, %v3471_v7, %v3475_v18 }
 0x223   : > { %v3509_v52 = vrot.slane %v3507_v32, 5  ;;  %v4047_v13 = vrot.slane %v4045_v22, 5  ;;  %v4051_v28 = vrot.slane %v4049_v36, 4  ;;  %v7857_v30 = vcombine.low %v3476_v16, %v3486_v39 }
 0x224   : > { %v3495_v61 = vrot.slane %v3494_v14, 4  ;;  %v3505_v9 = vrot.slane %v3504_v49, 4  ;;  %v4042_v0 = vor.u32 %v4041_v8, %v4038_v44  ;;  %v4055_v55 = vshll.u32 %v7851_v17, 16  ;;  %5661 = vmatmul.mubr.msk.bf16.gmra.mxu1 %vm935_vm10, %v7843_v10 }
 0x225   : > { %v4052_v25 = vor.u32 %v4051_v28, %v4047_v13  ;;  %5664 = vmatprep.mubr.msk.bf16.mxu1 %vm935_vm10, %v7857_v30  ;;  %v5186_v62 = vcombine.low %v5905_v43, %v5905_v43  ;;  %v4200_v19 = vsel %vm966_vm0, %v7323_v47, 0  ;;  %v5146_v47 = vcombine.low %v7823_v5, %v7838_v63 }
 0x226   : > { %v3500_v45 = vsel %vm6255_vm13, %v3495_v61, %v3499_v40  ;;  %v3510_v26 = vsel %vm6255_vm13, %v3505_v9, %v3509_v52  ;;  %v4043_v48 = vrot.slane %v4042_v0, 4  ;;  %v4057_v31 = vrot.slane %v4055_v55, 5 }
 0x227   : > { %v7870_v2 = vcombine.low %v3500_v45, %v3510_v26  ;;  %v4053_v18 = vrot.slane %v4052_v25, 4  ;;  %v4469_v42 = vrot.slane %v5186_v62, 2 }
 0x228   : > { %5715 = vmatmul.mubr.msk.bf16.gmra.mxu0 %vm935_vm10, %v7857_v30  ;;  %v4048_v50 = vsel %vm6255_vm13, %v4043_v48, %v4047_v13 }
 0x229   : > { %5718 = vmatprep.mubr.msk.bf16.mxu0 %vm935_vm10, %v7870_v2  ;;  %v4058_v38 = vsel %vm6255_vm13, %v4053_v18, %v4057_v31 }
 0x22a   : > { %v7880_v21 = vcombine.low %v4048_v50, %v4058_v38 }
 0x22c   : > { %5665 = vmatmul.mubr.msk.bf16.gmra.mxu1 %vm935_vm10, %v7870_v2 }
 0x22d   : > { %5688 = vmatprep.mubr.msk.bf16.mxu1 %vm935_vm10, %v7500_v57  ;;  %v4604_v57 = vsel %vm966_vm0, %v7794_v60, 0 }
 0x230   : > { %5719 = vmatmul.mubr.msk.bf16.gmra.mxu0 %vm935_vm10, %v7880_v21 }
 0x231   : > { %5742 = vmatprep.mubr.msk.bf16.mxu0 %vm935_vm10, %v7550_v6 }
 0x234   : > { %5689 = vmatmul.mubr.msk.bf16.vlgmr.msra.gmra.mxu1 %vm935_vm10, %v7550_v6  ;;  %v3148_v6 = vld [vmem:[#allocation3 + $0x70] sm:$0xf] }
 0x235   : > { %5723 = vmatpush3.bf16.msra.mxu1 %v4200_v19  ;;  %5692 = vmatprep.mubr.msk.bf16.mxu1 %vm935_vm10, %v7588_v34  ;;  %v4449_v1 = vshll.u32 %v3148_v6, 16 }
 0x236   : > { %5810 = vmatprep.subr.msk.bf16.mxu1 %vm966_vm0, %v4469_v42 }
 0x237   : > { %v4451_v24 = vrot.slane %v4449_v1, 5 }
 0x238   : > { %5743 = vmatmul.mubr.msk.bf16.vlgmr.msra.gmra.mxu0 %vm935_vm10, %v7588_v34  ;;  %v3147_v34 = vld [vmem:[#allocation3 + $0x6c] sm:$0xf] }
 0x239   : > { %5746 = vmatprep.mubr.msk.bf16.mxu0 %vm935_vm10, %v7609_v35  ;;  %5777 = vmatpush3.bf16.msra.mxu0 %v4604_v57  ;;  %v5195_v7 = vrot.slane %v3147_v34, 9  ;;  %v4440_v37 = vshrl.u32 %v3147_v34, 16  ;;  %v4443_v14 = vshll.u32 %v3147_v34, 16 }
 0x23b   : > { %v4445_v40 = vrot.slane %v4443_v14, 5 }
 0x23c   : > { %5693 = vmatmul.mubr.msk.bf16.gmra.mxu1 %vm935_vm10, %v7609_v35  ;;  %v5176_v35 = vcombine.low %v3147_v34, %v3148_v6 }
 0x23d   : > { %5696 = vmatprep.mubr.msk.bf16.mxu1 %vm935_vm10, %v7627_v56 }
 0x240   : > { %5747 = vmatmul.mubr.msk.bf16.gmra.mxu0 %vm935_vm10, %v7627_v56  ;;  %v4474_v56 = vsel %vm966_vm0, %v4469_v42, 0 }
 0x241   : > { %5750 = vmatprep.mubr.msk.bf16.mxu0 %vm935_vm10, %v7664_v46 }
 0x244   : > { %5697 = vmatmul.mubr.msk.bf16.gmra.mxu1 %vm935_vm10, %v7664_v46  ;;  %v4592_v46 = vrot.slane %v3148_v6, 5 }
 0x245   : > { %5700 = vmatprep.mubr.msk.bf16.mxu1 %vm935_vm10, %v7679_v54 }
 0x246   : > { %v4594_v29 = vrot.slane %v4592_v46, 4 }
 0x248   : > { %5751 = vmatmul.mubr.msk.bf16.gmra.mxu0 %vm935_vm10, %v7679_v54  ;;  %v5165_v54 = vrot.slane %v7823_v5, 9  ;;  %v4595_v5 = vrot.slane %v3149_v58, 5 }
 0x249   : > { %5754 = vmatprep.mubr.msk.bf16.mxu0 %vm935_vm10, %v5146_v47 }
 0x24a   : > { %v4596_v23 = vsel %vm6546_vm1, %v4594_v29, %v4595_v5 }
 0x24c   : > { %5701 = vmatmul.mubr.msk.bf16.gmra.mxu1 %vm935_vm10, %v5146_v47 }
 0x24d   : > { %5724 = vmatprep.mubr.msk.bf16.mxu1 %vm935_vm10, %v7577_v27  ;;  %v4184_v27 = vrot.slane %v7838_v63, 5 }
 0x250   : > { %5755 = vmatmul.mubr.msk.bf16.gmra.mxu0 %vm935_vm10, %v5176_v35 }
 0x251   : > { %5778 = vmatprep.mubr.msk.bf16.mxu0 %vm935_vm10, %v7640_v53 }
 0x254   : > { %5725 = vmatmul.mubr.msk.bf16.vlgmr.msra.gmra.mxu1 %vm935_vm10, %v7640_v53  ;;  %v4186_v53 = vrot.slane %v4184_v27, 4 }
 0x255   : > { %5759 = vmatpush3.bf16.msra.mxu1 %v4474_v56  ;;  %5728 = vmatprep.mubr.msk.bf16.mxu1 %vm935_vm10, %v7650_v20 }
 0x258   : > { %5779 = vmatmul.mubr.msk.bf16.vlgmr.msra.gmra.mxu0 %vm935_vm10, %v7650_v20  ;;  %v4187_v20 = vrot.slane %v7851_v17, 5 }
 0x259   : > { %5782 = vmatprep.mubr.msk.bf16.mxu0 %vm935_vm10, %v7682_v4 }
 0x25a   : > { %v4188_v60 = vsel %vm6546_vm1, %v4186_v53, %v4187_v20 }
 0x25c   : > { %5729 = vmatmul.mubr.msk.bf16.gmra.mxu1 %vm935_vm10, %v7682_v4  ;;  %v4185_v4 = vsel %vm6546_vm1, %v5165_v54, %v4184_v27 }
 0x25d   : > { %5732 = vmatprep.mubr.msk.bf16.mxu1 %vm935_vm10, %v7692_v12 }
 0x260   : > { %5783 = vmatmul.mubr.msk.bf16.gmra.mxu0 %vm935_vm10, %v7692_v12  ;;  %v5166_v12 = vcombine.low %v4185_v4, %v4188_v60 }
 0x261   : > { %5786 = vmatprep.mubr.msk.bf16.mxu0 %vm935_vm10, %v7730_v59 }
 0x264   : > { %5733 = vmatmul.mubr.msk.bf16.gmra.mxu1 %vm935_vm10, %v7730_v59  ;;  %v4593_v59 = vsel %vm6546_vm1, %v5195_v7, %v4592_v46 }
 0x265   : > { %5736 = vmatprep.mubr.msk.bf16.mxu1 %vm935_vm10, %v7728_v3  ;;  %v5196_v63 = vcombine.low %v4593_v59, %v4596_v23 }
 0x268   : > { %5787 = vmatmul.mubr.msk.bf16.gmra.mxu0 %vm935_vm10, %v7728_v3  ;;  %v4453_v3 = vshrl.u32 %v3148_v6, 16 }
 0x269   : > { %5790 = vmatprep.mubr.msk.bf16.mxu0 %vm935_vm10, %v5166_v12 }
 0x26a   : > { %v4455_v32 = vrot.slane %v4453_v3, 4 }
 0x26c   : > { %5737 = vmatmul.mubr.msk.bf16.gmra.mxu1 %vm935_vm10, %v5166_v12  ;;  %v4456_v44 = vor.u32 %v4455_v32, %v4451_v24 }
 0x26d   : > { %5760 = vmatprep.mubr.msk.bf16.mxu1 %vm935_vm10, %v7770_v11  ;;  %v4442_v11 = vrot.slane %v4440_v37, 4 }
 0x26e   : > { %v4457_v39 = vrot.slane %v4456_v44, 4 }
 0x26f   : > { %v4446_v51 = vor.u32 %v4445_v40, %v4442_v11 }
 0x270   : > { %5791 = vmatmul.mubr.msk.bf16.gmra.mxu0 %vm935_vm10, %v5196_v63 }
 0x274   : > { %5761 = vmatmul.mubr.msk.bf16.vlgmr.msra.gmra.mxu1 %vm935_vm10, %v7799_v41  ;;  %v4459_v41 = vshll.u32 %v3149_v58, 16 }
 0x275   : > { %5764 = vmatprep.mubr.msk.bf16.mxu1 %vm935_vm10, %v7825_v33  ;;  %v4447_v33 = vrot.slane %v4446_v51, 4 }
 0x276   : > { %v4461_v17 = vrot.slane %v4459_v41, 5 }
 0x277   : > { %v4452_v22 = vsel %vm6255_vm13, %v4447_v33, %v4451_v24 }
 0x27c   : > { %5765 = vmatmul.mubr.msk.bf16.gmra.mxu1 %vm935_vm10, %v7843_v10  ;;  %v4462_v10 = vsel %vm6255_vm13, %v4457_v39, %v4461_v17 }
 0x27d   : > { %5768 = vmatprep.mubr.msk.bf16.mxu1 %vm935_vm10, %v7857_v30  ;;  %v5185_v36 = vcombine.low %v4452_v22, %v4462_v10 }
 0x284   : > { %5769 = vmatmul.mubr.msk.bf16.gmra.mxu1 %vm935_vm10, %v7870_v2 }
 0x285   : > { %5772 = vmatprep.mubr.msk.bf16.mxu1 %vm935_vm10, %v7880_v21 }
 0x28c   : > { %5773 = vmatmul.mubr.msk.bf16.gmra.mxu1 %vm935_vm10, %v5185_v36 }
 0x2a6   : > { %v5636_v61 = vpop.f32.mrf.mxu1 }
 0x2a8   : > { %v3256_v49 = vpop.f32.mrf.mxu1 }
 0x2aa   : > { %v5637_v8 = vpop.f32.mrf.mxu1 }
 0x2ac   : > { %v3259_v16 = vpop.f32.mrf.mxu1 }
 0x2b8   : > { %v5672_v52 = vpop.f32.mrf.mxu0 }
 0x2b9   : > { %v5640_v13 = vpop.f32.mrf.mxu1 }
 0x2ba   : > { %v3828_v28 = vpop.f32.mrf.mxu0 }
 0x2bb   : > { %v3272_v30 = vpop.f32.mrf.mxu1 }
 0x2bc   : > { %v5673_v9 = vpop.f32.mrf.mxu0 }
 0x2bd   : > { %v5641_v0 = vpop.f32.mrf.mxu1 }
 0x2be   : > { %v3831_v55 = vpop.f32.mrf.mxu0 }
 0x2bf   : > { %v3275_v25 = vpop.f32.mrf.mxu1 }
 0x2c0   : > { %v5676_v45 = vpop.f32.mrf.mxu0 }
 0x2c1   : > { %v5644_v26 = vpop.f32.mrf.mxu1 }
 0x2c2   : > { %v3844_v2 = vpop.f32.mrf.mxu0 }
 0x2c3   : > { %v3288_v15 = vpop.f32.mrf.mxu1 }
 0x2c4   : > { %v5677_v18 = vpop.f32.mrf.mxu0 }
 0x2c5   : > { %v5645_v48 = vpop.f32.mrf.mxu1 }
 0x2c6   : > { %v3847_v31 = vpop.f32.mrf.mxu0 }
 0x2c7   : > { %v3291_v38 = vpop.f32.mrf.mxu1 }
 0x2c8   : > { %v5680_v50 = vpop.f32.mrf.mxu0 }
 0x2c9   : > { %v5648_v21 = vpop.f32.mrf.mxu1 }
 0x2ca   : > { %v3860_v43 = vpop.f32.mrf.mxu0 }
 0x2cb   : > { %v3304_v62 = vpop.f32.mrf.mxu1 }
 0x2cc   : > { %v5681_v19 = vpop.f32.mrf.mxu0 }
 0x2cd   : > { %v5649_v57 = vpop.f32.mrf.mxu1 }
 0x2ce   : > { %v3863_v42 = vpop.f32.mrf.mxu0 }
 0x2cf   : > { %v7983_v6 = vpop.f32.mrf.mxu1 }
 0x2d0   : > { %v5684_v47 = vpop.f32.mrf.mxu0 }
 0x2d2   : > { %v3876_v34 = vpop.f32.mrf.mxu0 }
 0x2d4   : > { %v7985_v35 = vpop.f32.mrf.mxu0  ;;  %v5654_v56 = vpop.f32.mrf.mxu1 }
 0x2d5   : > { %v3665_v53 = vadd.f32 %v5654_v56, %v5636_v61 }
 0x2d6   : > { %v7987_v27 = vpop.f32.mrf.mxu0  ;;  %v3600_v20 = vpop.f32.mrf.mxu1 }
 0x2d7   : > { %v3663_v54 = vadd.f32 %v3600_v20, %v3256_v49  ;;  %v7991_v60 = vadd.f32 %v5672_v52, %v3665_v53 }
 0x2d8   : > { %v7989_v46 = vpop.f32.mrf.mxu0  ;;  %v5655_v4 = vpop.f32.mrf.mxu1 }
 0x2d9   : > { %v3666_v12 = vadd.f32 %v5655_v4, %v5637_v8  ;;  %v7995_v29 = vadd.f32 %v3828_v28, %v3663_v54 }
 0x2da   : > { %v7993_v58 = vpop.f32.mrf.mxu0  ;;  %v3603_v5 = vpop.f32.mrf.mxu1 }
 0x2db   : > { %v3664_v23 = vadd.f32 %v3603_v5, %v3259_v16  ;;  %v7999_v59 = vadd.f32 %v5673_v9, %v3666_v12 }
 0x2dc   : > { %v7997_v7 = vpop.f32.mrf.mxu0  ;;  %v5658_v63 = vpop.f32.mrf.mxu1 }
 0x2dd   : > { %v3669_v1 = vadd.f32 %v5658_v63, %v5640_v13  ;;  %v8003_v37 = vadd.f32 %v3831_v55, %v3664_v23 }
 0x2de   : > { %v8001_v3 = vpop.f32.mrf.mxu0  ;;  %v3616_v14 = vpop.f32.mrf.mxu1 }
 0x2df   : > { %v3667_v32 = vadd.f32 %v3616_v14, %v3272_v30  ;;  %v8007_v11 = vadd.f32 %v5676_v45, %v3669_v1 }
 0x2e0   : > { %v8005_v24 = vpop.f32.mrf.mxu0  ;;  %v5659_v40 = vpop.f32.mrf.mxu1 }
 0x2e1   : > { %v3670_v51 = vadd.f32 %v5659_v40, %v5641_v0  ;;  %v8011_v41 = vadd.f32 %v3844_v2, %v3667_v32 }
 0x2e2   : > { %v8009_v44 = vpop.f32.mrf.mxu0  ;;  %v3619_v39 = vpop.f32.mrf.mxu1 }
 0x2e3   : > { %v3668_v17 = vadd.f32 %v3619_v39, %v3275_v25  ;;  %v8015_v10 = vadd.f32 %v5677_v18, %v3670_v51 }
 0x2e4   : > { %v8013_v33 = vpop.f32.mrf.mxu0  ;;  %v5662_v22 = vpop.f32.mrf.mxu1 }
 0x2e5   : > { %v3673_v61 = vadd.f32 %v5662_v22, %v5644_v26  ;;  %v8019_v49 = vadd.f32 %v3847_v31, %v3668_v17 }
 0x2e6   : > { %v8017_v36 = vpop.f32.mrf.mxu0  ;;  %v3632_v8 = vpop.f32.mrf.mxu1 }
 0x2e7   : > { %v3671_v52 = vadd.f32 %v3632_v8, %v3288_v15  ;;  %v8023_v13 = vadd.f32 %v5680_v50, %v3673_v61 }
 0x2e8   : > { %v8021_v16 = vpop.f32.mrf.mxu0  ;;  %v5663_v28 = vpop.f32.mrf.mxu1 }
 0x2e9   : > { %v3674_v9 = vadd.f32 %v5663_v28, %v5645_v48  ;;  %v8027_v0 = vadd.f32 %v3860_v43, %v3671_v52 }
 0x2ea   : > { %v8025_v30 = vpop.f32.mrf.mxu0  ;;  %v3635_v55 = vpop.f32.mrf.mxu1 }
 0x2eb   : > { %v3672_v45 = vadd.f32 %v3635_v55, %v3291_v38  ;;  %v8031_v2 = vadd.f32 %v5681_v19, %v3674_v9 }
 0x2ec   : > { %v8029_v25 = vpop.f32.mrf.mxu0  ;;  %v5666_v26 = vpop.f32.mrf.mxu1 }
 0x2ed   : > { %v3677_v31 = vadd.f32 %v5666_v26, %v5648_v21  ;;  %v8035_v56 = vadd.f32 %v3863_v42, %v3672_v45 }
 0x2ee   : > { %v8033_v18 = vpop.f32.mrf.mxu0  ;;  %v3648_v15 = vpop.f32.mrf.mxu1 }
 0x2ef   : > { %v3675_v53 = vadd.f32 %v3648_v15, %v3304_v62  ;;  %v8039_v20 = vadd.f32 %v5684_v47, %v3677_v31 }
 0x2f0   : > { %v8037_v50 = vpop.f32.mrf.mxu0  ;;  %v5667_v48 = vpop.f32.mrf.mxu1 }
 0x2f1   : > { %8440 = vst [vmem:[#allocation11_spill] sm:$0xff] %v8037_v50  ;;  %v3678_v54 = vadd.f32 %v5667_v48, %v5649_v57  ;;  %v8043_v4 = vadd.f32 %v3876_v34, %v3675_v53 }
 0x2f2   : > { %v8041_v43 = vpop.f32.mrf.mxu0  ;;  %v3651_v38 = vpop.f32.mrf.mxu1 }
 0x2f3   : > { %8441 = vst [vmem:[#allocation8_spill] sm:$0xff] %v8041_v43  ;;  %8442 = vst [vmem:[#allocation13_spill] sm:$0xff] %v8043_v4  ;;  %v3676_v12 = vadd.f32 %v3651_v38, %v7983_v6  ;;  %v8049_v21 = vadd.f32 %v7985_v35, %v3678_v54 }
 0x2f4   : > { %v8045_v19 = vpop.f32.mrf.mxu0  ;;  %v5690_v42 = vpop.f32.mrf.mxu1 }
 0x2f5   : > { %8443 = vst [vmem:[#allocation15_spill] sm:$0xff] %v8045_v19  ;;  %8444 = vst [vmem:[#allocation17_spill] sm:$0xff] %v8049_v21  ;;  %v8054_v62 = vadd.f32 %v7987_v27, %v3676_v12  ;;  %v4021_v21 = vadd.f32 %v5690_v42, %v7991_v60 }
 0x2f6   : > { %v8051_v5 = vpop.f32.mrf.mxu0  ;;  %v3956_v47 = vpop.f32.mrf.mxu1 }
 0x2f7   : > { %8445 = vst [vmem:[#allocation7_spill] sm:$0xff] %v8051_v5  ;;  %8446 = vst [vmem:[#allocation16_spill] sm:$0xff] %v8054_v62 }
 0x2f8   : > { %v8056_v23 = vpop.f32.mrf.mxu0  ;;  %v5691_v57 = vpop.f32.mrf.mxu1 }
 0x2fa   : > { %v8058_v34 = vpop.f32.mrf.mxu0  ;;  %v3959_v63 = vpop.f32.mrf.mxu1 }
 0x2fc   : > { %v8060_v1 = vpop.f32.mrf.mxu0  ;;  %v5694_v14 = vpop.f32.mrf.mxu1 }
 0x2fe   : > { %v8062_v6 = vpop.f32.mrf.mxu0  ;;  %v3972_v35 = vpop.f32.mrf.mxu1 }
 0x300   : > { %v8064_v32 = vpop.f32.mrf.mxu0  ;;  %v5695_v40 = vpop.f32.mrf.mxu1 }
 0x301   : > { %8447 = vst [vmem:[#allocation19_spill] sm:$0xff] %v8064_v32 }
 0x302   : > { %v8066_v51 = vpop.f32.mrf.mxu0  ;;  %v3975_v27 = vpop.f32.mrf.mxu1 }
 0x303   : > { %8448 = vst [vmem:[#allocation20_spill] sm:$0xff] %v8066_v51 }
 0x304   : > { %v8068_v39 = vpop.f32.mrf.mxu0  ;;  %v5698_v17 = vpop.f32.mrf.mxu1 }
 0x305   : > { %8449 = vst [vmem:[#allocation21_spill] sm:$0xff] %v8068_v39 }
 0x306   : > { %v8070_v22 = vpop.f32.mrf.mxu0  ;;  %v3988_v61 = vpop.f32.mrf.mxu1 }
 0x307   : > { %8450 = vst [vmem:[#allocation10_spill] sm:$0xff] %v8070_v22 }
 0x308   : > { %v8072_v8 = vpop.f32.mrf.mxu0  ;;  %v5699_v52 = vpop.f32.mrf.mxu1 }
 0x309   : > { %8451 = vst [vmem:[#allocation22_spill] sm:$0xff] %v8072_v8 }
 0x30a   : > { %v8074_v28 = vpop.f32.mrf.mxu0  ;;  %v8076_v9 = vpop.f32.mrf.mxu1 }
 0x30b   : > { %8452 = vst [vmem:[#allocation12_spill] sm:$0xff] %v8074_v28 }
 0x30c   : > { %v8078_v55 = vpop.f32.mrf.mxu0  ;;  %v8080_v45 = vpop.f32.mrf.mxu1 }
 0x30d   : > { %8453 = vst [vmem:[#allocation23_spill] sm:$0xff] %v8078_v55 }
 0x30e   : > { %v8082_v26 = vpop.f32.mrf.mxu0  ;;  %v8084_v31 = vpop.f32.mrf.mxu1 }
 0x30f   : > { %8454 = vst [vmem:[#allocation14_spill] sm:$0xff] %v8082_v26  ;;  %8455 = vst [vmem:[#allocation24_spill] sm:$0xff] %v8084_v31  ;;  %v4019_v31 = vadd.f32 %v3956_v47, %v7995_v29  ;;  %v4025_v29 = vadd.f32 %v5694_v14, %v8007_v11 }
 0x310   : > { %v8086_v15 = vpop.f32.mrf.mxu0  ;;  %v8088_v53 = vpop.f32.mrf.mxu1 }
 0x311   : > { %8456 = vst [vmem:[#allocation25_spill] sm:$0xff] %v8086_v15  ;;  %8457 = vst [vmem:[#allocation26_spill] sm:$0xff] %v8088_v53 }
 0x312   : > { %v8090_v48 = vpop.f32.mrf.mxu0  ;;  %v8092_v54 = vpop.f32.mrf.mxu1 }
 0x313   : > { %8458 = vst [vmem:[#allocation27_spill] sm:$0xff] %v8090_v48  ;;  %8459 = vst [vmem:[#allocation28_spill] sm:$0xff] %v8092_v54 }
 0x314   : > { %v8094_v38 = vpop.f32.mrf.mxu0  ;;  %v5726_v12 = vpop.f32.mrf.mxu1 }
 0x315   : > { %8460 = vst [vmem:[#allocation29_spill] sm:$0xff] %v8094_v38 }
 0x316   : > { %v8096_v5 = vpop.f32.mrf.mxu0  ;;  %v4236_v19 = vpop.f32.mrf.mxu1 }
 0x317   : > { %8461 = vst [vmem:[#allocation5_spill] sm:$0xff] %v8096_v5 }
 0x318   : > { %v5727_v55 = vpop.f32.mrf.mxu1  ;;  %v5780_v28 = vpop.f32.mrf.mxu0 }
 0x31a   : > { %v4239_v43 = vpop.f32.mrf.mxu1  ;;  %v4640_v26 = vpop.f32.mrf.mxu0 }
 0x31c   : > { %v5730_v62 = vpop.f32.mrf.mxu1  ;;  %v8098_v22 = vpop.f32.mrf.mxu0 }
 0x31e   : > { %v4252_v8 = vpop.f32.mrf.mxu1  ;;  %v8102_v48 = vpop.f32.mrf.mxu0 }
 0x31f   : > { %8462 = vst [vmem:[#allocation6_spill] sm:$0xff] %v8102_v48  ;;  %v4022_v48 = vadd.f32 %v5691_v57, %v7999_v59  ;;  %v4023_v59 = vadd.f32 %v3972_v35, %v8011_v41 }
 0x320   : > { %v5731_v15 = vpop.f32.mrf.mxu1  ;;  %v8108_v53 = vpop.f32.mrf.mxu0 }
 0x321   : > { %8465 = vst [vmem:[#allocation9_spill] sm:$0xff] %v8108_v53 }
 0x322   : > { %v8100_v50 = vpop.f32.mrf.mxu1  ;;  %v8116_v4 = vpop.f32.mrf.mxu0 }
 0x324   : > { %v8104_v54 = vpop.f32.mrf.mxu1  ;;  %v8126_v60 = vpop.f32.mrf.mxu0 }
 0x325   : > { %8463 = vst [vmem:[#allocation4_spill] sm:$0xff] %v8104_v54  ;;  %v4167_v54 = vadd.f32 %v7989_v46, %v4021_v21  ;;  %v4026_v46 = vadd.f32 %v5695_v40, %v8015_v10 }
 0x326   : > { %v8106_v38 = vpop.f32.mrf.mxu1 }
 0x327   : > { %8464 = vst [vmem:[#allocation18_spill] sm:$0xff] %v8106_v38  ;;  %v4020_v38 = vadd.f32 %v3959_v63, %v8003_v37  ;;  %v4301_v53 = vadd.f32 %v5726_v12, %v4167_v54  ;;  %v4024_v37 = vadd.f32 %v3975_v27, %v8019_v49  ;;  %v8140_v54 = vpop.f32.mrf.mxu0  ;;  %v4030_v49 = vadd.f32 %v5699_v52, %v8031_v2 }
 0x328   : > { %v8110_v5 = vpop.f32.mrf.mxu1 }
 0x329   : > { %8466 = vst [vmem:[#allocation30_spill] sm:$0xff] %v8110_v5  ;;  %v4165_v5 = vadd.f32 %v7993_v58, %v4019_v31  ;;  %v4166_v58 = vadd.f32 %v8001_v3, %v4020_v38  ;;  %v4425_v63 = vadd.f32 %v8056_v23, %v4301_v53  ;;  %v4029_v31 = vadd.f32 %v5698_v17, %v8023_v13  ;;  %v8151_v13 = vld [vmem:[%s8299_s4] ss:$0 sm:$0xff]  ;;  %v8158_v40 = vpop.f32.mrf.mxu0  ;;  %v8469_v53 = vld [vmem:[#allocation20_spill] sm:$0xff] }
 0x32a   : > { %v8113_v39 = vpop.f32.mrf.mxu1  ;;  %v4169_v3 = vadd.f32 %v8009_v44, %v4023_v59  ;;  %v4172_v23 = vadd.f32 %v8013_v33, %v4026_v46  ;;  %v5907_v38 = vld [vmem:[%s6099_s19] sm:$0xff]  ;;  %v8471_v46 = vld [vmem:[#allocation13_spill] sm:$0xff] }
 0x32b   : > { %v4299_v47 = vadd.f32 %v4236_v19, %v4165_v5  ;;  %v4300_v19 = vadd.f32 %v4239_v43, %v4166_v58  ;;  %v4027_v5 = vadd.f32 %v3988_v61, %v8027_v0  ;;  %v4028_v0 = vadd.f32 %v8076_v9, %v8035_v56 }
 0x32c   : > { %v8118_v51 = vpop.f32.mrf.mxu1  ;;  %v4303_v44 = vadd.f32 %v4252_v8, %v4169_v3  ;;  %v4175_v33 = vadd.f32 %v8021_v16, %v4029_v31  ;;  %v4306_v52 = vadd.f32 %v5731_v15, %v4172_v23  ;;  %v5906_v8 = vld [vmem:[%s6099_s19 + $0x10] sm:$0xff]  ;;  %v8476_v3 = vld [vmem:[#allocation26_spill] sm:$0xff] }
 0x32d   : > { %8467 = vst [vmem:[#allocation31_spill] sm:$0xff] %v8118_v51  ;;  %v4168_v51 = vadd.f32 %v7997_v7, %v4022_v48  ;;  %v4171_v7 = vadd.f32 %v8005_v24, %v4025_v29  ;;  %v4423_v10 = vadd.f32 %v8058_v34, %v4299_v47  ;;  %v4170_v24 = vadd.f32 %v8017_v36, %v4024_v37  ;;  %v8470_v47 = vld [vmem:[#allocation6_spill] sm:$0xff]  ;;  %v8474_v31 = vld [vmem:[#allocation21_spill] sm:$0xff] }
 0x32e   : > { %v8122_v32 = vpop.f32.mrf.mxu1  ;;  %v4424_v61 = vadd.f32 %v8062_v6, %v4300_v19  ;;  %v4173_v56 = vadd.f32 %v8025_v30, %v4027_v5  ;;  %v4174_v30 = vadd.f32 %v8033_v18, %v4028_v0  ;;  %v8177_v6 = vpop.f32.mrf.mxu0  ;;  %v4427_v48 = vadd.f32 %v8469_v53, %v4303_v44  ;;  %v8485_v53 = vld [vmem:[#allocation8_spill] sm:$0xff] }
 0x32f   : > { %v4302_v57 = vadd.f32 %v5727_v55, %v4168_v51  ;;  %v4305_v2 = vadd.f32 %v5730_v62, %v4171_v7  ;;  %v4176_v62 = vadd.f32 %v8029_v25, %v4030_v49  ;;  %v8468_v25 = vld [vmem:[#allocation19_spill] sm:$0xff]  ;;  %v5908_v7 = vld [vmem:[%s6099_s19 + $0x18] sm:$0xff]  ;;  %v8475_v49 = vld [vmem:[#allocation17_spill] sm:$0xff] }
 0x330   : > { %v8128_v42 = vpop.f32.mrf.mxu1  ;;  %v4034_v23 = vadd.f32 %v8476_v3, %v8475_v49 }
 0x331   : > { %v4426_v34 = vadd.f32 %v8060_v1, %v4302_v57  ;;  %v4033_v1 = vadd.f32 %v8080_v45, %v8039_v20  ;;  %v4304_v20 = vadd.f32 %v8100_v50, %v4170_v24  ;;  %v4429_v45 = vadd.f32 %v8468_v25, %v4305_v2  ;;  %v8472_v50 = vld [vmem:[#allocation24_spill] sm:$0xff]  ;;  %v8479_v2 = vld [vmem:[#allocation10_spill] sm:$0xff] }
 0x332   : > { %v8134_v21 = vpop.f32.mrf.mxu1  ;;  %v4031_v37 = vadd.f32 %v8472_v50, %v8471_v46  ;;  %v8473_v57 = vld [vmem:[#allocation4_spill] sm:$0xff] }
 0x333   : > { %v4309_v18 = vadd.f32 %v8473_v57, %v4175_v33  ;;  %v4428_v44 = vadd.f32 %v8479_v2, %v4304_v20 }
 0x334   : > { %v5762_v11 = vpop.f32.mrf.mxu1  ;;  %v8486_v57 = vld [vmem:[#allocation31_spill] sm:$0xff] }
 0x335   : > { %v4575_v41 = vadd.f32 %v5762_v11, %v4425_v63  ;;  %v4430_v11 = vadd.f32 %v8474_v31, %v4306_v52 }
 0x336   : > { %v4510_v43 = vpop.f32.mrf.mxu1 }
 0x337   : > { %v4705_v14 = vadd.f32 %v5780_v28, %v4575_v41  ;;  %v4573_v35 = vadd.f32 %v4510_v43, %v4423_v10  ;;  %v8477_v43 = vld [vmem:[#allocation11_spill] sm:$0xff] }
 0x338   : > { %v5763_v51 = vpop.f32.mrf.mxu1  ;;  %v4179_v24 = vadd.f32 %v8477_v43, %v4033_v1  ;;  %v8481_v1 = vld [vmem:[#allocation30_spill] sm:$0xff] }
 0x339   : > { %v4728_v27 = vadd.f32 %v8151_v13, %v4705_v14  ;;  %v4703_v17 = vadd.f32 %v4640_v26, %v4573_v35  ;;  %v4576_v36 = vadd.f32 %v5763_v51, %v4426_v34  ;;  %v8195_v14 = vpop.f32.mrf.mxu0  ;;  %v8478_v35 = vld [vmem:[#allocation9_spill] sm:$0xff]  ;;  %v5909_v51 = vld [vmem:[%s6099_s19 + $0x8] sm:$0xff]  ;;  %v8489_v43 = vld [vmem:[#allocation14_spill] sm:$0xff] }
 0x33a   : > { %v4513_v16 = vpop.f32.mrf.mxu1 }
 0x33b   : > { %v4744_v28 = vadd.f32 %v5906_v8, %v4728_v27  ;;  %v4726_v9 = vadd.f32 %v8151_v13, %v4703_v17  ;;  %v4706_v55 = vadd.f32 %v8098_v22, %v4576_v36  ;;  %v4574_v26 = vadd.f32 %v4513_v16, %v4424_v61  ;;  %v8480_v61 = vld [vmem:[#allocation18_spill] sm:$0xff] }
 0x33c   : > { %v5766_v15 = vpop.f32.mrf.mxu1  ;;  %v4307_v52 = vadd.f32 %v8480_v61, %v4173_v56  ;;  %v4310_v16 = vadd.f32 %v8481_v1, %v4176_v62  ;;  %v4308_v62 = vadd.f32 %v8113_v39, %v4174_v30  ;;  %v8487_v30 = vld [vmem:[#allocation12_spill] sm:$0xff]  ;;  %v5914_v1 = vld [vmem:[%s6099_s19 + $0x50] sm:$0xff] }
 0x33d   : > { %v4760_v22 = vmax.f32 %v4744_v28, 0.0  ;;  %v4742_v12 = vadd.f32 %v5907_v38, %v4726_v9  ;;  %v4729_v29 = vadd.f32 %v8151_v13, %v4706_v55  ;;  %v4704_v59 = vadd.f32 %v8470_v47, %v4574_v26  ;;  %v8482_v9 = vld [vmem:[#allocation22_spill] sm:$0xff]  ;;  %v5910_v38 = vld [vmem:[%s6099_s19 + $0x30] sm:$0xff]  ;;  %v5911_v47 = vld [vmem:[%s6099_s19 + $0x20] sm:$0xff] }
 0x33e   : > { %v4579_v58 = vadd.f32 %v5766_v15, %v4429_v45  ;;  %v4526_v63 = vpop.f32.mrf.mxu1  ;;  %v4433_v55 = vadd.f32 %v8482_v9, %v4309_v18  ;;  %v8483_v45 = vld [vmem:[#allocation16_spill] sm:$0xff]  ;;  %v4313_v18 = vadd.f32 %v8486_v57, %v4179_v24  ;;  %v4432_v24 = vadd.f32 %v8489_v43, %v4308_v62 }
 0x33f   : > { %4776 = vst.msk [vmem:[%s8173_s12 + $0x10] sm:$0xff] %vm935_vm10, %v4760_v22  ;;  %v4758_v19 = vmax.f32 %v4742_v12, 0.0  ;;  %v4745_v41 = vadd.f32 %v5908_v7, %v4729_v29  ;;  %v4727_v10 = vadd.f32 %v8151_v13, %v4704_v59  ;;  %v4577_v5 = vadd.f32 %v4526_v63, %v4427_v48  ;;  %v8484_v15 = vld [vmem:[#allocation28_spill] sm:$0xff]  ;;  %v4675_v22 = vpop.f32.mrf.mxu0  ;;  %v8488_v63 = vld [vmem:[#allocation23_spill] sm:$0xff] }
 0x340   : > { %v4709_v34 = vadd.f32 %v8478_v35, %v4579_v58  ;;  %v5767_v0 = vpop.f32.mrf.mxu1  ;;  %v4032_v56 = vadd.f32 %v8484_v15, %v8483_v45  ;;  %v4177_v48 = vadd.f32 %v8485_v53, %v4031_v37  ;;  %v4431_v37 = vadd.f32 %v8487_v30, %v4307_v52 }
 0x341   : > { %4774 = vst.msk [vmem:[%s8173_s12] sm:$0xff] %vm935_vm10, %v4758_v19  ;;  %v4761_v33 = vmax.f32 %v4745_v41, 0.0  ;;  %v4743_v27 = vadd.f32 %v5909_v51, %v4727_v10  ;;  %v4707_v17 = vadd.f32 %v8116_v4, %v4577_v5  ;;  %v4580_v36 = vadd.f32 %v5767_v0, %v4430_v11  ;;  %v5912_v19 = vld [vmem:[%s6099_s19 + $0x38] sm:$0xff]  ;;  %v5792_v5 = vpop.f32.mrf.mxu0 }
 0x342   : > { %v4732_v8 = vadd.f32 %v8151_v13, %v4709_v34  ;;  %v4529_v28 = vpop.f32.mrf.mxu1  ;;  %v4434_v31 = vadd.f32 %v8488_v63, %v4310_v16  ;;  %v5913_v34 = vld [vmem:[%s6099_s19 + $0x28] sm:$0xff] }
 0x343   : > { %4777 = vst.msk [vmem:[%s8173_s12 + $0x18] sm:$0xff] %vm935_vm10, %v4761_v33  ;;  %v4759_v26 = vmax.f32 %v4743_v27, 0.0  ;;  %v4730_v20 = vadd.f32 %v8151_v13, %v4707_v17  ;;  %v4710_v4 = vadd.f32 %v8126_v60, %v4580_v36  ;;  %v4578_v25 = vadd.f32 %v4529_v28, %v4428_v44  ;;  %v8492_v36 = vld [vmem:[#allocation25_spill] sm:$0xff] }
 0x344   : > { %v4748_v12 = vadd.f32 %v5910_v38, %v4732_v8  ;;  %v5770_v29 = vpop.f32.mrf.mxu1  ;;  %v4437_v61 = vadd.f32 %v8492_v36, %v4313_v18  ;;  %v5917_v18 = vld [vmem:[%s6099_s19 + $0x48] sm:$0xff] }
 0x345   : > { %4775 = vst.msk [vmem:[%s8173_s12 + $0x8] sm:$0xff] %vm935_vm10, %v4759_v26  ;;  %v4746_v59 = vadd.f32 %v5911_v47, %v4730_v20  ;;  %v4733_v60 = vadd.f32 %v8151_v13, %v4710_v4  ;;  %v4708_v46 = vadd.f32 %v8140_v54, %v4578_v25  ;;  %v4583_v50 = vadd.f32 %v5770_v29, %v4433_v55  ;;  %v4688_v55 = vpop.f32.mrf.mxu0  ;;  %v8493_v20 = vld [vmem:[#allocation27_spill] sm:$0xff] }
 0x346   : > { %v4764_v39 = vmax.f32 %v4748_v12, 0.0  ;;  %v4542_v58 = vpop.f32.mrf.mxu1  ;;  %v4311_v54 = vadd.f32 %v8122_v32, %v4177_v48  ;;  %v8491_v32 = vld [vmem:[#allocation7_spill] sm:$0xff] }
 0x347   : > { %v4762_v11 = vmax.f32 %v4746_v59, 0.0  ;;  %v4749_v7 = vadd.f32 %v5912_v19, %v4733_v60  ;;  %v4731_v41 = vadd.f32 %v8151_v13, %v4708_v46  ;;  %v4713_v10 = vadd.f32 %v8158_v40, %v4583_v50  ;;  %v8490_v40 = vld [vmem:[#allocation15_spill] sm:$0xff]  ;;  %v5793_v29 = vpop.f32.mrf.mxu0  ;;  %v8494_v59 = vld [vmem:[#allocation29_spill] sm:$0xff] }
 0x348   : > { %4780 = vst.msk [vmem:[%s8173_s12 + $0x30] sm:$0xff] %vm935_vm10, %v4764_v39  ;;  %v4581_v49 = vadd.f32 %v4542_v58, %v4431_v37  ;;  %v5771_v3 = vpop.f32.mrf.mxu1  ;;  %v4180_v33 = vadd.f32 %v8490_v40, %v4034_v23  ;;  %v4178_v51 = vadd.f32 %v8491_v32, %v4032_v56  ;;  %v4435_v4 = vadd.f32 %v8493_v20, %v4311_v54  ;;  %v5915_v56 = vld [vmem:[%s6099_s19 + $0x40] sm:$0xff]  ;;  %v8495_v46 = vld [vmem:[#allocation5_spill] sm:$0xff] }
 0x349   : > { %4778 = vst.msk [vmem:[%s8173_s12 + $0x20] sm:$0xff] %vm935_vm10, %v4762_v11  ;;  %v4765_v35 = vmax.f32 %v4749_v7, 0.0  ;;  %v4747_v0 = vadd.f32 %v5913_v34, %v4731_v41  ;;  %v4736_v2 = vadd.f32 %v8151_v13, %v4713_v10  ;;  %v4584_v44 = vadd.f32 %v5771_v3, %v4434_v31  ;;  %v5918_v11 = vld [vmem:[%s6099_s19 + $0x70] sm:$0xff]  ;;  %v4691_v10 = vpop.f32.mrf.mxu0 }
 0x34a   : > { %v4711_v27 = vadd.f32 %v8177_v6, %v4581_v49  ;;  %v4545_v17 = vpop.f32.mrf.mxu1  ;;  %v4314_v23 = vadd.f32 %v8128_v42, %v4180_v33  ;;  %v4312_v9 = vadd.f32 %v8134_v21, %v4178_v51  ;;  %v5916_v42 = vld [vmem:[%s6099_s19 + $0x58] sm:$0xff]  ;;  %v5919_v49 = vld [vmem:[%s6099_s19 + $0x60] sm:$0xff] }
 0x34b   : > { %4781 = vst.msk [vmem:[%s8173_s12 + $0x38] sm:$0xff] %vm935_vm10, %v4765_v35  ;;  %v4763_v52 = vmax.f32 %v4747_v0, 0.0  ;;  %v4752_v16 = vadd.f32 %v5914_v1, %v4736_v2  ;;  %v4714_v8 = vadd.f32 %v8195_v14, %v4584_v44  ;;  %v4582_v28 = vadd.f32 %v4545_v17, %v4432_v24  ;;  %v5920_v0 = vld [vmem:[%s6099_s19 + $0x78] sm:$0xff]  ;;  %v5921_v44 = vld [vmem:[%s6099_s19 + $0x68] sm:$0xff] }
 0x34c   : > { %v4734_v6 = vadd.f32 %v8151_v13, %v4711_v27  ;;  %v5774_v26 = vpop.f32.mrf.mxu1  ;;  %v4436_v50 = vadd.f32 %v8495_v46, %v4312_v9 }
 0x34d   : > { %4779 = vst.msk [vmem:[%s8173_s12 + $0x28] sm:$0xff] %vm935_vm10, %v4763_v52  ;;  %v4768_v25 = vmax.f32 %v4752_v16, 0.0  ;;  %v4737_v45 = vadd.f32 %v8151_v13, %v4714_v8  ;;  %v4712_v15 = vadd.f32 %v4675_v22, %v4582_v28  ;;  %v4587_v14 = vadd.f32 %v5774_v26, %v4437_v61 }
 0x34e   : > { %v4750_v62 = vadd.f32 %v5915_v56, %v4734_v6  ;;  %v4558_v53 = vpop.f32.mrf.mxu1  ;;  %v4438_v22 = vadd.f32 %v8494_v59, %v4314_v23 }
 0x34f   : > { %4784 = vst.msk [vmem:[%s8173_s12 + $0x50] sm:$0xff] %vm935_vm10, %v4768_v25  ;;  %v4753_v21 = vadd.f32 %v5916_v42, %v4737_v45  ;;  %v4735_v48 = vadd.f32 %v8151_v13, %v4712_v15  ;;  %v4717_v38 = vadd.f32 %v5792_v5, %v4587_v14  ;;  %v4585_v12 = vadd.f32 %v4558_v53, %v4435_v4 }
 0x350   : > { %v4766_v47 = vmax.f32 %v4750_v62, 0.0  ;;  %v5775_v60 = vpop.f32.mrf.mxu1 }
 0x351   : > { %v4769_v57 = vmax.f32 %v4753_v21, 0.0  ;;  %v4751_v39 = vadd.f32 %v5917_v18, %v4735_v48  ;;  %v4740_v30 = vadd.f32 %v8151_v13, %v4717_v38  ;;  %v4715_v37 = vadd.f32 %v4688_v55, %v4585_v12 }
 0x352   : > { %4782 = vst.msk [vmem:[%s8173_s12 + $0x40] sm:$0xff] %vm935_vm10, %v4766_v47  ;;  %v4588_v58 = vadd.f32 %v5775_v60, %v4438_v22  ;;  %v4561_v63 = vpop.f32.mrf.mxu1 }
 0x353   : > { %4785 = vst.msk [vmem:[%s8173_s12 + $0x58] sm:$0xff] %vm935_vm10, %v4769_v57  ;;  %v4767_v31 = vmax.f32 %v4751_v39, 0.0  ;;  %v4756_v19 = vadd.f32 %v5918_v11, %v4740_v30  ;;  %v4738_v7 = vadd.f32 %v8151_v13, %v4715_v37  ;;  %v4586_v41 = vadd.f32 %v4561_v63, %v4436_v50 }
 0x354   : > { %v4718_v54 = vadd.f32 %v5793_v29, %v4588_v58 }
 0x355   : > { %4783 = vst.msk [vmem:[%s8173_s12 + $0x48] sm:$0xff] %vm935_vm10, %v4767_v31  ;;  %v4772_v5 = vmax.f32 %v4756_v19, 0.0  ;;  %v4754_v3 = vadd.f32 %v5919_v49, %v4738_v7  ;;  %v4716_v43 = vadd.f32 %v4691_v10, %v4586_v41 }
 0x356   : > { %v4741_v24 = vadd.f32 %v8151_v13, %v4718_v54 }
 0x357   : > { %4788 = vst.msk [vmem:[%s8173_s12 + $0x70] sm:$0xff] %vm935_vm10, %v4772_v5  ;;  %v4770_v35 = vmax.f32 %v4754_v3, 0.0  ;;  %v4739_v34 = vadd.f32 %v8151_v13, %v4716_v43 }
 0x358   : > { %v4757_v2 = vadd.f32 %v5920_v0, %v4741_v24 }
 0x359   : > { %4786 = vst.msk [vmem:[%s8173_s12 + $0x60] sm:$0xff] %vm935_vm10, %v4770_v35  ;;  %v4755_v40 = vadd.f32 %v5921_v44, %v4739_v34 }
 0x35a   : > { %v4773_v33 = vmax.f32 %v4757_v2, 0.0 }
 0x35b   : > { %v4771_v32 = vmax.f32 %v4755_v40, 0.0 }
 0x35c   : > { %4789 = vst.msk [vmem:[%s8173_s12 + $0x78] sm:$0xff] %vm935_vm10, %v4773_v33 }
 0x35d   : > { %4787 = vst.msk [vmem:[%s8173_s12 + $0x68] sm:$0xff] %vm935_vm10, %v4771_v32 }
 0x35e PF: > { %s15_s22 = sadd.s32 1, %s5960_s22   ;;  %s8496_s18 = smov %s5952_s20 }
 0x35f   : > { %p12_p11 = scmp.ge.s32.totalorder %s15_s22, 6   ;;  %s8497_s19 = smov %s5956_s21 }
 0x360   : > { %s8498_s20 = smov %s8501_s23  ;;  %s8499_s21 = smov %s8505_s24 }
 0x361   :  { %14 = sbr.rel (!%p12_p11) target bundleno = 3 (0x3), region = 77 }

</bundles_post_ra>
